<compile_context>
chip_gen: v7x
topology: tpu7x:2x2x1
jax: 0.10.0
libtpu: 0.0.40
codegen_flags: <defaults>
</compile_context>

<pallas_src>
import functools

import jax
import jax.numpy as jnp
from jax.experimental import pallas as pl
from jax.experimental.pallas import tpu as pltpu


# --------------------------------------------------------------------------- #
# helpers
# --------------------------------------------------------------------------- #
def _round_up(v, m):
    return ((v + m - 1) // m) * m


def _pad_gate_cols(w, H, Hp):
    """(rows, 4H) -> (rows, 4Hp): pad each PyTorch gate block (i,f,g,o) H->Hp."""
    rows = w.shape[0]
    w4 = w.reshape(rows, 4, H)
    w4 = jnp.pad(w4, ((0, 0), (0, 0), (0, Hp - H)))
    return w4.reshape(rows, 4 * Hp)


def _pad_rows(w, rows_p):
    return jnp.pad(w, ((0, rows_p - w.shape[0]), (0, 0)))


def _default_batch_blocks(Bp):
    """Shard batch across a 'parallel' grid axis only when each core still gets
    an MXU-throughput-relevant block (>=128 rows).  Splitting a tiny,
    latency-bound recurrence across TensorCores saves nothing and duplicates
    all resident weights in both cores' VMEM."""
    try:
        kind = jax.devices()[0].device_kind.lower()
    except Exception:
        return 1
    multi_tc = any(tag in kind for tag in ("v7", "7x", "v4", "v5p"))
    if multi_tc and Bp >= 256 and (Bp // 2) % 8 == 0:
        return 2
    return 1


def _vmem_limit_bytes():
    """Generation-aware scoped-VMEM budget: ~3/4 of physical, capped at 100 MiB
    (v5e/v6e: 128 MiB physical -> 96 MiB; v7x: 64 MiB physical -> 48 MiB)."""
    default = 64 * 1024 * 1024
    try:
        cap = int(getattr(pltpu.get_tpu_info(), "vmem_capacity_bytes", 0))
    except Exception:
        return default
    if cap <= 0:
        return default
    return max(32 * 1024 * 1024, min(100 * 1024 * 1024, (cap * 3) // 4))


# --------------------------------------------------------------------------- #
# kernel
# --------------------------------------------------------------------------- #
def _char_lstm_kernel(x_ref, wih0_ref, whh0_ref, b0_ref, w1_ref, b1_ref,
                      wout_ref, bout_ref, out_ref,
                      h0_ref, c0_ref, h1_ref, c1_ref, *, total_T):
    t = pl.program_id(1)                  # time-chunk index (inner, "arbitrary")
    TC, BB, I = x_ref.shape               # timesteps per chunk, batch block, input
    Hp = whh0_ref.shape[0]                # padded hidden size (multiple of 128)
    Vp = out_ref.shape[1]
    mm_dtype = whh0_ref.dtype             # matmul dtype (bf16 by default)
    f32 = jnp.float32
    ragged = (total_T % TC) != 0          # static: does the last chunk overrun T?

    @pl.when(t == 0)
    def _init():
        h0_ref[...] = jnp.zeros_like(h0_ref)
        c0_ref[...] = jnp.zeros_like(c0_ref)
        h1_ref[...] = jnp.zeros_like(h1_ref)
        c1_ref[...] = jnp.zeros_like(c1_ref)

    whh0 = whh0_ref[...]                  # (Hp, 4Hp)
    w1 = w1_ref[...]                      # (2Hp, 4Hp) fused [wih1; whh1]

    # Biases: broadcast exactly once (JAX doesn't CSE broadcast_in_dim).
    b0b = jnp.broadcast_to(b0_ref[...], (BB, 4 * Hp)).astype(f32)
    b1b = jnp.broadcast_to(b1_ref[...], (BB, 4 * Hp)).astype(f32)

    # ---- layer-0 input projection, hoisted off the serial critical path -----
    if I == 1:
        # (BB,1) x (1,4Hp) is an outer product: pure VPU broadcast-mul, no MXU.
        w0b = jnp.broadcast_to(wih0_ref[...], (BB, 4 * Hp)).astype(f32)

        def xproj(j):
            return x_ref[j].astype(f32) * w0b + b0b
    else:
        # One batched (TC*BB, I) matmul for the whole chunk instead of TC K=I dots.
        x2 = x_ref[...].reshape(TC * BB, I)
        xp_all = jnp.dot(x2, wih0_ref[...], preferred_element_type=f32)

        def xproj(j):
            return xp_all[j * BB:(j + 1) * BB, :] + b0b

    def split_gates(g):
        # PyTorch gate order: i, f, g, o.  Hp multiple of 128 -> lane-aligned slices.
        return (jax.nn.sigmoid(g[:, 0 * Hp:1 * Hp]),
                jax.nn.sigmoid(g[:, 1 * Hp:2 * Hp]),
                jnp.tanh(g[:, 2 * Hp:3 * Hp]),
                jax.nn.sigmoid(g[:, 3 * Hp:4 * Hp]))

    h0 = h0_ref[...]
    c0 = c0_ref[...]
    h1 = h1_ref[...]
    c1 = c1_ref[...]

    # Fully-unrolled time recurrence within the chunk (lets the scheduler
    # overlap step j+1's MXU pushes under step j's EUP latency).
    for j in range(TC):
        g0 = xproj(j) + jnp.dot(h0.astype(mm_dtype), whh0,
                                preferred_element_type=f32)
        i0, f0, gg0, o0 = split_gates(g0)
        c0n = f0 * c0 + i0 * gg0
        h0n = o0 * jnp.tanh(c0n)
        # TODO(synk): inter-layer LSTM dropout (p=0.2) is identity in eval mode;
        # training-mode stochastic dropout not implemented.
        # Fused layer-1 gate matmul: one K=2*Hp pass instead of two K=Hp passes.
        h01 = jnp.concatenate([h0n, h1], axis=-1).astype(mm_dtype)
        g1 = jnp.dot(h01, w1, preferred_element_type=f32) + b1b
        i1, f1, gg1, o1 = split_gates(g1)
        c1n = f1 * c1 + i1 * gg1
        h1n = o1 * jnp.tanh(c1n)

        if ragged:
            # Steps past the true sequence end must NOT advance the state
            # (extra LSTM steps would change the final hidden state).
            valid = (t * TC + j) < total_T
            h0 = jnp.where(valid, h0n, h0)
            c0 = jnp.where(valid, c0n, c0)
            h1 = jnp.where(valid, h1n, h1)
            c1 = jnp.where(valid, c1n, c1)
        else:
            h0, c0, h1, c1 = h0n, c0n, h1n, c1n

    h0_ref[...] = h0
    c0_ref[...] = c0
    h1_ref[...] = h1
    c1_ref[...] = c1

    @pl.when(t == pl.num_programs(1) - 1)
    def _head():
        # post-LSTM dropout is identity in eval mode; linear head on last h1.
        # Output lanes padded to a multiple of 128 -> lane-dense store.
        bout_b = jnp.broadcast_to(bout_ref[...], (BB, Vp)).astype(f32)
        out_ref[...] = (jnp.dot(h1.astype(wout_ref.dtype), wout_ref[...],
                                preferred_element_type=f32) + bout_b)


# --------------------------------------------------------------------------- #
# wrapper
# --------------------------------------------------------------------------- #
def char_model_forward(x, params, *, matmul_dtype=jnp.bfloat16,
                       batch_blocks=None, max_time_chunk=64):
    B, T, I = x.shape
    H = params["whh0"].shape[0]
    V = params["wout"].shape[1]
    f32 = jnp.float32

    Bp = _round_up(B, 8)          # sublane alignment
    Hp = _round_up(H, 128)        # lane alignment of each gate block
    Vp = _round_up(V, 128)        # lane-dense output store
    TC = min(T, max_time_chunk)   # big chunks; ragged tail handled by masking
    nt = (T + TC - 1) // TC
    T_pad = nt * TC

    if batch_blocks is None:
        batch_blocks = _default_batch_blocks(Bp)
    nb = batch_blocks
    assert Bp % nb == 0 and (Bp // nb) % 8 == 0
    BB = Bp // nb

    # Input-projection dtype: I==1 goes through the VPU (keep f32); for larger
    # I use the bf16 MXU path (halves DMA bytes, fast MXU path on v5e).
    in_proj_dtype = f32 if I == 1 else matmul_dtype

    # --- pad / lay out parameters (zero padding keeps padded h/c lanes at 0) --
    wih0 = _pad_gate_cols(params["wih0"].astype(f32), H, Hp).astype(in_proj_dtype)
    whh0 = _pad_rows(_pad_gate_cols(params["whh0"].astype(f32), H, Hp), Hp
                     ).astype(matmul_dtype)                                  # (Hp, 4Hp)
    wih1 = _pad_rows(_pad_gate_cols(params["wih1"].astype(f32), H, Hp), Hp)
    whh1 = _pad_rows(_pad_gate_cols(params["whh1"].astype(f32), H, Hp), Hp)
    # Fused layer-1 weight: g1 = [h0, h1] @ [wih1; whh1]  (one K=2*Hp matmul).
    w1 = jnp.concatenate([wih1, whh1], axis=0).astype(matmul_dtype)          # (2Hp, 4Hp)
    b0 = _pad_gate_cols(params["b0"].astype(f32), H, Hp)                     # (1, 4Hp)
    b1 = _pad_gate_cols(params["b1"].astype(f32), H, Hp)                     # (1, 4Hp)
    wout = jnp.pad(params["wout"].astype(f32),
                   ((0, Hp - H), (0, Vp - V))).astype(matmul_dtype)          # (Hp, Vp)
    bout = jnp.pad(params["bout"].astype(f32), ((0, 0), (0, Vp - V)))        # (1, Vp)

    # time-major input; x itself is tiny (B*T*input_size) so this is negligible.
    # Padded timesteps exist only so the chunk grid is rectangular; they are
    # masked out of the recurrence inside the kernel.
    x_p = jnp.pad(x.astype(in_proj_dtype),
                  ((0, Bp - B), (0, T_pad - T), (0, 0)))
    x_tm = jnp.transpose(x_p, (1, 0, 2))                                     # (T_pad, Bp, I)

    const2 = lambda b, t: (0, 0)
    kernel = functools.partial(_char_lstm_kernel, total_T=T)

    out_p = pl.pallas_call(
        kernel,
        out_shape=jax.ShapeDtypeStruct((Bp, Vp), f32),
        grid=(nb, nt),
        in_specs=[
            pl.BlockSpec((TC, BB, I), lambda b, t: (t, b, 0)),   # x chunk (streamed)
            pl.BlockSpec((wih0.shape[0], 4 * Hp), const2),       # wih0  (resident)
            pl.BlockSpec((Hp, 4 * Hp), const2),                  # whh0
            pl.BlockSpec((1, 4 * Hp), const2),                   # b0
            pl.BlockSpec((2 * Hp, 4 * Hp), const2),              # [wih1; whh1] fused
            pl.BlockSpec((1, 4 * Hp), const2),                   # b1
            pl.BlockSpec((Hp, Vp), const2),                      # wout
            pl.BlockSpec((1, Vp), const2),                       # bout
        ],
        out_specs=pl.BlockSpec((BB, Vp), lambda b, t: (b, 0)),
        scratch_shapes=[pltpu.VMEM((BB, Hp), f32) for _ in range(4)],  # h0,c0,h1,c1
        compiler_params=pltpu.CompilerParams(
            dimension_semantics=("parallel", "arbitrary"),
            vmem_limit_bytes=_vmem_limit_bytes(),
        ),
    )(x_tm, wih0, whh0, b0, w1, b1, wout, bout)

    return out_p[:B, :V]


# --------------------------------------------------------------------------- #
# params + pure-JAX reference
# --------------------------------------------------------------------------- #
def init_params(key, input_size, hidden_size, n_vocab):
    """Deterministic init mimicking PyTorch's uniform(-1/sqrt(H), 1/sqrt(H))."""
    H = hidden_size
    k = 1.0 / jnp.sqrt(jnp.float32(H))
    keys = jax.random.split(key, 10)

    def u(kk, shape):
        return jax.random.uniform(kk, shape, jnp.float32, -k, k)

    return {
        "wih0": u(keys[0], (input_size, 4 * H)),
        "whh0": u(keys[1], (H, 4 * H)),
        "b0":   u(keys[2], (1, 4 * H)) + u(keys[3], (1, 4 * H)),  # b_ih + b_hh
        "wih1": u(keys[4], (H, 4 * H)),
        "whh1": u(keys[5], (H, 4 * H)),
        "b1":   u(keys[6], (1, 4 * H)) + u(keys[7], (1, 4 * H)),
        "wout": u(keys[8], (H, n_vocab)),
        "bout": u(keys[9], (1, n_vocab)),
    }


def char_model_reference(x, params, matmul_dtype=jnp.bfloat16):
    """Pure-JAX reference of the same eval-mode forward pass with the same
    precision policy as the kernel (bf16 matmul operands, f32 accumulation;
    f32 VPU path for the input projection when input_size == 1)."""
    B, T, I = x.shape
    H = params["whh0"].shape[0]
    f32 = jnp.float32
    in_dtype = f32 if I == 1 else matmul_dtype
    wih0 = params["wih0"].astype(in_dtype)
    whh0 = params["whh0"].astype(matmul_dtype)
    wih1 = params["wih1"].astype(matmul_dtype)
    whh1 = params["whh1"].astype(matmul_dtype)
    wout = params["wout"].astype(matmul_dtype)

    def split_gates(g):
        return (jax.nn.sigmoid(g[:, 0 * H:1 * H]), jax.nn.sigmoid(g[:, 1 * H:2 * H]),
                jnp.tanh(g[:, 2 * H:3 * H]), jax.nn.sigmoid(g[:, 3 * H:4 * H]))

    h0 = c0 = h1 = c1 = jnp.zeros((B, H), f32)
    for t in range(T):
        x_t = x[:, t, :].astype(in_dtype)
        xp = jnp.dot(x_t, wih0, preferred_element_type=f32) + params["b0"]
        g0 = xp + jnp.dot(h0.astype(matmul_dtype), whh0, preferred_element_type=f32)
        i0, f0, gg0, o0 = split_gates(g0)
        c0 = f0 * c0 + i0 * gg0
        h0 = o0 * jnp.tanh(c0)
        g1 = (jnp.dot(h0.astype(matmul_dtype), wih1, preferred_element_type=f32)
              + jnp.dot(h1.astype(matmul_dtype), whh1, preferred_element_type=f32)
              + params["b1"])
        i1, f1, gg1, o1 = split_gates(g1)
        c1 = f1 * c1 + i1 * gg1
        h1 = o1 * jnp.tanh(c1)
    return jnp.dot(h1.astype(matmul_dtype), wout,
                   preferred_element_type=f32) + params["bout"]


if __name__ == "__main__":
    # Small shapes consistent with CharModel(n_vocab=16, input_size=1, hidden_size=32)
    B, T, I, H, V = 2, 8, 1, 32, 16

    key = jax.random.PRNGKey(0)
    k_x, k_p = jax.random.split(key)
    x = jax.random.normal(k_x, (B, T, I), jnp.float32)  # batch_first input
    params = init_params(k_p, I, H, V)

    out = jax.block_until_ready(char_model_forward(x, params))
    ref = jax.block_until_ready(char_model_reference(x, params))

    assert out.shape == (B, V)
    max_err = float(jnp.max(jnp.abs(out - ref)))
    assert jnp.allclose(out, ref, atol=1e-3, rtol=1e-3), (
        f"mismatch vs JAX reference: max abs err = {max_err}")
    print("KERNEL_OK")
</pallas_src>

<mosaic_0001>
module attributes {stable_mosaic.version = 11 : i64} {
  func.func @_char_lstm_kernel(%arg0: i32, %arg1: i32, %arg2: memref<8x8x1xf32, #tpu.memory_space<vmem>>, %arg3: memref<1x512xf32, #tpu.memory_space<vmem>>, %arg4: memref<128x512xbf16, #tpu.memory_space<vmem>>, %arg5: memref<1x512xf32, #tpu.memory_space<vmem>>, %arg6: memref<256x512xbf16, #tpu.memory_space<vmem>>, %arg7: memref<1x512xf32, #tpu.memory_space<vmem>>, %arg8: memref<128x128xbf16, #tpu.memory_space<vmem>>, %arg9: memref<1x128xf32, #tpu.memory_space<vmem>>, %arg10: memref<8x128xf32, #tpu.memory_space<vmem>>, %arg11: memref<8x128xf32, #tpu.memory_space<vmem>>, %arg12: memref<8x128xf32, #tpu.memory_space<vmem>>, %arg13: memref<8x128xf32, #tpu.memory_space<vmem>>, %arg14: memref<8x128xf32, #tpu.memory_space<vmem>>) attributes {dimension_semantics = [#tpu.dimension_semantics<parallel>, #tpu.dimension_semantics<arbitrary>], iteration_bounds = array<i64: 1, 1>, scalar_prefetch = 0 : i64, scratch_operands = 4 : i64, tpu.core_type = #tpu.core_type<tc>, window_params = [{transform_indices = @transform_0, window_bounds = array<i64: 8, 8, 1>}, {pipeline_mode = #tpu.pipeline_mode<synchronous>, transform_indices = @transform_1, window_bounds = array<i64: 1, 512>}, {pipeline_mode = #tpu.pipeline_mode<synchronous>, transform_indices = @transform_2, window_bounds = array<i64: 128, 512>}, {pipeline_mode = #tpu.pipeline_mode<synchronous>, transform_indices = @transform_3, window_bounds = array<i64: 1, 512>}, {pipeline_mode = #tpu.pipeline_mode<synchronous>, transform_indices = @transform_4, window_bounds = array<i64: 256, 512>}, {pipeline_mode = #tpu.pipeline_mode<synchronous>, transform_indices = @transform_5, window_bounds = array<i64: 1, 512>}, {pipeline_mode = #tpu.pipeline_mode<synchronous>, transform_indices = @transform_6, window_bounds = array<i64: 128, 128>}, {pipeline_mode = #tpu.pipeline_mode<synchronous>, transform_indices = @transform_7, window_bounds = array<i64: 1, 128>}, {transform_indices = @transform_8, window_bounds = array<i64: 8, 128>}]} {
    %c0_i32 = arith.constant 0 : i32
    %0 = arith.cmpi eq, %arg1, %c0_i32 : i32
    %1 = arith.extui %0 : i1 to i32
    %c0_i32_0 = arith.constant 0 : i32
    %2 = arith.cmpi ne, %1, %c0_i32_0 : i32
    scf.if %2 {
      %cst_108 = arith.constant 0.000000e+00 : f32
      %521 = vector.broadcast %cst_108 : f32 to vector<8x128xf32>
      %c0_109 = arith.constant 0 : index
      %c0_110 = arith.constant 0 : index
      %522 = vector.load %arg11[%c0_109, %c0_110] : memref<8x128xf32, #tpu.memory_space<vmem>>, vector<8x128xf32>
      tpu.vector_store %arg11[%c0_109, %c0_110], %521 {strides = array<i32>} : memref<8x128xf32, #tpu.memory_space<vmem>>, vector<8x128xf32>,
      %cst_111 = arith.constant 0.000000e+00 : f32
      %523 = vector.broadcast %cst_111 : f32 to vector<8x128xf32>
      %c0_112 = arith.constant 0 : index
      %c0_113 = arith.constant 0 : index
      %524 = vector.load %arg12[%c0_112, %c0_113] : memref<8x128xf32, #tpu.memory_space<vmem>>, vector<8x128xf32>
      tpu.vector_store %arg12[%c0_112, %c0_113], %523 {strides = array<i32>} : memref<8x128xf32, #tpu.memory_space<vmem>>, vector<8x128xf32>,
      %cst_114 = arith.constant 0.000000e+00 : f32
      %525 = vector.broadcast %cst_114 : f32 to vector<8x128xf32>
      %c0_115 = arith.constant 0 : index
      %c0_116 = arith.constant 0 : index
      %526 = vector.load %arg13[%c0_115, %c0_116] : memref<8x128xf32, #tpu.memory_space<vmem>>, vector<8x128xf32>
      tpu.vector_store %arg13[%c0_115, %c0_116], %525 {strides = array<i32>} : memref<8x128xf32, #tpu.memory_space<vmem>>, vector<8x128xf32>,
      %cst_117 = arith.constant 0.000000e+00 : f32
      %527 = vector.broadcast %cst_117 : f32 to vector<8x128xf32>
      %c0_118 = arith.constant 0 : index
      %c0_119 = arith.constant 0 : index
      %528 = vector.load %arg14[%c0_118, %c0_119] : memref<8x128xf32, #tpu.memory_space<vmem>>, vector<8x128xf32>
      tpu.vector_store %arg14[%c0_118, %c0_119], %527 {strides = array<i32>} : memref<8x128xf32, #tpu.memory_space<vmem>>, vector<8x128xf32>,
    } else {
    }
    %c0 = arith.constant 0 : index
    %c0_1 = arith.constant 0 : index
    %3 = vector.load %arg4[%c0, %c0_1] : memref<128x512xbf16, #tpu.memory_space<vmem>>, vector<128x512xbf16>
    %c0_2 = arith.constant 0 : index
    %c0_3 = arith.constant 0 : index
    %4 = vector.load %arg6[%c0_2, %c0_3] : memref<256x512xbf16, #tpu.memory_space<vmem>>, vector<256x512xbf16>
    %c0_4 = arith.constant 0 : index
    %c0_5 = arith.constant 0 : index
    %5 = vector.load %arg5[%c0_4, %c0_5] : memref<1x512xf32, #tpu.memory_space<vmem>>, vector<1x512xf32>
    %6 = vector.shape_cast %5 : vector<1x512xf32> to vector<1x512xf32>
    %7 = vector.broadcast %6 : vector<1x512xf32> to vector<8x512xf32>
    %c0_6 = arith.constant 0 : index
    %c0_7 = arith.constant 0 : index
    %8 = vector.load %arg7[%c0_6, %c0_7] : memref<1x512xf32, #tpu.memory_space<vmem>>, vector<1x512xf32>
    %9 = vector.shape_cast %8 : vector<1x512xf32> to vector<1x512xf32>
    %10 = vector.broadcast %9 : vector<1x512xf32> to vector<8x512xf32>
    %c0_8 = arith.constant 0 : index
    %c0_9 = arith.constant 0 : index
    %11 = vector.load %arg3[%c0_8, %c0_9] : memref<1x512xf32, #tpu.memory_space<vmem>>, vector<1x512xf32>
    %12 = vector.shape_cast %11 : vector<1x512xf32> to vector<1x512xf32>
    %13 = vector.broadcast %12 : vector<1x512xf32> to vector<8x512xf32>
    %c0_10 = arith.constant 0 : index
    %c0_11 = arith.constant 0 : index
    %14 = vector.load %arg11[%c0_10, %c0_11] : memref<8x128xf32, #tpu.memory_space<vmem>>, vector<8x128xf32>
    %c0_12 = arith.constant 0 : index
    %c0_13 = arith.constant 0 : index
    %15 = vector.load %arg12[%c0_12, %c0_13] : memref<8x128xf32, #tpu.memory_space<vmem>>, vector<8x128xf32>
    %c0_14 = arith.constant 0 : index
    %c0_15 = arith.constant 0 : index
    %16 = vector.load %arg13[%c0_14, %c0_15] : memref<8x128xf32, #tpu.memory_space<vmem>>, vector<8x128xf32>
    %c0_16 = arith.constant 0 : index
    %c0_17 = arith.constant 0 : index
    %17 = vector.load %arg14[%c0_16, %c0_17] : memref<8x128xf32, #tpu.memory_space<vmem>>, vector<8x128xf32>
    %c0_18 = arith.constant 0 : index
    %c0_19 = arith.constant 0 : index
    %c0_20 = arith.constant 0 : index
    %18 = vector.load %arg2[%c0_18, %c0_19, %c0_20] : memref<8x8x1xf32, #tpu.memory_space<vmem>>, vector<1x8x1xf32>
    %19 = vector.shape_cast %18 : vector<1x8x1xf32> to vector<8x1xf32>
    %20 = vector.broadcast %19 : vector<8x1xf32> to vector<8x512xf32>
    %21 = arith.mulf %20, %13 : vector<8x512xf32>
    %22 = arith.addf %21, %7 : vector<8x512xf32>
    %23 = arith.truncf %14 : vector<8x128xf32> to vector<8x128xbf16>
    %cst = arith.constant dense<0.000000e+00> : vector<8x512xf32>
    %24 = tpu.matmul %23, %3, %cst {dimension_numbers = #tpu.dot_dimension_numbers<[1], [0], [0], [1], [0, 0, 1, 1], [], []>} : vector<8x128xbf16>, vector<128x512xbf16>, vector<8x512xf32> -> vector<8x512xf32>
    %25 = arith.addf %22, %24 : vector<8x512xf32>
    %26 = vector.extract_strided_slice %25 {offsets = [0, 0], sizes = [8, 128], strides = [1, 1]} : vector<8x512xf32> to vector<8x128xf32>
    %27 = arith.negf %26 : vector<8x128xf32>
    %28 = math.exp %27 : vector<8x128xf32>
    %cst_21 = arith.constant 1.000000e+00 : f32
    %29 = vector.broadcast %cst_21 : f32 to vector<8x128xf32>
    %30 = arith.addf %29, %28 : vector<8x128xf32>
    %31 = arith.divf %29, %30 : vector<8x128xf32>
    %32 = vector.extract_strided_slice %25 {offsets = [0, 128], sizes = [8, 128], strides = [1, 1]} : vector<8x512xf32> to vector<8x128xf32>
    %33 = arith.negf %32 : vector<8x128xf32>
    %34 = math.exp %33 : vector<8x128xf32>
    %cst_22 = arith.constant 1.000000e+00 : f32
    %35 = vector.broadcast %cst_22 : f32 to vector<8x128xf32>
    %36 = arith.addf %35, %34 : vector<8x128xf32>
    %37 = arith.divf %35, %36 : vector<8x128xf32>
    %38 = vector.extract_strided_slice %25 {offsets = [0, 256], sizes = [8, 128], strides = [1, 1]} : vector<8x512xf32> to vector<8x128xf32>
    %39 = math.tanh %38 : vector<8x128xf32>
    %40 = vector.extract_strided_slice %25 {offsets = [0, 384], sizes = [8, 128], strides = [1, 1]} : vector<8x512xf32> to vector<8x128xf32>
    %41 = arith.negf %40 : vector<8x128xf32>
    %42 = math.exp %41 : vector<8x128xf32>
    %cst_23 = arith.constant 1.000000e+00 : f32
    %43 = vector.broadcast %cst_23 : f32 to vector<8x128xf32>
    %44 = arith.addf %43, %42 : vector<8x128xf32>
    %45 = arith.divf %43, %44 : vector<8x128xf32>
    %46 = arith.mulf %37, %15 : vector<8x128xf32>
    %47 = arith.mulf %31, %39 : vector<8x128xf32>
    %48 = arith.addf %46, %47 : vector<8x128xf32>
    %49 = math.tanh %48 : vector<8x128xf32>
    %50 = arith.mulf %45, %49 : vector<8x128xf32>
    %51 = tpu.concatenate %50, %16 in 1 : vector<8x128xf32>, vector<8x128xf32> -> vector<8x256xf32>
    %52 = arith.truncf %51 : vector<8x256xf32> to vector<8x256xbf16>
    %cst_24 = arith.constant dense<0.000000e+00> : vector<8x512xf32>
    %53 = tpu.matmul %52, %4, %cst_24 {dimension_numbers = #tpu.dot_dimension_numbers<[1], [0], [0], [1], [0, 0, 1, 1], [], []>} : vector<8x256xbf16>, vector<256x512xbf16>, vector<8x512xf32> -> vector<8x512xf32>
    %54 = arith.addf %53, %10 : vector<8x512xf32>
    %55 = vector.extract_strided_slice %54 {offsets = [0, 0], sizes = [8, 128], strides = [1, 1]} : vector<8x512xf32> to vector<8x128xf32>
    %56 = arith.negf %55 : vector<8x128xf32>
    %57 = math.exp %56 : vector<8x128xf32>
    %cst_25 = arith.constant 1.000000e+00 : f32
    %58 = vector.broadcast %cst_25 : f32 to vector<8x128xf32>
    %59 = arith.addf %58, %57 : vector<8x128xf32>
    %60 = arith.divf %58, %59 : vector<8x128xf32>
    %61 = vector.extract_strided_slice %54 {offsets = [0, 128], sizes = [8, 128], strides = [1, 1]} : vector<8x512xf32> to vector<8x128xf32>
    %62 = arith.negf %61 : vector<8x128xf32>
    %63 = math.exp %62 : vector<8x128xf32>
    %cst_26 = arith.constant 1.000000e+00 : f32
    %64 = vector.broadcast %cst_26 : f32 to vector<8x128xf32>
    %65 = arith.addf %64, %63 : vector<8x128xf32>
    %66 = arith.divf %64, %65 : vector<8x128xf32>
    %67 = vector.extract_strided_slice %54 {offsets = [0, 256], sizes = [8, 128], strides = [1, 1]} : vector<8x512xf32> to vector<8x128xf32>
    %68 = math.tanh %67 : vector<8x128xf32>
    %69 = vector.extract_strided_slice %54 {offsets = [0, 384], sizes = [8, 128], strides = [1, 1]} : vector<8x512xf32> to vector<8x128xf32>
    %70 = arith.negf %69 : vector<8x128xf32>
    %71 = math.exp %70 : vector<8x128xf32>
    %cst_27 = arith.constant 1.000000e+00 : f32
    %72 = vector.broadcast %cst_27 : f32 to vector<8x128xf32>
    %73 = arith.addf %72, %71 : vector<8x128xf32>
    %74 = arith.divf %72, %73 : vector<8x128xf32>
    %75 = arith.mulf %66, %17 : vector<8x128xf32>
    %76 = arith.mulf %60, %68 : vector<8x128xf32>
    %77 = arith.addf %75, %76 : vector<8x128xf32>
    %78 = math.tanh %77 : vector<8x128xf32>
    %79 = arith.mulf %74, %78 : vector<8x128xf32>
    %c1 = arith.constant 1 : index
    %c0_28 = arith.constant 0 : index
    %c0_29 = arith.constant 0 : index
    %80 = vector.load %arg2[%c1, %c0_28, %c0_29] : memref<8x8x1xf32, #tpu.memory_space<vmem>>, vector<1x8x1xf32>
    %81 = vector.shape_cast %80 : vector<1x8x1xf32> to vector<8x1xf32>
    %82 = vector.broadcast %81 : vector<8x1xf32> to vector<8x512xf32>
    %83 = arith.mulf %82, %13 : vector<8x512xf32>
    %84 = arith.addf %83, %7 : vector<8x512xf32>
    %85 = arith.truncf %50 : vector<8x128xf32> to vector<8x128xbf16>
    %cst_30 = arith.constant dense<0.000000e+00> : vector<8x512xf32>
    %86 = tpu.matmul %85, %3, %cst_30 {dimension_numbers = #tpu.dot_dimension_numbers<[1], [0], [0], [1], [0, 0, 1, 1], [], []>} : vector<8x128xbf16>, vector<128x512xbf16>, vector<8x512xf32> -> vector<8x512xf32>
    %87 = arith.addf %84, %86 : vector<8x512xf32>
    %88 = vector.extract_strided_slice %87 {offsets = [0, 0], sizes = [8, 128], strides = [1, 1]} : vector<8x512xf32> to vector<8x128xf32>
    %89 = arith.negf %88 : vector<8x128xf32>
    %90 = math.exp %89 : vector<8x128xf32>
    %cst_31 = arith.constant 1.000000e+00 : f32
    %91 = vector.broadcast %cst_31 : f32 to vector<8x128xf32>
    %92 = arith.addf %91, %90 : vector<8x128xf32>
    %93 = arith.divf %91, %92 : vector<8x128xf32>
    %94 = vector.extract_strided_slice %87 {offsets = [0, 128], sizes = [8, 128], strides = [1, 1]} : vector<8x512xf32> to vector<8x128xf32>
    %95 = arith.negf %94 : vector<8x128xf32>
    %96 = math.exp %95 : vector<8x128xf32>
    %cst_32 = arith.constant 1.000000e+00 : f32
    %97 = vector.broadcast %cst_32 : f32 to vector<8x128xf32>
    %98 = arith.addf %97, %96 : vector<8x128xf32>
    %99 = arith.divf %97, %98 : vector<8x128xf32>
    %100 = vector.extract_strided_slice %87 {offsets = [0, 256], sizes = [8, 128], strides = [1, 1]} : vector<8x512xf32> to vector<8x128xf32>
    %101 = math.tanh %100 : vector<8x128xf32>
    %102 = vector.extract_strided_slice %87 {offsets = [0, 384], sizes = [8, 128], strides = [1, 1]} : vector<8x512xf32> to vector<8x128xf32>
    %103 = arith.negf %102 : vector<8x128xf32>
    %104 = math.exp %103 : vector<8x128xf32>
    %cst_33 = arith.constant 1.000000e+00 : f32
    %105 = vector.broadcast %cst_33 : f32 to vector<8x128xf32>
    %106 = arith.addf %105, %104 : vector<8x128xf32>
    %107 = arith.divf %105, %106 : vector<8x128xf32>
    %108 = arith.mulf %99, %48 : vector<8x128xf32>
    %109 = arith.mulf %93, %101 : vector<8x128xf32>
    %110 = arith.addf %108, %109 : vector<8x128xf32>
    %111 = math.tanh %110 : vector<8x128xf32>
    %112 = arith.mulf %107, %111 : vector<8x128xf32>
    %113 = tpu.concatenate %112, %79 in 1 : vector<8x128xf32>, vector<8x128xf32> -> vector<8x256xf32>
    %114 = arith.truncf %113 : vector<8x256xf32> to vector<8x256xbf16>
    %cst_34 = arith.constant dense<0.000000e+00> : vector<8x512xf32>
    %115 = tpu.matmul %114, %4, %cst_34 {dimension_numbers = #tpu.dot_dimension_numbers<[1], [0], [0], [1], [0, 0, 1, 1], [], []>} : vector<8x256xbf16>, vector<256x512xbf16>, vector<8x512xf32> -> vector<8x512xf32>
    %116 = arith.addf %115, %10 : vector<8x512xf32>
    %117 = vector.extract_strided_slice %116 {offsets = [0, 0], sizes = [8, 128], strides = [1, 1]} : vector<8x512xf32> to vector<8x128xf32>
    %118 = arith.negf %117 : vector<8x128xf32>
    %119 = math.exp %118 : vector<8x128xf32>
    %cst_35 = arith.constant 1.000000e+00 : f32
    %120 = vector.broadcast %cst_35 : f32 to vector<8x128xf32>
    %121 = arith.addf %120, %119 : vector<8x128xf32>
    %122 = arith.divf %120, %121 : vector<8x128xf32>
    %123 = vector.extract_strided_slice %116 {offsets = [0, 128], sizes = [8, 128], strides = [1, 1]} : vector<8x512xf32> to vector<8x128xf32>
    %124 = arith.negf %123 : vector<8x128xf32>
    %125 = math.exp %124 : vector<8x128xf32>
    %cst_36 = arith.constant 1.000000e+00 : f32
    %126 = vector.broadcast %cst_36 : f32 to vector<8x128xf32>
    %127 = arith.addf %126, %125 : vector<8x128xf32>
    %128 = arith.divf %126, %127 : vector<8x128xf32>
    %129 = vector.extract_strided_slice %116 {offsets = [0, 256], sizes = [8, 128], strides = [1, 1]} : vector<8x512xf32> to vector<8x128xf32>
    %130 = math.tanh %129 : vector<8x128xf32>
    %131 = vector.extract_strided_slice %116 {offsets = [0, 384], sizes = [8, 128], strides = [1, 1]} : vector<8x512xf32> to vector<8x128xf32>
    %132 = arith.negf %131 : vector<8x128xf32>
    %133 = math.exp %132 : vector<8x128xf32>
    %cst_37 = arith.constant 1.000000e+00 : f32
    %134 = vector.broadcast %cst_37 : f32 to vector<8x128xf32>
    %135 = arith.addf %134, %133 : vector<8x128xf32>
    %136 = arith.divf %134, %135 : vector<8x128xf32>
    %137 = arith.mulf %128, %77 : vector<8x128xf32>
    %138 = arith.mulf %122, %130 : vector<8x128xf32>
    %139 = arith.addf %137, %138 : vector<8x128xf32>
    %140 = math.tanh %139 : vector<8x128xf32>
    %141 = arith.mulf %136, %140 : vector<8x128xf32>
    %c2 = arith.constant 2 : index
    %c0_38 = arith.constant 0 : index
    %c0_39 = arith.constant 0 : index
    %142 = vector.load %arg2[%c2, %c0_38, %c0_39] : memref<8x8x1xf32, #tpu.memory_space<vmem>>, vector<1x8x1xf32>
    %143 = vector.shape_cast %142 : vector<1x8x1xf32> to vector<8x1xf32>
    %144 = vector.broadcast %143 : vector<8x1xf32> to vector<8x512xf32>
    %145 = arith.mulf %144, %13 : vector<8x512xf32>
    %146 = arith.addf %145, %7 : vector<8x512xf32>
    %147 = arith.truncf %112 : vector<8x128xf32> to vector<8x128xbf16>
    %cst_40 = arith.constant dense<0.000000e+00> : vector<8x512xf32>
    %148 = tpu.matmul %147, %3, %cst_40 {dimension_numbers = #tpu.dot_dimension_numbers<[1], [0], [0], [1], [0, 0, 1, 1], [], []>} : vector<8x128xbf16>, vector<128x512xbf16>, vector<8x512xf32> -> vector<8x512xf32>
    %149 = arith.addf %146, %148 : vector<8x512xf32>
    %150 = vector.extract_strided_slice %149 {offsets = [0, 0], sizes = [8, 128], strides = [1, 1]} : vector<8x512xf32> to vector<8x128xf32>
    %151 = arith.negf %150 : vector<8x128xf32>
    %152 = math.exp %151 : vector<8x128xf32>
    %cst_41 = arith.constant 1.000000e+00 : f32
    %153 = vector.broadcast %cst_41 : f32 to vector<8x128xf32>
    %154 = arith.addf %153, %152 : vector<8x128xf32>
    %155 = arith.divf %153, %154 : vector<8x128xf32>
    %156 = vector.extract_strided_slice %149 {offsets = [0, 128], sizes = [8, 128], strides = [1, 1]} : vector<8x512xf32> to vector<8x128xf32>
    %157 = arith.negf %156 : vector<8x128xf32>
    %158 = math.exp %157 : vector<8x128xf32>
    %cst_42 = arith.constant 1.000000e+00 : f32
    %159 = vector.broadcast %cst_42 : f32 to vector<8x128xf32>
    %160 = arith.addf %159, %158 : vector<8x128xf32>
    %161 = arith.divf %159, %160 : vector<8x128xf32>
    %162 = vector.extract_strided_slice %149 {offsets = [0, 256], sizes = [8, 128], strides = [1, 1]} : vector<8x512xf32> to vector<8x128xf32>
    %163 = math.tanh %162 : vector<8x128xf32>
    %164 = vector.extract_strided_slice %149 {offsets = [0, 384], sizes = [8, 128], strides = [1, 1]} : vector<8x512xf32> to vector<8x128xf32>
    %165 = arith.negf %164 : vector<8x128xf32>
    %166 = math.exp %165 : vector<8x128xf32>
    %cst_43 = arith.constant 1.000000e+00 : f32
    %167 = vector.broadcast %cst_43 : f32 to vector<8x128xf32>
    %168 = arith.addf %167, %166 : vector<8x128xf32>
    %169 = arith.divf %167, %168 : vector<8x128xf32>
    %170 = arith.mulf %161, %110 : vector<8x128xf32>
    %171 = arith.mulf %155, %163 : vector<8x128xf32>
    %172 = arith.addf %170, %171 : vector<8x128xf32>
    %173 = math.tanh %172 : vector<8x128xf32>
    %174 = arith.mulf %169, %173 : vector<8x128xf32>
    %175 = tpu.concatenate %174, %141 in 1 : vector<8x128xf32>, vector<8x128xf32> -> vector<8x256xf32>
    %176 = arith.truncf %175 : vector<8x256xf32> to vector<8x256xbf16>
    %cst_44 = arith.constant dense<0.000000e+00> : vector<8x512xf32>
    %177 = tpu.matmul %176, %4, %cst_44 {dimension_numbers = #tpu.dot_dimension_numbers<[1], [0], [0], [1], [0, 0, 1, 1], [], []>} : vector<8x256xbf16>, vector<256x512xbf16>, vector<8x512xf32> -> vector<8x512xf32>
    %178 = arith.addf %177, %10 : vector<8x512xf32>
    %179 = vector.extract_strided_slice %178 {offsets = [0, 0], sizes = [8, 128], strides = [1, 1]} : vector<8x512xf32> to vector<8x128xf32>
    %180 = arith.negf %179 : vector<8x128xf32>
    %181 = math.exp %180 : vector<8x128xf32>
    %cst_45 = arith.constant 1.000000e+00 : f32
    %182 = vector.broadcast %cst_45 : f32 to vector<8x128xf32>
    %183 = arith.addf %182, %181 : vector<8x128xf32>
    %184 = arith.divf %182, %183 : vector<8x128xf32>
    %185 = vector.extract_strided_slice %178 {offsets = [0, 128], sizes = [8, 128], strides = [1, 1]} : vector<8x512xf32> to vector<8x128xf32>
    %186 = arith.negf %185 : vector<8x128xf32>
    %187 = math.exp %186 : vector<8x128xf32>
    %cst_46 = arith.constant 1.000000e+00 : f32
    %188 = vector.broadcast %cst_46 : f32 to vector<8x128xf32>
    %189 = arith.addf %188, %187 : vector<8x128xf32>
    %190 = arith.divf %188, %189 : vector<8x128xf32>
    %191 = vector.extract_strided_slice %178 {offsets = [0, 256], sizes = [8, 128], strides = [1, 1]} : vector<8x512xf32> to vector<8x128xf32>
    %192 = math.tanh %191 : vector<8x128xf32>
    %193 = vector.extract_strided_slice %178 {offsets = [0, 384], sizes = [8, 128], strides = [1, 1]} : vector<8x512xf32> to vector<8x128xf32>
    %194 = arith.negf %193 : vector<8x128xf32>
    %195 = math.exp %194 : vector<8x128xf32>
    %cst_47 = arith.constant 1.000000e+00 : f32
    %196 = vector.broadcast %cst_47 : f32 to vector<8x128xf32>
    %197 = arith.addf %196, %195 : vector<8x128xf32>
    %198 = arith.divf %196, %197 : vector<8x128xf32>
    %199 = arith.mulf %190, %139 : vector<8x128xf32>
    %200 = arith.mulf %184, %192 : vector<8x128xf32>
    %201 = arith.addf %199, %200 : vector<8x128xf32>
    %202 = math.tanh %201 : vector<8x128xf32>
    %203 = arith.mulf %198, %202 : vector<8x128xf32>
    %c3 = arith.constant 3 : index
    %c0_48 = arith.constant 0 : index
    %c0_49 = arith.constant 0 : index
    %204 = vector.load %arg2[%c3, %c0_48, %c0_49] : memref<8x8x1xf32, #tpu.memory_space<vmem>>, vector<1x8x1xf32>
    %205 = vector.shape_cast %204 : vector<1x8x1xf32> to vector<8x1xf32>
    %206 = vector.broadcast %205 : vector<8x1xf32> to vector<8x512xf32>
    %207 = arith.mulf %206, %13 : vector<8x512xf32>
    %208 = arith.addf %207, %7 : vector<8x512xf32>
    %209 = arith.truncf %174 : vector<8x128xf32> to vector<8x128xbf16>
    %cst_50 = arith.constant dense<0.000000e+00> : vector<8x512xf32>
    %210 = tpu.matmul %209, %3, %cst_50 {dimension_numbers = #tpu.dot_dimension_numbers<[1], [0], [0], [1], [0, 0, 1, 1], [], []>} : vector<8x128xbf16>, vector<128x512xbf16>, vector<8x512xf32> -> vector<8x512xf32>
    %211 = arith.addf %208, %210 : vector<8x512xf32>
    %212 = vector.extract_strided_slice %211 {offsets = [0, 0], sizes = [8, 128], strides = [1, 1]} : vector<8x512xf32> to vector<8x128xf32>
    %213 = arith.negf %212 : vector<8x128xf32>
    %214 = math.exp %213 : vector<8x128xf32>
    %cst_51 = arith.constant 1.000000e+00 : f32
    %215 = vector.broadcast %cst_51 : f32 to vector<8x128xf32>
    %216 = arith.addf %215, %214 : vector<8x128xf32>
    %217 = arith.divf %215, %216 : vector<8x128xf32>
    %218 = vector.extract_strided_slice %211 {offsets = [0, 128], sizes = [8, 128], strides = [1, 1]} : vector<8x512xf32> to vector<8x128xf32>
    %219 = arith.negf %218 : vector<8x128xf32>
    %220 = math.exp %219 : vector<8x128xf32>
    %cst_52 = arith.constant 1.000000e+00 : f32
    %221 = vector.broadcast %cst_52 : f32 to vector<8x128xf32>
    %222 = arith.addf %221, %220 : vector<8x128xf32>
    %223 = arith.divf %221, %222 : vector<8x128xf32>
    %224 = vector.extract_strided_slice %211 {offsets = [0, 256], sizes = [8, 128], strides = [1, 1]} : vector<8x512xf32> to vector<8x128xf32>
    %225 = math.tanh %224 : vector<8x128xf32>
    %226 = vector.extract_strided_slice %211 {offsets = [0, 384], sizes = [8, 128], strides = [1, 1]} : vector<8x512xf32> to vector<8x128xf32>
    %227 = arith.negf %226 : vector<8x128xf32>
    %228 = math.exp %227 : vector<8x128xf32>
    %cst_53 = arith.constant 1.000000e+00 : f32
    %229 = vector.broadcast %cst_53 : f32 to vector<8x128xf32>
    %230 = arith.addf %229, %228 : vector<8x128xf32>
    %231 = arith.divf %229, %230 : vector<8x128xf32>
    %232 = arith.mulf %223, %172 : vector<8x128xf32>
    %233 = arith.mulf %217, %225 : vector<8x128xf32>
    %234 = arith.addf %232, %233 : vector<8x128xf32>
    %235 = math.tanh %234 : vector<8x128xf32>
    %236 = arith.mulf %231, %235 : vector<8x128xf32>
    %237 = tpu.concatenate %236, %203 in 1 : vector<8x128xf32>, vector<8x128xf32> -> vector<8x256xf32>
    %238 = arith.truncf %237 : vector<8x256xf32> to vector<8x256xbf16>
    %cst_54 = arith.constant dense<0.000000e+00> : vector<8x512xf32>
    %239 = tpu.matmul %238, %4, %cst_54 {dimension_numbers = #tpu.dot_dimension_numbers<[1], [0], [0], [1], [0, 0, 1, 1], [], []>} : vector<8x256xbf16>, vector<256x512xbf16>, vector<8x512xf32> -> vector<8x512xf32>
    %240 = arith.addf %239, %10 : vector<8x512xf32>
    %241 = vector.extract_strided_slice %240 {offsets = [0, 0], sizes = [8, 128], strides = [1, 1]} : vector<8x512xf32> to vector<8x128xf32>
    %242 = arith.negf %241 : vector<8x128xf32>
    %243 = math.exp %242 : vector<8x128xf32>
    %cst_55 = arith.constant 1.000000e+00 : f32
    %244 = vector.broadcast %cst_55 : f32 to vector<8x128xf32>
    %245 = arith.addf %244, %243 : vector<8x128xf32>
    %246 = arith.divf %244, %245 : vector<8x128xf32>
    %247 = vector.extract_strided_slice %240 {offsets = [0, 128], sizes = [8, 128], strides = [1, 1]} : vector<8x512xf32> to vector<8x128xf32>
    %248 = arith.negf %247 : vector<8x128xf32>
    %249 = math.exp %248 : vector<8x128xf32>
    %cst_56 = arith.constant 1.000000e+00 : f32
    %250 = vector.broadcast %cst_56 : f32 to vector<8x128xf32>
    %251 = arith.addf %250, %249 : vector<8x128xf32>
    %252 = arith.divf %250, %251 : vector<8x128xf32>
    %253 = vector.extract_strided_slice %240 {offsets = [0, 256], sizes = [8, 128], strides = [1, 1]} : vector<8x512xf32> to vector<8x128xf32>
    %254 = math.tanh %253 : vector<8x128xf32>
    %255 = vector.extract_strided_slice %240 {offsets = [0, 384], sizes = [8, 128], strides = [1, 1]} : vector<8x512xf32> to vector<8x128xf32>
    %256 = arith.negf %255 : vector<8x128xf32>
    %257 = math.exp %256 : vector<8x128xf32>
    %cst_57 = arith.constant 1.000000e+00 : f32
    %258 = vector.broadcast %cst_57 : f32 to vector<8x128xf32>
    %259 = arith.addf %258, %257 : vector<8x128xf32>
    %260 = arith.divf %258, %259 : vector<8x128xf32>
    %261 = arith.mulf %252, %201 : vector<8x128xf32>
    %262 = arith.mulf %246, %254 : vector<8x128xf32>
    %263 = arith.addf %261, %262 : vector<8x128xf32>
    %264 = math.tanh %263 : vector<8x128xf32>
    %265 = arith.mulf %260, %264 : vector<8x128xf32>
    %c4 = arith.constant 4 : index
    %c0_58 = arith.constant 0 : index
    %c0_59 = arith.constant 0 : index
    %266 = vector.load %arg2[%c4, %c0_58, %c0_59] : memref<8x8x1xf32, #tpu.memory_space<vmem>>, vector<1x8x1xf32>
    %267 = vector.shape_cast %266 : vector<1x8x1xf32> to vector<8x1xf32>
    %268 = vector.broadcast %267 : vector<8x1xf32> to vector<8x512xf32>
    %269 = arith.mulf %268, %13 : vector<8x512xf32>
    %270 = arith.addf %269, %7 : vector<8x512xf32>
    %271 = arith.truncf %236 : vector<8x128xf32> to vector<8x128xbf16>
    %cst_60 = arith.constant dense<0.000000e+00> : vector<8x512xf32>
    %272 = tpu.matmul %271, %3, %cst_60 {dimension_numbers = #tpu.dot_dimension_numbers<[1], [0], [0], [1], [0, 0, 1, 1], [], []>} : vector<8x128xbf16>, vector<128x512xbf16>, vector<8x512xf32> -> vector<8x512xf32>
    %273 = arith.addf %270, %272 : vector<8x512xf32>
    %274 = vector.extract_strided_slice %273 {offsets = [0, 0], sizes = [8, 128], strides = [1, 1]} : vector<8x512xf32> to vector<8x128xf32>
    %275 = arith.negf %274 : vector<8x128xf32>
    %276 = math.exp %275 : vector<8x128xf32>
    %cst_61 = arith.constant 1.000000e+00 : f32
    %277 = vector.broadcast %cst_61 : f32 to vector<8x128xf32>
    %278 = arith.addf %277, %276 : vector<8x128xf32>
    %279 = arith.divf %277, %278 : vector<8x128xf32>
    %280 = vector.extract_strided_slice %273 {offsets = [0, 128], sizes = [8, 128], strides = [1, 1]} : vector<8x512xf32> to vector<8x128xf32>
    %281 = arith.negf %280 : vector<8x128xf32>
    %282 = math.exp %281 : vector<8x128xf32>
    %cst_62 = arith.constant 1.000000e+00 : f32
    %283 = vector.broadcast %cst_62 : f32 to vector<8x128xf32>
    %284 = arith.addf %283, %282 : vector<8x128xf32>
    %285 = arith.divf %283, %284 : vector<8x128xf32>
    %286 = vector.extract_strided_slice %273 {offsets = [0, 256], sizes = [8, 128], strides = [1, 1]} : vector<8x512xf32> to vector<8x128xf32>
    %287 = math.tanh %286 : vector<8x128xf32>
    %288 = vector.extract_strided_slice %273 {offsets = [0, 384], sizes = [8, 128], strides = [1, 1]} : vector<8x512xf32> to vector<8x128xf32>
    %289 = arith.negf %288 : vector<8x128xf32>
    %290 = math.exp %289 : vector<8x128xf32>
    %cst_63 = arith.constant 1.000000e+00 : f32
    %291 = vector.broadcast %cst_63 : f32 to vector<8x128xf32>
    %292 = arith.addf %291, %290 : vector<8x128xf32>
    %293 = arith.divf %291, %292 : vector<8x128xf32>
    %294 = arith.mulf %285, %234 : vector<8x128xf32>
    %295 = arith.mulf %279, %287 : vector<8x128xf32>
    %296 = arith.addf %294, %295 : vector<8x128xf32>
    %297 = math.tanh %296 : vector<8x128xf32>
    %298 = arith.mulf %293, %297 : vector<8x128xf32>
    %299 = tpu.concatenate %298, %265 in 1 : vector<8x128xf32>, vector<8x128xf32> -> vector<8x256xf32>
    %300 = arith.truncf %299 : vector<8x256xf32> to vector<8x256xbf16>
    %cst_64 = arith.constant dense<0.000000e+00> : vector<8x512xf32>
    %301 = tpu.matmul %300, %4, %cst_64 {dimension_numbers = #tpu.dot_dimension_numbers<[1], [0], [0], [1], [0, 0, 1, 1], [], []>} : vector<8x256xbf16>, vector<256x512xbf16>, vector<8x512xf32> -> vector<8x512xf32>
    %302 = arith.addf %301, %10 : vector<8x512xf32>
    %303 = vector.extract_strided_slice %302 {offsets = [0, 0], sizes = [8, 128], strides = [1, 1]} : vector<8x512xf32> to vector<8x128xf32>
    %304 = arith.negf %303 : vector<8x128xf32>
    %305 = math.exp %304 : vector<8x128xf32>
    %cst_65 = arith.constant 1.000000e+00 : f32
    %306 = vector.broadcast %cst_65 : f32 to vector<8x128xf32>
    %307 = arith.addf %306, %305 : vector<8x128xf32>
    %308 = arith.divf %306, %307 : vector<8x128xf32>
    %309 = vector.extract_strided_slice %302 {offsets = [0, 128], sizes = [8, 128], strides = [1, 1]} : vector<8x512xf32> to vector<8x128xf32>
    %310 = arith.negf %309 : vector<8x128xf32>
    %311 = math.exp %310 : vector<8x128xf32>
    %cst_66 = arith.constant 1.000000e+00 : f32
    %312 = vector.broadcast %cst_66 : f32 to vector<8x128xf32>
    %313 = arith.addf %312, %311 : vector<8x128xf32>
    %314 = arith.divf %312, %313 : vector<8x128xf32>
    %315 = vector.extract_strided_slice %302 {offsets = [0, 256], sizes = [8, 128], strides = [1, 1]} : vector<8x512xf32> to vector<8x128xf32>
    %316 = math.tanh %315 : vector<8x128xf32>
    %317 = vector.extract_strided_slice %302 {offsets = [0, 384], sizes = [8, 128], strides = [1, 1]} : vector<8x512xf32> to vector<8x128xf32>
    %318 = arith.negf %317 : vector<8x128xf32>
    %319 = math.exp %318 : vector<8x128xf32>
    %cst_67 = arith.constant 1.000000e+00 : f32
    %320 = vector.broadcast %cst_67 : f32 to vector<8x128xf32>
    %321 = arith.addf %320, %319 : vector<8x128xf32>
    %322 = arith.divf %320, %321 : vector<8x128xf32>
    %323 = arith.mulf %314, %263 : vector<8x128xf32>
    %324 = arith.mulf %308, %316 : vector<8x128xf32>
    %325 = arith.addf %323, %324 : vector<8x128xf32>
    %326 = math.tanh %325 : vector<8x128xf32>
    %327 = arith.mulf %322, %326 : vector<8x128xf32>
    %c5 = arith.constant 5 : index
    %c0_68 = arith.constant 0 : index
    %c0_69 = arith.constant 0 : index
    %328 = vector.load %arg2[%c5, %c0_68, %c0_69] : memref<8x8x1xf32, #tpu.memory_space<vmem>>, vector<1x8x1xf32>
    %329 = vector.shape_cast %328 : vector<1x8x1xf32> to vector<8x1xf32>
    %330 = vector.broadcast %329 : vector<8x1xf32> to vector<8x512xf32>
    %331 = arith.mulf %330, %13 : vector<8x512xf32>
    %332 = arith.addf %331, %7 : vector<8x512xf32>
    %333 = arith.truncf %298 : vector<8x128xf32> to vector<8x128xbf16>
    %cst_70 = arith.constant dense<0.000000e+00> : vector<8x512xf32>
    %334 = tpu.matmul %333, %3, %cst_70 {dimension_numbers = #tpu.dot_dimension_numbers<[1], [0], [0], [1], [0, 0, 1, 1], [], []>} : vector<8x128xbf16>, vector<128x512xbf16>, vector<8x512xf32> -> vector<8x512xf32>
    %335 = arith.addf %332, %334 : vector<8x512xf32>
    %336 = vector.extract_strided_slice %335 {offsets = [0, 0], sizes = [8, 128], strides = [1, 1]} : vector<8x512xf32> to vector<8x128xf32>
    %337 = arith.negf %336 : vector<8x128xf32>
    %338 = math.exp %337 : vector<8x128xf32>
    %cst_71 = arith.constant 1.000000e+00 : f32
    %339 = vector.broadcast %cst_71 : f32 to vector<8x128xf32>
    %340 = arith.addf %339, %338 : vector<8x128xf32>
    %341 = arith.divf %339, %340 : vector<8x128xf32>
    %342 = vector.extract_strided_slice %335 {offsets = [0, 128], sizes = [8, 128], strides = [1, 1]} : vector<8x512xf32> to vector<8x128xf32>
    %343 = arith.negf %342 : vector<8x128xf32>
    %344 = math.exp %343 : vector<8x128xf32>
    %cst_72 = arith.constant 1.000000e+00 : f32
    %345 = vector.broadcast %cst_72 : f32 to vector<8x128xf32>
    %346 = arith.addf %345, %344 : vector<8x128xf32>
    %347 = arith.divf %345, %346 : vector<8x128xf32>
    %348 = vector.extract_strided_slice %335 {offsets = [0, 256], sizes = [8, 128], strides = [1, 1]} : vector<8x512xf32> to vector<8x128xf32>
    %349 = math.tanh %348 : vector<8x128xf32>
    %350 = vector.extract_strided_slice %335 {offsets = [0, 384], sizes = [8, 128], strides = [1, 1]} : vector<8x512xf32> to vector<8x128xf32>
    %351 = arith.negf %350 : vector<8x128xf32>
    %352 = math.exp %351 : vector<8x128xf32>
    %cst_73 = arith.constant 1.000000e+00 : f32
    %353 = vector.broadcast %cst_73 : f32 to vector<8x128xf32>
    %354 = arith.addf %353, %352 : vector<8x128xf32>
    %355 = arith.divf %353, %354 : vector<8x128xf32>
    %356 = arith.mulf %347, %296 : vector<8x128xf32>
    %357 = arith.mulf %341, %349 : vector<8x128xf32>
    %358 = arith.addf %356, %357 : vector<8x128xf32>
    %359 = math.tanh %358 : vector<8x128xf32>
    %360 = arith.mulf %355, %359 : vector<8x128xf32>
    %361 = tpu.concatenate %360, %327 in 1 : vector<8x128xf32>, vector<8x128xf32> -> vector<8x256xf32>
    %362 = arith.truncf %361 : vector<8x256xf32> to vector<8x256xbf16>
    %cst_74 = arith.constant dense<0.000000e+00> : vector<8x512xf32>
    %363 = tpu.matmul %362, %4, %cst_74 {dimension_numbers = #tpu.dot_dimension_numbers<[1], [0], [0], [1], [0, 0, 1, 1], [], []>} : vector<8x256xbf16>, vector<256x512xbf16>, vector<8x512xf32> -> vector<8x512xf32>
    %364 = arith.addf %363, %10 : vector<8x512xf32>
    %365 = vector.extract_strided_slice %364 {offsets = [0, 0], sizes = [8, 128], strides = [1, 1]} : vector<8x512xf32> to vector<8x128xf32>
    %366 = arith.negf %365 : vector<8x128xf32>
    %367 = math.exp %366 : vector<8x128xf32>
    %cst_75 = arith.constant 1.000000e+00 : f32
    %368 = vector.broadcast %cst_75 : f32 to vector<8x128xf32>
    %369 = arith.addf %368, %367 : vector<8x128xf32>
    %370 = arith.divf %368, %369 : vector<8x128xf32>
    %371 = vector.extract_strided_slice %364 {offsets = [0, 128], sizes = [8, 128], strides = [1, 1]} : vector<8x512xf32> to vector<8x128xf32>
    %372 = arith.negf %371 : vector<8x128xf32>
    %373 = math.exp %372 : vector<8x128xf32>
    %cst_76 = arith.constant 1.000000e+00 : f32
    %374 = vector.broadcast %cst_76 : f32 to vector<8x128xf32>
    %375 = arith.addf %374, %373 : vector<8x128xf32>
    %376 = arith.divf %374, %375 : vector<8x128xf32>
    %377 = vector.extract_strided_slice %364 {offsets = [0, 256], sizes = [8, 128], strides = [1, 1]} : vector<8x512xf32> to vector<8x128xf32>
    %378 = math.tanh %377 : vector<8x128xf32>
    %379 = vector.extract_strided_slice %364 {offsets = [0, 384], sizes = [8, 128], strides = [1, 1]} : vector<8x512xf32> to vector<8x128xf32>
    %380 = arith.negf %379 : vector<8x128xf32>
    %381 = math.exp %380 : vector<8x128xf32>
    %cst_77 = arith.constant 1.000000e+00 : f32
    %382 = vector.broadcast %cst_77 : f32 to vector<8x128xf32>
    %383 = arith.addf %382, %381 : vector<8x128xf32>
    %384 = arith.divf %382, %383 : vector<8x128xf32>
    %385 = arith.mulf %376, %325 : vector<8x128xf32>
    %386 = arith.mulf %370, %378 : vector<8x128xf32>
    %387 = arith.addf %385, %386 : vector<8x128xf32>
    %388 = math.tanh %387 : vector<8x128xf32>
    %389 = arith.mulf %384, %388 : vector<8x128xf32>
    %c6 = arith.constant 6 : index
    %c0_78 = arith.constant 0 : index
    %c0_79 = arith.constant 0 : index
    %390 = vector.load %arg2[%c6, %c0_78, %c0_79] : memref<8x8x1xf32, #tpu.memory_space<vmem>>, vector<1x8x1xf32>
    %391 = vector.shape_cast %390 : vector<1x8x1xf32> to vector<8x1xf32>
    %392 = vector.broadcast %391 : vector<8x1xf32> to vector<8x512xf32>
    %393 = arith.mulf %392, %13 : vector<8x512xf32>
    %394 = arith.addf %393, %7 : vector<8x512xf32>
    %395 = arith.truncf %360 : vector<8x128xf32> to vector<8x128xbf16>
    %cst_80 = arith.constant dense<0.000000e+00> : vector<8x512xf32>
    %396 = tpu.matmul %395, %3, %cst_80 {dimension_numbers = #tpu.dot_dimension_numbers<[1], [0], [0], [1], [0, 0, 1, 1], [], []>} : vector<8x128xbf16>, vector<128x512xbf16>, vector<8x512xf32> -> vector<8x512xf32>
    %397 = arith.addf %394, %396 : vector<8x512xf32>
    %398 = vector.extract_strided_slice %397 {offsets = [0, 0], sizes = [8, 128], strides = [1, 1]} : vector<8x512xf32> to vector<8x128xf32>
    %399 = arith.negf %398 : vector<8x128xf32>
    %400 = math.exp %399 : vector<8x128xf32>
    %cst_81 = arith.constant 1.000000e+00 : f32
    %401 = vector.broadcast %cst_81 : f32 to vector<8x128xf32>
    %402 = arith.addf %401, %400 : vector<8x128xf32>
    %403 = arith.divf %401, %402 : vector<8x128xf32>
    %404 = vector.extract_strided_slice %397 {offsets = [0, 128], sizes = [8, 128], strides = [1, 1]} : vector<8x512xf32> to vector<8x128xf32>
    %405 = arith.negf %404 : vector<8x128xf32>
    %406 = math.exp %405 : vector<8x128xf32>
    %cst_82 = arith.constant 1.000000e+00 : f32
    %407 = vector.broadcast %cst_82 : f32 to vector<8x128xf32>
    %408 = arith.addf %407, %406 : vector<8x128xf32>
    %409 = arith.divf %407, %408 : vector<8x128xf32>
    %410 = vector.extract_strided_slice %397 {offsets = [0, 256], sizes = [8, 128], strides = [1, 1]} : vector<8x512xf32> to vector<8x128xf32>
    %411 = math.tanh %410 : vector<8x128xf32>
    %412 = vector.extract_strided_slice %397 {offsets = [0, 384], sizes = [8, 128], strides = [1, 1]} : vector<8x512xf32> to vector<8x128xf32>
    %413 = arith.negf %412 : vector<8x128xf32>
    %414 = math.exp %413 : vector<8x128xf32>
    %cst_83 = arith.constant 1.000000e+00 : f32
    %415 = vector.broadcast %cst_83 : f32 to vector<8x128xf32>
    %416 = arith.addf %415, %414 : vector<8x128xf32>
    %417 = arith.divf %415, %416 : vector<8x128xf32>
    %418 = arith.mulf %409, %358 : vector<8x128xf32>
    %419 = arith.mulf %403, %411 : vector<8x128xf32>
    %420 = arith.addf %418, %419 : vector<8x128xf32>
    %421 = math.tanh %420 : vector<8x128xf32>
    %422 = arith.mulf %417, %421 : vector<8x128xf32>
    %423 = tpu.concatenate %422, %389 in 1 : vector<8x128xf32>, vector<8x128xf32> -> vector<8x256xf32>
    %424 = arith.truncf %423 : vector<8x256xf32> to vector<8x256xbf16>
    %cst_84 = arith.constant dense<0.000000e+00> : vector<8x512xf32>
    %425 = tpu.matmul %424, %4, %cst_84 {dimension_numbers = #tpu.dot_dimension_numbers<[1], [0], [0], [1], [0, 0, 1, 1], [], []>} : vector<8x256xbf16>, vector<256x512xbf16>, vector<8x512xf32> -> vector<8x512xf32>
    %426 = arith.addf %425, %10 : vector<8x512xf32>
    %427 = vector.extract_strided_slice %426 {offsets = [0, 0], sizes = [8, 128], strides = [1, 1]} : vector<8x512xf32> to vector<8x128xf32>
    %428 = arith.negf %427 : vector<8x128xf32>
    %429 = math.exp %428 : vector<8x128xf32>
    %cst_85 = arith.constant 1.000000e+00 : f32
    %430 = vector.broadcast %cst_85 : f32 to vector<8x128xf32>
    %431 = arith.addf %430, %429 : vector<8x128xf32>
    %432 = arith.divf %430, %431 : vector<8x128xf32>
    %433 = vector.extract_strided_slice %426 {offsets = [0, 128], sizes = [8, 128], strides = [1, 1]} : vector<8x512xf32> to vector<8x128xf32>
    %434 = arith.negf %433 : vector<8x128xf32>
    %435 = math.exp %434 : vector<8x128xf32>
    %cst_86 = arith.constant 1.000000e+00 : f32
    %436 = vector.broadcast %cst_86 : f32 to vector<8x128xf32>
    %437 = arith.addf %436, %435 : vector<8x128xf32>
    %438 = arith.divf %436, %437 : vector<8x128xf32>
    %439 = vector.extract_strided_slice %426 {offsets = [0, 256], sizes = [8, 128], strides = [1, 1]} : vector<8x512xf32> to vector<8x128xf32>
    %440 = math.tanh %439 : vector<8x128xf32>
    %441 = vector.extract_strided_slice %426 {offsets = [0, 384], sizes = [8, 128], strides = [1, 1]} : vector<8x512xf32> to vector<8x128xf32>
    %442 = arith.negf %441 : vector<8x128xf32>
    %443 = math.exp %442 : vector<8x128xf32>
    %cst_87 = arith.constant 1.000000e+00 : f32
    %444 = vector.broadcast %cst_87 : f32 to vector<8x128xf32>
    %445 = arith.addf %444, %443 : vector<8x128xf32>
    %446 = arith.divf %444, %445 : vector<8x128xf32>
    %447 = arith.mulf %438, %387 : vector<8x128xf32>
    %448 = arith.mulf %432, %440 : vector<8x128xf32>
    %449 = arith.addf %447, %448 : vector<8x128xf32>
    %450 = math.tanh %449 : vector<8x128xf32>
    %451 = arith.mulf %446, %450 : vector<8x128xf32>
    %c7 = arith.constant 7 : index
    %c0_88 = arith.constant 0 : index
    %c0_89 = arith.constant 0 : index
    %452 = vector.load %arg2[%c7, %c0_88, %c0_89] : memref<8x8x1xf32, #tpu.memory_space<vmem>>, vector<1x8x1xf32>
    %453 = vector.shape_cast %452 : vector<1x8x1xf32> to vector<8x1xf32>
    %454 = vector.broadcast %453 : vector<8x1xf32> to vector<8x512xf32>
    %455 = arith.mulf %454, %13 : vector<8x512xf32>
    %456 = arith.addf %455, %7 : vector<8x512xf32>
    %457 = arith.truncf %422 : vector<8x128xf32> to vector<8x128xbf16>
    %cst_90 = arith.constant dense<0.000000e+00> : vector<8x512xf32>
    %458 = tpu.matmul %457, %3, %cst_90 {dimension_numbers = #tpu.dot_dimension_numbers<[1], [0], [0], [1], [0, 0, 1, 1], [], []>} : vector<8x128xbf16>, vector<128x512xbf16>, vector<8x512xf32> -> vector<8x512xf32>
    %459 = arith.addf %456, %458 : vector<8x512xf32>
    %460 = vector.extract_strided_slice %459 {offsets = [0, 0], sizes = [8, 128], strides = [1, 1]} : vector<8x512xf32> to vector<8x128xf32>
    %461 = arith.negf %460 : vector<8x128xf32>
    %462 = math.exp %461 : vector<8x128xf32>
    %cst_91 = arith.constant 1.000000e+00 : f32
    %463 = vector.broadcast %cst_91 : f32 to vector<8x128xf32>
    %464 = arith.addf %463, %462 : vector<8x128xf32>
    %465 = arith.divf %463, %464 : vector<8x128xf32>
    %466 = vector.extract_strided_slice %459 {offsets = [0, 128], sizes = [8, 128], strides = [1, 1]} : vector<8x512xf32> to vector<8x128xf32>
    %467 = arith.negf %466 : vector<8x128xf32>
    %468 = math.exp %467 : vector<8x128xf32>
    %cst_92 = arith.constant 1.000000e+00 : f32
    %469 = vector.broadcast %cst_92 : f32 to vector<8x128xf32>
    %470 = arith.addf %469, %468 : vector<8x128xf32>
    %471 = arith.divf %469, %470 : vector<8x128xf32>
    %472 = vector.extract_strided_slice %459 {offsets = [0, 256], sizes = [8, 128], strides = [1, 1]} : vector<8x512xf32> to vector<8x128xf32>
    %473 = math.tanh %472 : vector<8x128xf32>
    %474 = vector.extract_strided_slice %459 {offsets = [0, 384], sizes = [8, 128], strides = [1, 1]} : vector<8x512xf32> to vector<8x128xf32>
    %475 = arith.negf %474 : vector<8x128xf32>
    %476 = math.exp %475 : vector<8x128xf32>
    %cst_93 = arith.constant 1.000000e+00 : f32
    %477 = vector.broadcast %cst_93 : f32 to vector<8x128xf32>
    %478 = arith.addf %477, %476 : vector<8x128xf32>
    %479 = arith.divf %477, %478 : vector<8x128xf32>
    %480 = arith.mulf %471, %420 : vector<8x128xf32>
    %481 = arith.mulf %465, %473 : vector<8x128xf32>
    %482 = arith.addf %480, %481 : vector<8x128xf32>
    %483 = math.tanh %482 : vector<8x128xf32>
    %484 = arith.mulf %479, %483 : vector<8x128xf32>
    %485 = tpu.concatenate %484, %451 in 1 : vector<8x128xf32>, vector<8x128xf32> -> vector<8x256xf32>
    %486 = arith.truncf %485 : vector<8x256xf32> to vector<8x256xbf16>
    %cst_94 = arith.constant dense<0.000000e+00> : vector<8x512xf32>
    %487 = tpu.matmul %486, %4, %cst_94 {dimension_numbers = #tpu.dot_dimension_numbers<[1], [0], [0], [1], [0, 0, 1, 1], [], []>} : vector<8x256xbf16>, vector<256x512xbf16>, vector<8x512xf32> -> vector<8x512xf32>
    %488 = arith.addf %487, %10 : vector<8x512xf32>
    %489 = vector.extract_strided_slice %488 {offsets = [0, 0], sizes = [8, 128], strides = [1, 1]} : vector<8x512xf32> to vector<8x128xf32>
    %490 = arith.negf %489 : vector<8x128xf32>
    %491 = math.exp %490 : vector<8x128xf32>
    %cst_95 = arith.constant 1.000000e+00 : f32
    %492 = vector.broadcast %cst_95 : f32 to vector<8x128xf32>
    %493 = arith.addf %492, %491 : vector<8x128xf32>
    %494 = arith.divf %492, %493 : vector<8x128xf32>
    %495 = vector.extract_strided_slice %488 {offsets = [0, 128], sizes = [8, 128], strides = [1, 1]} : vector<8x512xf32> to vector<8x128xf32>
    %496 = arith.negf %495 : vector<8x128xf32>
    %497 = math.exp %496 : vector<8x128xf32>
    %cst_96 = arith.constant 1.000000e+00 : f32
    %498 = vector.broadcast %cst_96 : f32 to vector<8x128xf32>
    %499 = arith.addf %498, %497 : vector<8x128xf32>
    %500 = arith.divf %498, %499 : vector<8x128xf32>
    %501 = vector.extract_strided_slice %488 {offsets = [0, 256], sizes = [8, 128], strides = [1, 1]} : vector<8x512xf32> to vector<8x128xf32>
    %502 = math.tanh %501 : vector<8x128xf32>
    %503 = vector.extract_strided_slice %488 {offsets = [0, 384], sizes = [8, 128], strides = [1, 1]} : vector<8x512xf32> to vector<8x128xf32>
    %504 = arith.negf %503 : vector<8x128xf32>
    %505 = math.exp %504 : vector<8x128xf32>
    %cst_97 = arith.constant 1.000000e+00 : f32
    %506 = vector.broadcast %cst_97 : f32 to vector<8x128xf32>
    %507 = arith.addf %506, %505 : vector<8x128xf32>
    %508 = arith.divf %506, %507 : vector<8x128xf32>
    %509 = arith.mulf %500, %449 : vector<8x128xf32>
    %510 = arith.mulf %494, %502 : vector<8x128xf32>
    %511 = arith.addf %509, %510 : vector<8x128xf32>
    %512 = math.tanh %511 : vector<8x128xf32>
    %513 = arith.mulf %508, %512 : vector<8x128xf32>
    %c0_98 = arith.constant 0 : index
    %c0_99 = arith.constant 0 : index
    %514 = vector.load %arg11[%c0_98, %c0_99] : memref<8x128xf32, #tpu.memory_space<vmem>>, vector<8x128xf32>
    tpu.vector_store %arg11[%c0_98, %c0_99], %484 {strides = array<i32>} : memref<8x128xf32, #tpu.memory_space<vmem>>, vector<8x128xf32>,
    %c0_100 = arith.constant 0 : index
    %c0_101 = arith.constant 0 : index
    %515 = vector.load %arg12[%c0_100, %c0_101] : memref<8x128xf32, #tpu.memory_space<vmem>>, vector<8x128xf32>
    tpu.vector_store %arg12[%c0_100, %c0_101], %482 {strides = array<i32>} : memref<8x128xf32, #tpu.memory_space<vmem>>, vector<8x128xf32>,
    %c0_102 = arith.constant 0 : index
    %c0_103 = arith.constant 0 : index
    %516 = vector.load %arg13[%c0_102, %c0_103] : memref<8x128xf32, #tpu.memory_space<vmem>>, vector<8x128xf32>
    tpu.vector_store %arg13[%c0_102, %c0_103], %513 {strides = array<i32>} : memref<8x128xf32, #tpu.memory_space<vmem>>, vector<8x128xf32>,
    %c0_104 = arith.constant 0 : index
    %c0_105 = arith.constant 0 : index
    %517 = vector.load %arg14[%c0_104, %c0_105] : memref<8x128xf32, #tpu.memory_space<vmem>>, vector<8x128xf32>
    tpu.vector_store %arg14[%c0_104, %c0_105], %511 {strides = array<i32>} : memref<8x128xf32, #tpu.memory_space<vmem>>, vector<8x128xf32>,
    %c0_i32_106 = arith.constant 0 : i32
    %518 = arith.cmpi eq, %arg1, %c0_i32_106 : i32
    %519 = arith.extui %518 : i1 to i32
    %c0_i32_107 = arith.constant 0 : i32
    %520 = arith.cmpi ne, %519, %c0_i32_107 : i32
    scf.if %520 {
      %c0_108 = arith.constant 0 : index
      %c0_109 = arith.constant 0 : index
      %521 = vector.load %arg9[%c0_108, %c0_109] : memref<1x128xf32, #tpu.memory_space<vmem>>, vector<1x128xf32>
      %522 = vector.shape_cast %521 : vector<1x128xf32> to vector<1x128xf32>
      %523 = vector.broadcast %522 : vector<1x128xf32> to vector<8x128xf32>
      %524 = arith.truncf %513 : vector<8x128xf32> to vector<8x128xbf16>
      %c0_110 = arith.constant 0 : index
      %c0_111 = arith.constant 0 : index
      %525 = vector.load %arg8[%c0_110, %c0_111] : memref<128x128xbf16, #tpu.memory_space<vmem>>, vector<128x128xbf16>
      %cst_112 = arith.constant dense<0.000000e+00> : vector<8x128xf32>
      %526 = tpu.matmul %524, %525, %cst_112 {dimension_numbers = #tpu.dot_dimension_numbers<[1], [0], [0], [1], [0, 0, 1, 1], [], []>} : vector<8x128xbf16>, vector<128x128xbf16>, vector<8x128xf32> -> vector<8x128xf32>
      %527 = arith.addf %526, %523 : vector<8x128xf32>
      %c0_113 = arith.constant 0 : index
      %c0_114 = arith.constant 0 : index
      %528 = vector.load %arg10[%c0_113, %c0_114] : memref<8x128xf32, #tpu.memory_space<vmem>>, vector<8x128xf32>
      tpu.vector_store %arg10[%c0_113, %c0_114], %527 {strides = array<i32>} : memref<8x128xf32, #tpu.memory_space<vmem>>, vector<8x128xf32>,
    } else {
    }
    return
  }
  func.func @transform_0(%arg0: i32, %arg1: i32) -> (i32, i32, i32) {
    %c0_i32 = arith.constant 0 : i32
    %c0_i32_0 = arith.constant 0 : i32
    return %arg1, %arg0, %c0_i32 : i32, i32, i32
  }
  func.func @transform_1(%arg0: i32, %arg1: i32) -> (i32, i32) {
    %c0_i32 = arith.constant 0 : i32
    %c0_i32_0 = arith.constant 0 : i32
    %c0_i32_1 = arith.constant 0 : i32
    return %c0_i32, %c0_i32_0 : i32, i32
  }
  func.func @transform_2(%arg0: i32, %arg1: i32) -> (i32, i32) {
    %c0_i32 = arith.constant 0 : i32
    %c0_i32_0 = arith.constant 0 : i32
    %c0_i32_1 = arith.constant 0 : i32
    return %c0_i32, %c0_i32_0 : i32, i32
  }
  func.func @transform_3(%arg0: i32, %arg1: i32) -> (i32, i32) {
    %c0_i32 = arith.constant 0 : i32
    %c0_i32_0 = arith.constant 0 : i32
    %c0_i32_1 = arith.constant 0 : i32
    return %c0_i32, %c0_i32_0 : i32, i32
  }
  func.func @transform_4(%arg0: i32, %arg1: i32) -> (i32, i32) {
    %c0_i32 = arith.constant 0 : i32
    %c0_i32_0 = arith.constant 0 : i32
    %c0_i32_1 = arith.constant 0 : i32
    return %c0_i32, %c0_i32_0 : i32, i32
  }
  func.func @transform_5(%arg0: i32, %arg1: i32) -> (i32, i32) {
    %c0_i32 = arith.constant 0 : i32
    %c0_i32_0 = arith.constant 0 : i32
    %c0_i32_1 = arith.constant 0 : i32
    return %c0_i32, %c0_i32_0 : i32, i32
  }
  func.func @transform_6(%arg0: i32, %arg1: i32) -> (i32, i32) {
    %c0_i32 = arith.constant 0 : i32
    %c0_i32_0 = arith.constant 0 : i32
    %c0_i32_1 = arith.constant 0 : i32
    return %c0_i32, %c0_i32_0 : i32, i32
  }
  func.func @transform_7(%arg0: i32, %arg1: i32) -> (i32, i32) {
    %c0_i32 = arith.constant 0 : i32
    %c0_i32_0 = arith.constant 0 : i32
    %c0_i32_1 = arith.constant 0 : i32
    return %c0_i32, %c0_i32_0 : i32, i32
  }
  func.func @transform_8(%arg0: i32, %arg1: i32) -> (i32, i32) {
    %c0_i32 = arith.constant 0 : i32
    %c0_i32_0 = arith.constant 0 : i32
    return %arg0, %c0_i32 : i32, i32
  }
}

</mosaic_0001>

<bundles_post_ra>
// kernel: tpu_custom_call.1
= control target key start
LH: loop header
LB: loop body
LE: loop exit
PB: predicated region body
PF: predicated region fallthrough
CT: control target
= control target key end

     0   :  { %13 = vsyncpa [#allocation7], 0  ;;  %s5551_s0 = inlined_call_operand.hbm [shape: f32[8,8,1], index: 0, kind: input, shape index: {}]   ;;  %s5552_s1 = inlined_call_operand.hbm [shape: f32[1,512], index: 1, kind: input, shape index: {}]   ;;  %s5553_s2 = inlined_call_operand.hbm [shape: bf16[128,512], index: 2, kind: input, shape index: {}]   ;;  %s5554_s3 = inlined_call_operand.hbm [shape: f32[1,512], index: 3, kind: input, shape index: {}]   ;;  %s5555_s4 = inlined_call_operand.hbm [shape: bf16[256,512], index: 4, kind: input, shape index: {}]   ;;  %s5556_s5 = inlined_call_operand.hbm [shape: f32[1,512], index: 5, kind: input, shape index: {}]   ;;  %s5557_s6 = inlined_call_operand.hbm [shape: bf16[128,128], index: 6, kind: input, shape index: {}]   ;;  %s5558_s7 = inlined_call_operand.hbm [shape: f32[1,128], index: 7, kind: input, shape index: {}]   ;;  %s5559_s8 = inlined_call_operand.hbm [shape: f32[8,128], index: 8, kind: output, shape index: {}]  }
   0x1   :  { %14 = vsyncpa [#allocation10], 0 }
   0x2   :  { %15 = vsyncpa [#allocation13], 0 }
   0x3   :  { %16 = vsyncpa [#allocation16], 0 }
   0x4   :  { %17 = vsyncpa [#allocation19], 0 }
   0x5   :  { %18 = vsyncpa [#allocation8], 0  ;;  %s3802_s27 = smov [#allocation9]   ;;  %s3803_s29 = smov [#allocation12]  }
   0x6   :  { %s37_s28 = sshll.u32 %s3802_s27, 4  ;;  %s59_s30 = sshll.u32 %s3803_s29, 4  ;;  %s38_s28 = int_to_ptr.vmem [resolvable:$true] %s37_s28  ;;  %s60_s30 = int_to_ptr.vmem [resolvable:$true] %s59_s30 }
   0x7   :  { %s3592_s11 = scalar_lea.hbm %s5552_s1, 64 }
   0x8   :  { %p3593_p0 = scmp.ne.s32.totalorder %s5552_s1, %s3592_s11  ;;  %p3596_p1 = scmp.lt.u32.totalorder %s3592_s11, %s5552_s1 }
   0xa   :  { %p3598_p2 = pnand %p3596_p1, %p3593_p0 }
   0xc   :  { %3601 = shalt.err (!%p3598_p2)
}
   0xd   :  { %s3602_s16 = scalar_lea.vmem %s38_s28, 64  ;;  %p3607_p4 = scmp.lt.s32.totalorder %s38_s28, %s38_s28 }
   0xe   :  { %p3603_p3 = scmp.ne.s32.totalorder %s38_s28, %s3602_s16  ;;  %p3608_p5 = scmp.lt.s32.totalorder %s3602_s16, %s3602_s16 }
  0x10   :  { %p3609_p6 = por %p3608_p5, %p3607_p4 }
  0x12   :  { %p3610_p7 = pnand %p3609_p6, %p3603_p3 }
  0x14   :  { %3613 = shalt.err (!%p3610_p7)
}
  0x15   :  { %40 = dma.hbm_to_vmem [thread:$0]  %s5552_s1, 64, %s38_s28, [#allocation10]  }
  0x16   :  { %s3614_s21 = scalar_lea.hbm %s5554_s3, 64 }
  0x17   :  { %p3615_p8 = scmp.ne.s32.totalorder %s5554_s3, %s3614_s21  ;;  %p3618_p9 = scmp.lt.u32.totalorder %s3614_s21, %s5554_s3 }
  0x19   :  { %p3620_p10 = pnand %p3618_p9, %p3615_p8 }
  0x1b   :  { %3623 = shalt.err (!%p3620_p10)
}
  0x1c   :  { %s3624_s26 = scalar_lea.vmem %s60_s30, 64  ;;  %p3629_p12 = scmp.lt.s32.totalorder %s60_s30, %s60_s30 }
  0x1d   :  { %p3625_p11 = scmp.ne.s32.totalorder %s60_s30, %s3624_s26  ;;  %p3630_p13 = scmp.lt.s32.totalorder %s3624_s26, %s3624_s26 }
  0x1f   :  { %p3631_p0 = por %p3630_p13, %p3629_p12 }
  0x21   :  { %p3632_p1 = pnand %p3631_p0, %p3625_p11 }
  0x23   :  { %3635 = shalt.err (!%p3632_p1)
}
  0x24   :  { %62 = dma.hbm_to_vmem [thread:$0]  %s5554_s3, 64, %s60_s30, [#allocation13]  }
  0x25   :  { %s3804_s28 = smov [#allocation15]   ;;  %s3805_s9 = smov [#allocation6]  }
  0x26   :  { %s81_s29 = sshll.u32 %s3804_s28, 4  ;;  %s24_s10 = sshll.u32 %s3805_s9, 4  ;;  %s82_s29 = int_to_ptr.vmem [resolvable:$true] %s81_s29  ;;  %s3890_s10 = int_to_ptr.vmem [resolvable:$true] %s24_s10 }
  0x27   :  { %s3636_s13 = scalar_lea.hbm %s5556_s5, 64 }
  0x28   :  { %p3637_p2 = scmp.ne.s32.totalorder %s5556_s5, %s3636_s13  ;;  %p3640_p3 = scmp.lt.u32.totalorder %s3636_s13, %s5556_s5 }
  0x2a   :  { %p3642_p4 = pnand %p3640_p3, %p3637_p2 }
  0x2c   :  { %3645 = shalt.err (!%p3642_p4)
}
  0x2d   :  { %s3646_s3 = scalar_lea.vmem %s82_s29, 64  ;;  %p3651_p6 = scmp.lt.s32.totalorder %s82_s29, %s82_s29 }
  0x2e   :  { %p3647_p5 = scmp.ne.s32.totalorder %s82_s29, %s3646_s3  ;;  %p3652_p7 = scmp.lt.s32.totalorder %s3646_s3, %s3646_s3 }
  0x30   :  { %p3653_p8 = por %p3652_p7, %p3651_p6 }
  0x32   :  { %p3654_p9 = pnand %p3653_p8, %p3647_p5 }
  0x34   :  { %3657 = shalt.err (!%p3654_p9)
}
  0x35   :  { %84 = dma.hbm_to_vmem [thread:$0]  %s5556_s5, 64, %s82_s29, [#allocation16]  }
  0x36   :  { %s3658_s21 = scalar_lea.hbm %s5551_s0, 1024 }
  0x37   :  { %p3659_p10 = scmp.ne.s32.totalorder %s5551_s0, %s3658_s21  ;;  %p3662_p11 = scmp.lt.u32.totalorder %s3658_s21, %s5551_s0 }
  0x39   :  { %p3664_p12 = pnand %p3662_p11, %p3659_p10 }
  0x3b   :  { %3667 = shalt.err (!%p3664_p12)
}
  0x3c   :  { %s3668_s26 = scalar_lea.vmem %s3890_s10, 1024  ;;  %p3673_p0 = scmp.lt.s32.totalorder %s3890_s10, %s3890_s10 }
  0x3d   :  { %p3669_p13 = scmp.ne.s32.totalorder %s3890_s10, %s3668_s26  ;;  %p3674_p1 = scmp.lt.s32.totalorder %s3668_s26, %s3668_s26 }
  0x3f   :  { %p3675_p2 = por %p3674_p1, %p3673_p0 }
  0x41   :  { %p3676_p3 = pnand %p3675_p2, %p3669_p13 }
  0x43   :  { %3679 = shalt.err (!%p3676_p3)
}
  0x44   :  { %s3806_s5 = smov 128   ;;  %s3807_s1 = smov 8  }
  0x45   :  { %30 = dma.hbm_to_vmem [thread:$0]  %s5551_s0, 1024, %s3890_s10, [#allocation7], %s3806_s5, %s3806_s5, %s3807_s1  }
  0x46   :  { %s3808_s29 = smov [#allocation11]   ;;  %s3680_s13 = scalar_lea.hbm %s5553_s2, 4096 }
  0x47   :  { %s46_s9 = sshll.u32 %s3808_s29, 4  ;;  %p3681_p4 = scmp.ne.s32.totalorder %s5553_s2, %s3680_s13  ;;  %s47_s9 = int_to_ptr.vmem [resolvable:$true] %s46_s9 }
  0x48   :  { %p3684_p5 = scmp.lt.u32.totalorder %s3680_s13, %s5553_s2 }
  0x4a   :  { %p3686_p6 = pnand %p3684_p5, %p3681_p4 }
  0x4c   :  { %3689 = shalt.err (!%p3686_p6)
}
  0x4d   :  { %s3690_s3 = scalar_lea.vmem %s47_s9, 4096  ;;  %p3695_p8 = scmp.lt.s32.totalorder %s47_s9, %s47_s9 }
  0x4e   :  { %p3691_p7 = scmp.ne.s32.totalorder %s47_s9, %s3690_s3  ;;  %p3696_p9 = scmp.lt.s32.totalorder %s3690_s3, %s3690_s3 }
  0x50   :  { %p3697_p10 = por %p3696_p9, %p3695_p8 }
  0x52   :  { %p3698_p11 = pnand %p3697_p10, %p3691_p7 }
  0x54   :  { %3701 = shalt.err (!%p3698_p11)
}
  0x55   :  { %s3809_s0 = smov 256   ;;  %s3810_s10 = smov 16  }
  0x56   :  { %52 = dma.hbm_to_vmem [thread:$0]  %s5553_s2, 4096, %s47_s9, [#allocation10], %s3809_s0, %s3809_s0, %s3810_s10  }
  0x57   :  { %s3811_s19 = smov [#allocation14]   ;;  %s3812_s21 = smov [#allocation17]  }
  0x58   :  { %s68_s20 = sshll.u32 %s3811_s19, 4  ;;  %s90_s22 = sshll.u32 %s3812_s21, 4  ;;  %s69_s20 = int_to_ptr.vmem [resolvable:$true] %s68_s20  ;;  %s91_s22 = int_to_ptr.vmem [resolvable:$true] %s90_s22 }
  0x59   :  { %s3702_s25 = scalar_lea.hbm %s5555_s4, 8192 }
  0x5a   :  { %p3703_p12 = scmp.ne.s32.totalorder %s5555_s4, %s3702_s25  ;;  %p3706_p13 = scmp.lt.u32.totalorder %s3702_s25, %s5555_s4 }
  0x5c   :  { %p3708_p0 = pnand %p3706_p13, %p3703_p12 }
  0x5e   :  { %3711 = shalt.err (!%p3708_p0)
}
  0x5f   :  { %s3712_s2 = scalar_lea.vmem %s69_s20, 8192  ;;  %p3717_p2 = scmp.lt.s32.totalorder %s69_s20, %s69_s20 }
  0x60   :  { %p3713_p1 = scmp.ne.s32.totalorder %s69_s20, %s3712_s2  ;;  %p3718_p3 = scmp.lt.s32.totalorder %s3712_s2, %s3712_s2 }
  0x62   :  { %p3719_p4 = por %p3718_p3, %p3717_p2 }
  0x64   :  { %p3720_p5 = pnand %p3719_p4, %p3713_p1 }
  0x66   :  { %3723 = shalt.err (!%p3720_p5)
}
  0x67   :  { %74 = dma.hbm_to_vmem [thread:$0]  %s5555_s4, 8192, %s69_s20, [#allocation13], %s3809_s0, %s3809_s0, %s3810_s10  }
  0x68   :  { %s3724_s12 = scalar_lea.hbm %s5557_s6, 1024 }
  0x69   :  { %p3725_p6 = scmp.ne.s32.totalorder %s5557_s6, %s3724_s12  ;;  %p3728_p7 = scmp.lt.u32.totalorder %s3724_s12, %s5557_s6 }
  0x6b   :  { %p3730_p8 = pnand %p3728_p7, %p3725_p6 }
  0x6d   :  { %3733 = shalt.err (!%p3730_p8)
}
  0x6e   :  { %s3734_s17 = scalar_lea.vmem %s91_s22, 1024  ;;  %p3739_p10 = scmp.lt.s32.totalorder %s91_s22, %s91_s22 }
  0x6f   :  { %p3735_p9 = scmp.ne.s32.totalorder %s91_s22, %s3734_s17  ;;  %p3740_p11 = scmp.lt.s32.totalorder %s3734_s17, %s3734_s17 }
  0x71   :  { %p3741_p12 = por %p3740_p11, %p3739_p10 }
  0x73   :  { %p3742_p13 = pnand %p3741_p12, %p3735_p9 }
  0x75   :  { %3745 = shalt.err (!%p3742_p13)
}
  0x76   :  { %s3813_s4 = smov 64   ;;  %s3814_s3 = smov 4  }
  0x77   :  { %96 = dma.hbm_to_vmem [thread:$0]  %s5557_s6, 1024, %s91_s22, [#allocation16], %s3813_s4, %s3813_s4, %s3814_s3  }
  0x78   :  { %s3815_s30 = smov [#allocation18]   ;;  %s3746_s21 = scalar_lea.hbm %s5558_s7, 16 }
  0x79   :  { %s103_s18 = sshll.u32 %s3815_s30, 4  ;;  %p3747_p0 = scmp.ne.s32.totalorder %s5558_s7, %s3746_s21  ;;  %s104_s18 = int_to_ptr.vmem [resolvable:$true] %s103_s18 }
  0x7a   :  { %p3750_p1 = scmp.lt.u32.totalorder %s3746_s21, %s5558_s7 }
  0x7c   :  { %p3752_p2 = pnand %p3750_p1, %p3747_p0 }
  0x7e   :  { %3755 = shalt.err (!%p3752_p2)
}
  0x7f   :  { %s3756_s5 = scalar_lea.vmem %s104_s18, 16  ;;  %s3760_s6 = scalar_lea.vmem %s104_s18, 32 }
  0x80   :  { %p3757_p3 = scmp.ne.s32.totalorder %s104_s18, %s3756_s5  ;;  %p3761_p4 = scmp.lt.s32.totalorder %s104_s18, %s104_s18 }
  0x81   :  { %p3762_p5 = scmp.lt.s32.totalorder %s3760_s6, %s3756_s5 }
  0x83   :  { %p3763_p6 = por %p3762_p5, %p3761_p4 }
  0x85   :  { %p3764_p7 = pnand %p3763_p6, %p3757_p3 }
  0x87   :  { %3767 = shalt.err (!%p3764_p7)
}
  0x88   :  { %106 = dma.hbm_to_vmem [thread:$0]  %s5558_s7, 16, %s104_s18, [#allocation19]  }
  0x89   :  { %3790 = dma.done.wait [#allocation7], 1024  }
  0x8a   :  { %3791 = vsyncadd [#allocation7], 4294966272 }
  0x8b   :  { %3792 = dma.done.wait [#allocation10], 4160  }
  0x8c   :  { %3793 = vsyncadd [#allocation10], 4294963136 }
  0x8d   :  { %3794 = dma.done.wait [#allocation13], 8256  }
  0x8e   :  { %3795 = vsyncadd [#allocation13], 4294959040 }
  0x8f   :  { %3796 = dma.done.wait [#allocation16], 1088  }
  0x90   :  { %3797 = vsyncadd [#allocation16], 4294966208 }
  0x91   :  { %3798 = dma.done.wait [#allocation19], 16  }
  0x92   :  { %3799 = vsyncadd [#allocation19], 4294967280  ;;  %v5560_v0 = vmov 0   ;;  %v3973_v1 = vld [vmem:[#allocation11 + $0x4] ss:$16 sps:$4 sm:$0xff]   ;;  %v306_v27 = vld [vmem:[#allocation6] sm:$0xff] }
  0x93   :  { %513 = vmatprep.mubr.bf16.mxu0 %v5560_v0  ;;  %554 = vmatprep.mubr.bf16.mxu1 %v5560_v0  ;;  %5939 = vst [vmem:[#allocation27_spill] sm:$0xff] %v3973_v1  ;;  %v3975_v2 = vld [vmem:[#allocation11 + $0xc] ss:$16 sps:$4 sm:$0xff]   ;;  %v3978_v3 = vld [vmem:[#allocation11] ss:$16 sps:$4 sm:$0xff]   ;;  %v1020_v29 = vld [vmem:[#allocation6 + $0x8] sm:$0xff] }
  0x94   :  { %2990 = vset.pattern.permute.xlu0 %v5560_v0  ;;  %2991 = vset.pattern.permute.xlu1 %v5560_v0  ;;  %5940 = vst [vmem:[#allocation28_spill] sm:$0xff] %v3975_v2  ;;  %v3980_v4 = vld [vmem:[#allocation11 + $0x8] ss:$16 sps:$4 sm:$0xff]   ;;  %v3983_v5 = vld [vmem:[#allocation11 + $0x24] ss:$16 sps:$4 sm:$0xff]   ;;  %v1719_v35 = vld [vmem:[#allocation6 + $0x20] sm:$0xff] }
  0x95   :  { %481 = vmatprep.subr.bf16.mxu0 %v3973_v1  ;;  %522 = vmatprep.subr.bf16.mxu1 %v3975_v2  ;;  %v3987_v6 = vld [vmem:[#allocation11 + $0x2c] ss:$16 sps:$4 sm:$0xff]   ;;  %v3989_v7 = vld [vmem:[#allocation11 + $0x20] ss:$16 sps:$4 sm:$0xff]   ;;  %v3992_v8 = vld [vmem:[#allocation11 + $0x28] ss:$16 sps:$4 sm:$0xff]  }
  0x96   :  { %482 = vmatpush1.bf16.msra.mxu0 %v3978_v3  ;;  %523 = vmatpush1.bf16.msra.mxu1 %v3980_v4  ;;  %v3995_v9 = vld [vmem:[#allocation11 + $0x44] ss:$16 sps:$4 sm:$0xff]   ;;  %v3997_v10 = vld [vmem:[#allocation11 + $0x4c] ss:$16 sps:$4 sm:$0xff]   ;;  %v3999_v11 = vld [vmem:[#allocation11 + $0x40] ss:$16 sps:$4 sm:$0xff]  }
  0x97   :  { %483 = vmatprep.subr.bf16.mxu0 %v3983_v5  ;;  %524 = vmatprep.subr.bf16.mxu1 %v3987_v6  ;;  %v4001_v12 = vld [vmem:[#allocation11 + $0x48] ss:$16 sps:$4 sm:$0xff]   ;;  %v4005_v13 = vld [vmem:[#allocation11 + $0x64] ss:$16 sps:$4 sm:$0xff]   ;;  %v4009_v14 = vld [vmem:[#allocation11 + $0x6c] ss:$16 sps:$4 sm:$0xff]  }
  0x98   :  { %v4011_v15 = vld [vmem:[#allocation11 + $0x60] ss:$16 sps:$4 sm:$0xff]   ;;  %v4015_v16 = vld [vmem:[#allocation11 + $0x68] ss:$16 sps:$4 sm:$0xff]   ;;  %v4017_v17 = vld [vmem:[#allocation11 + $0x84] ss:$16 sps:$4 sm:$0xff]   ;;  %309 = vperm.xlu0 %2990, %v306_v27  }
  0x99   :  { %v4021_v18 = vld [vmem:[#allocation11 + $0x8c] ss:$16 sps:$4 sm:$0xff]   ;;  %v4023_v19 = vld [vmem:[#allocation11 + $0x80] ss:$16 sps:$4 sm:$0xff]   ;;  %v4025_v20 = vld [vmem:[#allocation11 + $0x88] ss:$16 sps:$4 sm:$0xff]  }
  0x9a   :  { %484 = vmatpush1.bf16.msra.mxu0 %v3989_v7  ;;  %525 = vmatpush1.bf16.msra.mxu1 %v3992_v8  ;;  %v4029_v21 = vld [vmem:[#allocation11 + $0xa4] ss:$16 sps:$4 sm:$0xff]   ;;  %v4033_v22 = vld [vmem:[#allocation11 + $0xac] ss:$16 sps:$4 sm:$0xff]   ;;  %v4037_v23 = vld [vmem:[#allocation11 + $0xa0] ss:$16 sps:$4 sm:$0xff]  }
  0x9b   :  { %485 = vmatprep.subr.bf16.mxu0 %v3995_v9  ;;  %526 = vmatprep.subr.bf16.mxu1 %v3997_v10  ;;  %v4039_v24 = vld [vmem:[#allocation11 + $0xa8] ss:$16 sps:$4 sm:$0xff]   ;;  %v4043_v25 = vld [vmem:[#allocation11 + $0xc4] ss:$16 sps:$4 sm:$0xff]   ;;  %v4045_v26 = vld [vmem:[#allocation11 + $0xcc] ss:$16 sps:$4 sm:$0xff]  }
  0x9c   :  { %v4047_v28 = vld [vmem:[#allocation11 + $0xc0] ss:$16 sps:$4 sm:$0xff]   ;;  %v4051_v30 = vld [vmem:[#allocation11 + $0xc8] ss:$16 sps:$4 sm:$0xff]   ;;  %v4053_v31 = vld [vmem:[#allocation11 + $0xe4] ss:$16 sps:$4 sm:$0xff]   ;;  %1023 = vperm.xlu0 %2990, %v1020_v29  }
  0x9d   :  { %v4057_v32 = vld [vmem:[#allocation11 + $0xec] ss:$16 sps:$4 sm:$0xff]   ;;  %v4059_v33 = vld [vmem:[#allocation11 + $0xe0] ss:$16 sps:$4 sm:$0xff]   ;;  %v4061_v34 = vld [vmem:[#allocation11 + $0xe8] ss:$16 sps:$4 sm:$0xff]  }
  0x9e   :  { %486 = vmatpush1.bf16.msra.mxu0 %v3999_v11  ;;  %527 = vmatpush1.bf16.msra.mxu1 %v4001_v12  ;;  %v4065_v36 = vld [vmem:[#allocation14 + $0x4] ss:$16 sps:$4 sm:$0xff]   ;;  %v4069_v37 = vld [vmem:[#allocation14 + $0xc] ss:$16 sps:$4 sm:$0xff]   ;;  %v4071_v39 = vld [vmem:[#allocation14] ss:$16 sps:$4 sm:$0xff]  }
  0x9f   :  { %487 = vmatprep.subr.bf16.mxu0 %v4005_v13  ;;  %528 = vmatprep.subr.bf16.mxu1 %v4009_v14  ;;  %v2185_v38 = vld [vmem:[#allocation6 + $0x30] sm:$0xff]  ;;  %v4079_v41 = vld [vmem:[#allocation14 + $0x24] ss:$16 sps:$4 sm:$0xff]   ;;  %v4083_v43 = vld [vmem:[#allocation14 + $0x20] ss:$16 sps:$4 sm:$0xff]   ;;  %v3817_v45 = vmov 0.0|0.0  }
  0xa0   :  { %1722 = vperm.xlu0 %2990, %v1719_v35   ;;  %v4075_v40 = vld [vmem:[#allocation14 + $0x8] ss:$16 sps:$4 sm:$0xff]   ;;  %v4081_v42 = vld [vmem:[#allocation14 + $0x2c] ss:$16 sps:$4 sm:$0xff]   ;;  %v4087_v46 = vld [vmem:[#allocation14 + $0x44] ss:$16 sps:$4 sm:$0xff]  }
  0xa1   :  { %v4085_v44 = vld [vmem:[#allocation14 + $0x28] ss:$16 sps:$4 sm:$0xff]   ;;  %v4089_v47 = vld [vmem:[#allocation14 + $0x4c] ss:$16 sps:$4 sm:$0xff]   ;;  %v4095_v48 = vld [vmem:[#allocation14 + $0x40] ss:$16 sps:$4 sm:$0xff]  }
  0xa2   :  { %488 = vmatpush1.bf16.msra.mxu0 %v4011_v15  ;;  %529 = vmatpush1.bf16.msra.mxu1 %v4015_v16  ;;  %5941 = vst [vmem:[#allocation29_spill] sm:$0xff] %v4095_v48  ;;  %v4097_v49 = vld [vmem:[#allocation14 + $0x48] ss:$16 sps:$4 sm:$0xff]   ;;  %v4099_v50 = vld [vmem:[#allocation14 + $0x64] ss:$16 sps:$4 sm:$0xff]   ;;  %vm3819_vm0 = vmmov 0  }
  0xa3   :  { %489 = vmatprep.subr.bf16.mxu0 %v4017_v17  ;;  %530 = vmatprep.subr.bf16.mxu1 %v4021_v18  ;;  %5942 = vst [vmem:[#allocation30_spill] sm:$0xff] %v4097_v49  ;;  %5943 = vst [vmem:[#allocation31_spill] sm:$0xff] %v4099_v50  ;;  %v4101_v51 = vld [vmem:[#allocation14 + $0x6c] ss:$16 sps:$4 sm:$0xff]   ;;  %v4107_v52 = vld [vmem:[#allocation14 + $0x60] ss:$16 sps:$4 sm:$0xff]  }
  0xa4   :  { %2188 = vperm.xlu0 %2990, %v2185_v38   ;;  %5944 = vst [vmem:[#allocation32_spill] sm:$0xff] %v4101_v51  ;;  %5945 = vst [vmem:[#allocation33_spill] sm:$0xff] %v4107_v52  ;;  %v4109_v53 = vld [vmem:[#allocation14 + $0x68] ss:$16 sps:$4 sm:$0xff]   ;;  %v4117_v54 = vld [vmem:[#allocation14 + $0x84] ss:$16 sps:$4 sm:$0xff]  }
  0xa5   :  { %5946 = vst [vmem:[#allocation34_spill] sm:$0xff] %v4109_v53  ;;  %5947 = vst [vmem:[#allocation35_spill] sm:$0xff] %v4117_v54  ;;  %v4119_v55 = vld [vmem:[#allocation14 + $0x8c] ss:$16 sps:$4 sm:$0xff]   ;;  %v4123_v56 = vld [vmem:[#allocation14 + $0x80] ss:$16 sps:$4 sm:$0xff]  }
  0xa6   :  { %490 = vmatpush1.bf16.msra.mxu0 %v4023_v19  ;;  %531 = vmatpush1.bf16.msra.mxu1 %v4025_v20  ;;  %5948 = vst [vmem:[#allocation36_spill] sm:$0xff] %v4119_v55  ;;  %5949 = vst [vmem:[#allocation37_spill] sm:$0xff] %v4123_v56  ;;  %v4125_v57 = vld [vmem:[#allocation14 + $0x88] ss:$16 sps:$4 sm:$0xff]   ;;  %v4129_v58 = vld [vmem:[#allocation14 + $0xa4] ss:$16 sps:$4 sm:$0xff]  }
  0xa7   :  { %491 = vmatprep.subr.bf16.mxu0 %v4029_v21  ;;  %532 = vmatprep.subr.bf16.mxu1 %v4033_v22  ;;  %5950 = vst [vmem:[#allocation38_spill] sm:$0xff] %v4125_v57  ;;  %5951 = vst [vmem:[#allocation39_spill] sm:$0xff] %v4129_v58  ;;  %v4131_v59 = vld [vmem:[#allocation14 + $0xac] ss:$16 sps:$4 sm:$0xff]   ;;  %v4133_v60 = vld [vmem:[#allocation14 + $0xa0] ss:$16 sps:$4 sm:$0xff]  }
  0xa8   :  { %5952 = vst [vmem:[#allocation40_spill] sm:$0xff] %v4131_v59  ;;  %5953 = vst [vmem:[#allocation41_spill] sm:$0xff] %v4133_v60  ;;  %v4135_v61 = vld [vmem:[#allocation14 + $0xa8] ss:$16 sps:$4 sm:$0xff]   ;;  %v4141_v62 = vld [vmem:[#allocation14 + $0xc4] ss:$16 sps:$4 sm:$0xff]  }
  0xa9   :  { %5954 = vst [vmem:[#allocation42_spill] sm:$0xff] %v4135_v61  ;;  %5955 = vst [vmem:[#allocation43_spill] sm:$0xff] %v4141_v62  ;;  %v4143_v63 = vld [vmem:[#allocation14 + $0xcc] ss:$16 sps:$4 sm:$0xff]   ;;  %v4145_v27 = vld [vmem:[#allocation14 + $0xc0] ss:$16 sps:$4 sm:$0xff]  }
  0xaa   :  { %492 = vmatpush1.bf16.msra.mxu0 %v4037_v23  ;;  %533 = vmatpush1.bf16.msra.mxu1 %v4039_v24  ;;  %5956 = vst [vmem:[#allocation44_spill] sm:$0xff] %v4143_v63  ;;  %5957 = vst [vmem:[#allocation45_spill] sm:$0xff] %v4145_v27  ;;  %v4147_v29 = vld [vmem:[#allocation14 + $0xc8] ss:$16 sps:$4 sm:$0xff]   ;;  %v4153_v35 = vld [vmem:[#allocation14 + $0xe4] ss:$16 sps:$4 sm:$0xff]  }
  0xab   :  { %493 = vmatprep.subr.bf16.mxu0 %v4043_v25  ;;  %534 = vmatprep.subr.bf16.mxu1 %v4045_v26  ;;  %5958 = vst [vmem:[#allocation46_spill] sm:$0xff] %v4147_v29  ;;  %5959 = vst [vmem:[#allocation47_spill] sm:$0xff] %v4153_v35  ;;  %v4155_v38 = vld [vmem:[#allocation14 + $0xec] ss:$16 sps:$4 sm:$0xff]   ;;  %v4159_v0 = vld [vmem:[#allocation14 + $0xe8] ss:$16 sps:$4 sm:$0xff]  }
  0xac   :  { %5960 = vst [vmem:[#allocation48_spill] sm:$0xff] %v4155_v38  ;;  %5962 = vst [vmem:[#allocation50_spill] sm:$0xff] %v4159_v0  ;;  %s3820_s7 = smov [#allocation20]  }
  0xad   :  { %s2776_s27 = sshll.u32 %s3820_s7, 4  ;;  %s2777_s27 = int_to_ptr.vmem [resolvable:$true] %s2776_s27 }
  0xae   :  { %494 = vmatpush1.bf16.msra.mxu0 %v4047_v28  ;;  %535 = vmatpush1.bf16.msra.mxu1 %v4051_v30  ;;  %s3768_s2 = scalar_lea.vmem %s2777_s27, 128  ;;  %p3773_p9 = scmp.lt.s32.totalorder %s2777_s27, %s2777_s27 }
  0xaf   :  { %495 = vmatprep.subr.bf16.mxu0 %v4053_v31  ;;  %536 = vmatprep.subr.bf16.mxu1 %v4057_v32  ;;  %p3769_p8 = scmp.ne.s32.totalorder %s2777_s27, %s3768_s2  ;;  %p3774_p10 = scmp.lt.s32.totalorder %s3768_s2, %s3768_s2 }
  0xb1   :  { %p3775_p11 = por %p3774_p10, %p3773_p9 }
  0xb2   :  { %496 = vmatpush1.bf16.msra.mxu0 %v4059_v33  ;;  %537 = vmatpush1.bf16.msra.mxu1 %v4061_v34 }
  0xb3   :  { %913 = vmatprep.subr.bf16.mxu0 %v4065_v36  ;;  %954 = vmatprep.subr.bf16.mxu1 %v4069_v37  ;;  %p3776_p12 = pnand %p3775_p11, %p3769_p8 }
  0xb5   :  { %514 = vmatmul.mubr.bf16.vlgmr.msra.gmra.mrb[0].mxu0 %v3817_v45  ;;  %555 = vmatmul.mubr.bf16.vlgmr.msra.gmra.mrb[0].mxu1 %v3817_v45 }
  0xb6   :  { %914 = vmatpush1.bf16.msra.mxu0 %v4071_v39  ;;  %955 = vmatpush1.bf16.msra.mxu1 %v4075_v40 }
  0xb7   :  { %915 = vmatprep.subr.bf16.mxu0 %v4079_v41  ;;  %956 = vmatprep.subr.bf16.mxu1 %v4081_v42 }
  0xb8   :  { %945 = vmatprep.mubr.bf16.mxu0 %v3817_v45  ;;  %986 = vmatprep.mubr.bf16.mxu1 %v3817_v45  ;;  %v4157_v45 = vld [vmem:[#allocation14 + $0xe0] ss:$16 sps:$4 sm:$0xff]  }
  0xb9   :  { %5961 = vst [vmem:[#allocation49_spill] sm:$0xff] %v4157_v45 }
  0xba   :  { %916 = vmatpush1.bf16.msra.mxu0 %v4083_v43  ;;  %957 = vmatpush1.bf16.msra.mxu1 %v4085_v44 }
  0xbb   :  { %917 = vmatprep.subr.bf16.mxu0 %v4087_v46  ;;  %958 = vmatprep.subr.bf16.mxu1 %v4089_v47 }
  0xbe   :  { %918 = vmatpush1.bf16.msra.mxu0 %v4095_v48  ;;  %959 = vmatpush1.bf16.msra.mxu1 %v4097_v49 }
  0xbf   :  { %919 = vmatprep.subr.bf16.mxu0 %v4099_v50  ;;  %960 = vmatprep.subr.bf16.mxu1 %v4101_v51 }
  0xc2   :  { %920 = vmatpush1.bf16.msra.mxu0 %v4107_v52  ;;  %961 = vmatpush1.bf16.msra.mxu1 %v4109_v53 }
  0xc3   :  { %921 = vmatprep.subr.bf16.mxu0 %v4117_v54  ;;  %962 = vmatprep.subr.bf16.mxu1 %v4119_v55 }
  0xc6   :  { %922 = vmatpush1.bf16.msra.mxu0 %v4123_v56  ;;  %963 = vmatpush1.bf16.msra.mxu1 %v4125_v57 }
  0xc7   :  { %923 = vmatprep.subr.bf16.mxu0 %v4129_v58  ;;  %964 = vmatprep.subr.bf16.mxu1 %v4131_v59 }
  0xca   :  { %924 = vmatpush1.bf16.msra.mxu0 %v4133_v60  ;;  %965 = vmatpush1.bf16.msra.mxu1 %v4135_v61  ;;  %v4233_v61 = vld [vmem:[#allocation14 + $0x1c4] ss:$16 sps:$4 sm:$0xff]   ;;  %v4249_v60 = vld [vmem:[#allocation14 + $0x1ec] ss:$16 sps:$4 sm:$0xff]  }
  0xcb   :  { %925 = vmatprep.subr.bf16.mxu0 %v4141_v62  ;;  %966 = vmatprep.subr.bf16.mxu1 %v4143_v63  ;;  %v4165_v63 = vld [vmem:[#allocation14 + $0x104] ss:$16 sps:$4 sm:$0xff]   ;;  %v4171_v62 = vld [vmem:[#allocation14 + $0x108] ss:$16 sps:$4 sm:$0xff]   ;;  %5987 = vst [vmem:[#allocation75_spill] sm:$0xff] %v4233_v61  ;;  %5992 = vst [vmem:[#allocation80_spill] sm:$0xff] %v4249_v60 }
  0xcc   :  { %5963 = vst [vmem:[#allocation51_spill] sm:$0xff] %v4165_v63  ;;  %5966 = vst [vmem:[#allocation54_spill] sm:$0xff] %v4171_v62 }
  0xce   :  { %926 = vmatpush1.bf16.msra.mxu0 %v4145_v27  ;;  %967 = vmatpush1.bf16.msra.mxu1 %v4147_v29  ;;  %v4167_v27 = vld [vmem:[#allocation14 + $0x10c] ss:$16 sps:$4 sm:$0xff]   ;;  %v4169_v29 = vld [vmem:[#allocation14 + $0x100] ss:$16 sps:$4 sm:$0xff]  }
  0xcf   :  { %927 = vmatprep.subr.bf16.mxu0 %v4153_v35  ;;  %968 = vmatprep.subr.bf16.mxu1 %v4155_v38  ;;  %5964 = vst [vmem:[#allocation52_spill] sm:$0xff] %v4167_v27  ;;  %5965 = vst [vmem:[#allocation53_spill] sm:$0xff] %v4169_v29  ;;  %v4177_v38 = vld [vmem:[#allocation14 + $0x124] ss:$16 sps:$4 sm:$0xff]   ;;  %v4183_v35 = vld [vmem:[#allocation14 + $0x128] ss:$16 sps:$4 sm:$0xff]  }
  0xd0   :  { %5967 = vst [vmem:[#allocation55_spill] sm:$0xff] %v4177_v38  ;;  %5970 = vst [vmem:[#allocation58_spill] sm:$0xff] %v4183_v35 }
  0xd2   :  { %928 = vmatpush1.bf16.msra.mxu0 %v4157_v45  ;;  %969 = vmatpush1.bf16.msra.mxu1 %v4159_v0  ;;  %v4179_v45 = vld [vmem:[#allocation14 + $0x12c] ss:$16 sps:$4 sm:$0xff]   ;;  %v4181_v0 = vld [vmem:[#allocation14 + $0x120] ss:$16 sps:$4 sm:$0xff]  }
  0xd3   :  { %929 = vmatprep.subr.bf16.mxu0 %v4165_v63  ;;  %970 = vmatprep.subr.bf16.mxu1 %v4167_v27  ;;  %5968 = vst [vmem:[#allocation56_spill] sm:$0xff] %v4179_v45  ;;  %5969 = vst [vmem:[#allocation57_spill] sm:$0xff] %v4181_v0  ;;  %v4189_v27 = vld [vmem:[#allocation14 + $0x144] ss:$16 sps:$4 sm:$0xff]   ;;  %v4195_v63 = vld [vmem:[#allocation14 + $0x148] ss:$16 sps:$4 sm:$0xff]  }
  0xd4   :  { %5971 = vst [vmem:[#allocation59_spill] sm:$0xff] %v4189_v27  ;;  %5974 = vst [vmem:[#allocation62_spill] sm:$0xff] %v4195_v63 }
  0xd6   :  { %930 = vmatpush1.bf16.msra.mxu0 %v4169_v29  ;;  %971 = vmatpush1.bf16.msra.mxu1 %v4171_v62  ;;  %v4191_v29 = vld [vmem:[#allocation14 + $0x14c] ss:$16 sps:$4 sm:$0xff]   ;;  %v4193_v62 = vld [vmem:[#allocation14 + $0x140] ss:$16 sps:$4 sm:$0xff]  }
  0xd7   :  { %931 = vmatprep.subr.bf16.mxu0 %v4177_v38  ;;  %972 = vmatprep.subr.bf16.mxu1 %v4179_v45  ;;  %5972 = vst [vmem:[#allocation60_spill] sm:$0xff] %v4191_v29  ;;  %5973 = vst [vmem:[#allocation61_spill] sm:$0xff] %v4193_v62  ;;  %v4201_v45 = vld [vmem:[#allocation14 + $0x164] ss:$16 sps:$4 sm:$0xff]   ;;  %v4207_v38 = vld [vmem:[#allocation14 + $0x168] ss:$16 sps:$4 sm:$0xff]  }
  0xd8   :  { %5975 = vst [vmem:[#allocation63_spill] sm:$0xff] %v4201_v45  ;;  %5978 = vst [vmem:[#allocation66_spill] sm:$0xff] %v4207_v38 }
  0xda   :  { %932 = vmatpush1.bf16.msra.mxu0 %v4181_v0  ;;  %973 = vmatpush1.bf16.msra.mxu1 %v4183_v35  ;;  %v4203_v0 = vld [vmem:[#allocation14 + $0x16c] ss:$16 sps:$4 sm:$0xff]   ;;  %v4205_v35 = vld [vmem:[#allocation14 + $0x160] ss:$16 sps:$4 sm:$0xff]  }
  0xdb   :  { %933 = vmatprep.subr.bf16.mxu0 %v4189_v27  ;;  %974 = vmatprep.subr.bf16.mxu1 %v4191_v29  ;;  %5976 = vst [vmem:[#allocation64_spill] sm:$0xff] %v4203_v0  ;;  %5977 = vst [vmem:[#allocation65_spill] sm:$0xff] %v4205_v35  ;;  %v4213_v29 = vld [vmem:[#allocation14 + $0x184] ss:$16 sps:$4 sm:$0xff]   ;;  %v4219_v27 = vld [vmem:[#allocation14 + $0x188] ss:$16 sps:$4 sm:$0xff]  }
  0xdc   :  { %5979 = vst [vmem:[#allocation67_spill] sm:$0xff] %v4213_v29  ;;  %5982 = vst [vmem:[#allocation70_spill] sm:$0xff] %v4219_v27 }
  0xde   :  { %934 = vmatpush1.bf16.msra.mxu0 %v4193_v62  ;;  %975 = vmatpush1.bf16.msra.mxu1 %v4195_v63  ;;  %v4215_v62 = vld [vmem:[#allocation14 + $0x18c] ss:$16 sps:$4 sm:$0xff]   ;;  %v4217_v63 = vld [vmem:[#allocation14 + $0x180] ss:$16 sps:$4 sm:$0xff]  }
  0xdf   :  { %935 = vmatprep.subr.bf16.mxu0 %v4201_v45  ;;  %976 = vmatprep.subr.bf16.mxu1 %v4203_v0  ;;  %5980 = vst [vmem:[#allocation68_spill] sm:$0xff] %v4215_v62  ;;  %5981 = vst [vmem:[#allocation69_spill] sm:$0xff] %v4217_v63  ;;  %v4224_v45 = vld [vmem:[#allocation14 + $0x1a4] ss:$16 sps:$4 sm:$0xff]   ;;  %v4226_v0 = vld [vmem:[#allocation14 + $0x1ac] ss:$16 sps:$4 sm:$0xff]  }
  0xe0   :  { %5983 = vst [vmem:[#allocation71_spill] sm:$0xff] %v4224_v45  ;;  %5984 = vst [vmem:[#allocation72_spill] sm:$0xff] %v4226_v0 }
  0xe2   :  { %936 = vmatpush1.bf16.msra.mxu0 %v4205_v35  ;;  %977 = vmatpush1.bf16.msra.mxu1 %v4207_v38  ;;  %v4228_v35 = vld [vmem:[#allocation14 + $0x1a0] ss:$16 sps:$4 sm:$0xff]   ;;  %v4231_v38 = vld [vmem:[#allocation14 + $0x1a8] ss:$16 sps:$4 sm:$0xff]  }
  0xe3   :  { %937 = vmatprep.subr.bf16.mxu0 %v4213_v29  ;;  %978 = vmatprep.subr.bf16.mxu1 %v4215_v62  ;;  %5985 = vst [vmem:[#allocation73_spill] sm:$0xff] %v4228_v35  ;;  %5986 = vst [vmem:[#allocation74_spill] sm:$0xff] %v4231_v38  ;;  %v4237_v29 = vld [vmem:[#allocation14 + $0x1cc] ss:$16 sps:$4 sm:$0xff]   ;;  %v4244_v62 = vld [vmem:[#allocation14 + $0x1c8] ss:$16 sps:$4 sm:$0xff]  }
  0xe4   :  { %5988 = vst [vmem:[#allocation76_spill] sm:$0xff] %v4237_v29  ;;  %5990 = vst [vmem:[#allocation78_spill] sm:$0xff] %v4244_v62 }
  0xe6   :  { %938 = vmatpush1.bf16.msra.mxu0 %v4217_v63  ;;  %979 = vmatpush1.bf16.msra.mxu1 %v4219_v27  ;;  %v4240_v63 = vld [vmem:[#allocation14 + $0x1c0] ss:$16 sps:$4 sm:$0xff]   ;;  %v4246_v27 = vld [vmem:[#allocation14 + $0x1e4] ss:$16 sps:$4 sm:$0xff]  }
  0xe7   :  { %939 = vmatprep.subr.bf16.mxu0 %v4224_v45  ;;  %980 = vmatprep.subr.bf16.mxu1 %v4226_v0  ;;  %5989 = vst [vmem:[#allocation77_spill] sm:$0xff] %v4240_v63  ;;  %5991 = vst [vmem:[#allocation79_spill] sm:$0xff] %v4246_v27  ;;  %v4252_v0 = vld [vmem:[#allocation14 + $0x1e0] ss:$16 sps:$4 sm:$0xff]  }
  0xe8   :  { %5993 = vst [vmem:[#allocation81_spill] sm:$0xff] %v4252_v0 }
  0xea   :  { %940 = vmatpush1.bf16.msra.mxu0 %v4228_v35  ;;  %981 = vmatpush1.bf16.msra.mxu1 %v4231_v38  ;;  %v4256_v35 = vld [vmem:[#allocation14 + $0x1e8] ss:$16 sps:$4 sm:$0xff]  }
  0xeb   :  { %941 = vmatprep.subr.bf16.mxu0 %v4233_v61  ;;  %982 = vmatprep.subr.bf16.mxu1 %v4237_v29  ;;  %5994 = vst [vmem:[#allocation82_spill] sm:$0xff] %v4256_v35  ;;  %v238_v29 = vlaneseq }
  0xee   :  { %942 = vmatpush1.bf16.msra.mxu0 %v4240_v63  ;;  %983 = vmatpush1.bf16.msra.mxu1 %v4244_v62  ;;  %v239_v63 = vshrl.u32 %v238_v29, 7  ;;  %v280_v62 = vld [vmem:[#allocation9] sm:$0xf] }
  0xef   :  { %943 = vmatprep.subr.bf16.mxu0 %v4246_v27  ;;  %984 = vmatprep.subr.bf16.mxu1 %v4249_v60 }
  0xf0   :  { %v4263_v61 = vsub.s32 0, %v239_v63  ;;  %v4265_v38 = vsub.s32 1, %v239_v63  ;;  %v4286_v57 = vsub.s32 2, %v239_v63 }
  0xf2   :  { %944 = vmatpush1.bf16.msra.mxu0 %v4252_v0  ;;  %985 = vmatpush1.bf16.msra.mxu1 %v4256_v35  ;;  %5995 = vst [vmem:[#allocation83_spill] sm:$0xff] %v4263_v61  ;;  %5996 = vst [vmem:[#allocation84_spill] sm:$0xff] %v4265_v38  ;;  %v4268_v27 = vrot.slane %v280_v62, %v4263_v61  ;;  %v4271_v60 = vrot.slane %v280_v62, %v4265_v38  ;;  %v236_v0 = vld [vmem:[#allocation12] sm:$0xf]  ;;  %v4273_v35 = vsub.s32 3, %v239_v63 }
  0xf3   :  { %1034 = vmatprep.subr.bf16.mxu0 %v3973_v1  ;;  %1075 = vmatprep.subr.bf16.mxu1 %v3975_v2  ;;  %v4276_v1 = vrot.slane %v236_v0, %v4263_v61  ;;  %v4280_v2 = vrot.slane %v236_v0, %v4265_v38  ;;  %v4295_v38 = vrot.slane %v280_v62, %v4286_v57 }
  0xf4   :  { %5997 = vst [vmem:[#allocation85_spill] sm:$0xff] %v4268_v27  ;;  %5998 = vst [vmem:[#allocation86_spill] sm:$0xff] %v4271_v60  ;;  %v4284_v58 = vrot.slane %v280_v62, %v4273_v35  ;;  %v4291_v61 = vrot.slane %v236_v0, %v4273_v35 }
  0xf5   :  { %5999 = vst [vmem:[#allocation87_spill] sm:$0xff] %v4273_v35  ;;  %6000 = vst [vmem:[#allocation88_spill] sm:$0xff] %v4276_v1  ;;  %v4299_v35 = vrot.slane %v236_v0, %v4286_v57 }
  0xf6   :  { %6001 = vst [vmem:[#allocation89_spill] sm:$0xff] %v4280_v2  ;;  %6002 = vst [vmem:[#allocation90_spill] sm:$0xff] %v4284_v58 }
 0x117   :  { %v310_v45 = vpop.permute.xlu0 %309 }
 0x118   :  { %v312_v29 = vmul.f32 %v310_v45, %v4268_v27  ;;  %v313_v59 = vmul.f32 %v310_v45, %v4271_v60  ;;  %v315_v27 = vmul.f32 %v310_v45, %v4284_v58  ;;  %v314_v58 = vmul.f32 %v310_v45, %v4295_v38 }
 0x11a   :  { %v316_v56 = vadd.f32 %v312_v29, %v4276_v1  ;;  %v317_v55 = vadd.f32 %v313_v59, %v4280_v2  ;;  %v319_v2 = vadd.f32 %v315_v27, %v4291_v61 }
 0x188   :  { %v515_v54 = vpop.f32.mrb[0].mxu0  ;;  %v556_v53 = vpop.f32.mrb[0].mxu1 }
 0x189   :  { %v563_v60 = vadd.f32 %v515_v54, %v316_v56  ;;  %v517_v52 = vpop.f32.mrb[1].mxu0  ;;  %v558_v51 = vpop.f32.mrb[1].mxu1  ;;  %v318_v54 = vadd.f32 %v314_v58, %v4299_v35 }
 0x18a   :  { %v564_v50 = vadd.f32 %v517_v52, %v317_v55  ;;  %v519_v63 = vpop.f32.mrb[2].mxu0  ;;  %v560_v49 = vpop.f32.mrb[2].mxu1  ;;  %v566_v62 = vadd.f32 %v558_v51, %v319_v2 }
 0x18b   :  { %v2821_v48 = vmul.f32 -1.442695, %v563_v60  ;;  %v520_v29 = vpop.f32.mrb[3].mxu0  ;;  %v561_v1 = vpop.f32.mrb[3].mxu1  ;;  %v565_v52 = vadd.f32 %v556_v53, %v318_v54  ;;  %v6036_v54 = vld [vmem:[#allocation61_spill] sm:$0xff] }
 0x18c   :  { %v2822_v59 = vmul.f32 -1.442695, %v564_v50  ;;  %v2823_v56 = vmul.f32 -1.442695, %v566_v62  ;;  %v6003_v62 = vmov 0  }
 0x18d   :  { %3144 = vpow2.f32 %v2821_v48 }
 0x18e   :  { %3146 = vpow2.f32 %v2822_v59 }
 0x18f   :  { %3148 = vpow2.f32 %v2823_v56  ;;  %v6037_v56 = vld [vmem:[#allocation62_spill] sm:$0xff] }
 0x190   :  { %3150 = vtanh.f32 %v565_v52  ;;  %v6038_v52 = vld [vmem:[#allocation63_spill] sm:$0xff] }
 0x197   :  { %v3145_v55 = vpop.eup %3144 }
 0x198   :  { %v3147_v49 = vpop.eup %3146  ;;  %v570_v60 = vadd.f32 1.0, %v3145_v55  ;;  %v6039_v55 = vld [vmem:[#allocation64_spill] sm:$0xff] }
 0x199   :  { %v576_v1 = vadd.f32 1.0, %v3147_v49  ;;  %v3149_v48 = vpop.eup %3148  ;;  %v6040_v49 = vld [vmem:[#allocation65_spill] sm:$0xff] }
 0x19a   :  { %3152 = vrcp.f32 %v570_v60  ;;  %v3151_v50 = vpop.eup %3150  ;;  %v583_v45 = vadd.f32 1.0, %v3149_v48  ;;  %v6041_v60 = vld [vmem:[#allocation66_spill] sm:$0xff]  ;;  %v6043_v48 = vld [vmem:[#allocation68_spill] sm:$0xff] }
 0x19b   :  { %3154 = vrcp.f32 %v576_v1  ;;  %v6042_v1 = vld [vmem:[#allocation67_spill] sm:$0xff] }
 0x19c   :  { %3156 = vrcp.f32 %v583_v45  ;;  %v6048_v45 = vld [vmem:[#allocation73_spill] sm:$0xff] }
 0x1a4   :  { %v3153_v0 = vpop.eup %3152 }
 0x1a5   :  { %v3155_v27 = vpop.eup %3154  ;;  %v587_v63 = vmul.f32 %v3153_v0, %v3151_v50  ;;  %v6044_v50 = vld [vmem:[#allocation69_spill] sm:$0xff]  ;;  %v6045_v0 = vld [vmem:[#allocation70_spill] sm:$0xff] }
 0x1a6   :  { %v586_v29 = vmul.f32 0.0, %v3155_v27  ;;  %v3157_v51 = vpop.eup %3156  ;;  %v6046_v27 = vld [vmem:[#allocation71_spill] sm:$0xff] }
 0x1a8   :  { %v4303_v2 = vadd.f32 %v587_v63, %v586_v29  ;;  %v6047_v63 = vld [vmem:[#allocation72_spill] sm:$0xff]  ;;  %v6049_v29 = vld [vmem:[#allocation74_spill] sm:$0xff] }
 0x1aa   :  { %3158 = vtanh.f32 %v4303_v2 }
 0x1b4   :  { %v3159_v53 = vpop.eup %3158 }
 0x1b5   :  { %v590_v58 = vmul.f32 %v3159_v53, %v3157_v51  ;;  %v6050_v51 = vld [vmem:[#allocation75_spill] sm:$0xff]  ;;  %v6051_v53 = vld [vmem:[#allocation76_spill] sm:$0xff] }
 0x1b7   :  { %v591_v59 = vpack.c.bf16 %v590_v58, %v590_v58  ;;  %v6052_v58 = vld [vmem:[#allocation77_spill] sm:$0xff] }
 0x1b9   :  { %946 = vmatmul.mubr.bf16.vlgmr.msra.gmra.mrb[4].mxu0 %v591_v59  ;;  %987 = vmatmul.mubr.bf16.vlgmr.msra.gmra.mrb[4].mxu1 %v591_v59 }
 0x1ba   :  { %1035 = vmatpush1.bf16.msra.mxu0 %v3978_v3  ;;  %1076 = vmatpush1.bf16.msra.mxu1 %v3980_v4  ;;  %v6004_v3 = vld [vmem:[#allocation29_spill] sm:$0xff]  ;;  %v6005_v4 = vld [vmem:[#allocation30_spill] sm:$0xff] }
 0x1bb   :  { %1036 = vmatprep.subr.bf16.mxu0 %v3983_v5  ;;  %1077 = vmatprep.subr.bf16.mxu1 %v3987_v6  ;;  %v6006_v5 = vld [vmem:[#allocation31_spill] sm:$0xff]  ;;  %v6007_v6 = vld [vmem:[#allocation32_spill] sm:$0xff] }
 0x1bc   :  { %1066 = vmatprep.mubr.bf16.mxu0 %v6003_v62  ;;  %1107 = vmatprep.mubr.bf16.mxu1 %v6003_v62 }
 0x1be   :  { %1037 = vmatpush1.bf16.msra.mxu0 %v3989_v7  ;;  %1078 = vmatpush1.bf16.msra.mxu1 %v3992_v8  ;;  %v6008_v7 = vld [vmem:[#allocation33_spill] sm:$0xff]  ;;  %v6009_v8 = vld [vmem:[#allocation34_spill] sm:$0xff] }
 0x1bf   :  { %1038 = vmatprep.subr.bf16.mxu0 %v3995_v9  ;;  %1079 = vmatprep.subr.bf16.mxu1 %v3997_v10  ;;  %v6010_v9 = vld [vmem:[#allocation35_spill] sm:$0xff]  ;;  %v6011_v10 = vld [vmem:[#allocation36_spill] sm:$0xff] }
 0x1c2   :  { %1039 = vmatpush1.bf16.msra.mxu0 %v3999_v11  ;;  %1080 = vmatpush1.bf16.msra.mxu1 %v4001_v12  ;;  %v6012_v11 = vld [vmem:[#allocation37_spill] sm:$0xff]  ;;  %v6013_v12 = vld [vmem:[#allocation38_spill] sm:$0xff] }
 0x1c3   :  { %1040 = vmatprep.subr.bf16.mxu0 %v4005_v13  ;;  %1081 = vmatprep.subr.bf16.mxu1 %v4009_v14  ;;  %v6014_v13 = vld [vmem:[#allocation39_spill] sm:$0xff]  ;;  %v6015_v14 = vld [vmem:[#allocation40_spill] sm:$0xff] }
 0x1c6   :  { %1041 = vmatpush1.bf16.msra.mxu0 %v4011_v15  ;;  %1082 = vmatpush1.bf16.msra.mxu1 %v4015_v16  ;;  %v6016_v15 = vld [vmem:[#allocation41_spill] sm:$0xff]  ;;  %v6017_v16 = vld [vmem:[#allocation42_spill] sm:$0xff] }
 0x1c7   :  { %1042 = vmatprep.subr.bf16.mxu0 %v4017_v17  ;;  %1083 = vmatprep.subr.bf16.mxu1 %v4021_v18  ;;  %v6018_v17 = vld [vmem:[#allocation43_spill] sm:$0xff]  ;;  %v6019_v18 = vld [vmem:[#allocation44_spill] sm:$0xff] }
 0x1ca   :  { %1043 = vmatpush1.bf16.msra.mxu0 %v4023_v19  ;;  %1084 = vmatpush1.bf16.msra.mxu1 %v4025_v20  ;;  %v6020_v19 = vld [vmem:[#allocation45_spill] sm:$0xff]  ;;  %v6021_v20 = vld [vmem:[#allocation46_spill] sm:$0xff] }
 0x1cb   :  { %1044 = vmatprep.subr.bf16.mxu0 %v4029_v21  ;;  %1085 = vmatprep.subr.bf16.mxu1 %v4033_v22  ;;  %v6022_v21 = vld [vmem:[#allocation47_spill] sm:$0xff]  ;;  %v6023_v22 = vld [vmem:[#allocation48_spill] sm:$0xff] }
 0x1ce   :  { %1045 = vmatpush1.bf16.msra.mxu0 %v4037_v23  ;;  %1086 = vmatpush1.bf16.msra.mxu1 %v4039_v24  ;;  %v6024_v23 = vld [vmem:[#allocation49_spill] sm:$0xff]  ;;  %v6025_v24 = vld [vmem:[#allocation50_spill] sm:$0xff] }
 0x1cf   :  { %1046 = vmatprep.subr.bf16.mxu0 %v4043_v25  ;;  %1087 = vmatprep.subr.bf16.mxu1 %v4045_v26  ;;  %v6026_v25 = vld [vmem:[#allocation51_spill] sm:$0xff]  ;;  %v6027_v26 = vld [vmem:[#allocation52_spill] sm:$0xff] }
 0x1d2   :  { %1047 = vmatpush1.bf16.msra.mxu0 %v4047_v28  ;;  %1088 = vmatpush1.bf16.msra.mxu1 %v4051_v30  ;;  %v6028_v28 = vld [vmem:[#allocation53_spill] sm:$0xff]  ;;  %v6029_v30 = vld [vmem:[#allocation54_spill] sm:$0xff] }
 0x1d3   :  { %1048 = vmatprep.subr.bf16.mxu0 %v4053_v31  ;;  %1089 = vmatprep.subr.bf16.mxu1 %v4057_v32  ;;  %v6030_v31 = vld [vmem:[#allocation55_spill] sm:$0xff]  ;;  %v6031_v32 = vld [vmem:[#allocation56_spill] sm:$0xff] }
 0x1d6   :  { %1049 = vmatpush1.bf16.msra.mxu0 %v4059_v33  ;;  %1090 = vmatpush1.bf16.msra.mxu1 %v4061_v34  ;;  %v6032_v33 = vld [vmem:[#allocation57_spill] sm:$0xff]  ;;  %v6033_v34 = vld [vmem:[#allocation58_spill] sm:$0xff] }
 0x1d7   :  { %1146 = vmatprep.subr.bf16.mxu0 %v4065_v36  ;;  %1187 = vmatprep.subr.bf16.mxu1 %v4069_v37  ;;  %v6034_v36 = vld [vmem:[#allocation59_spill] sm:$0xff]  ;;  %v6035_v37 = vld [vmem:[#allocation60_spill] sm:$0xff] }
 0x1d9   :  { %1067 = vmatmul.mubr.bf16.vlgmr.msra.gmra.mrb[8].mxu0 %v591_v59  ;;  %1108 = vmatmul.mubr.bf16.vlgmr.msra.gmra.mrb[8].mxu1 %v591_v59  ;;  %v6053_v59 = vld [vmem:[#allocation78_spill] sm:$0xff] }
 0x1da   :  { %1147 = vmatpush1.bf16.msra.mxu0 %v4071_v39  ;;  %1188 = vmatpush1.bf16.msra.mxu1 %v4075_v40 }
 0x1db   :  { %1148 = vmatprep.subr.bf16.mxu0 %v4079_v41  ;;  %1189 = vmatprep.subr.bf16.mxu1 %v4081_v42 }
 0x1de   :  { %1149 = vmatpush1.bf16.msra.mxu0 %v4083_v43  ;;  %1190 = vmatpush1.bf16.msra.mxu1 %v4085_v44 }
 0x1df   :  { %1150 = vmatprep.subr.bf16.mxu0 %v4087_v46  ;;  %1191 = vmatprep.subr.bf16.mxu1 %v4089_v47 }
 0x1e2   :  { %1151 = vmatpush1.bf16.msra.mxu0 %v6004_v3  ;;  %1192 = vmatpush1.bf16.msra.mxu1 %v6005_v4 }
 0x1e3   :  { %1152 = vmatprep.subr.bf16.mxu0 %v6006_v5  ;;  %1193 = vmatprep.subr.bf16.mxu1 %v6007_v6 }
 0x1e6   :  { %1153 = vmatpush1.bf16.msra.mxu0 %v6008_v7  ;;  %1194 = vmatpush1.bf16.msra.mxu1 %v6009_v8 }
 0x1e7   :  { %1154 = vmatprep.subr.bf16.mxu0 %v6010_v9  ;;  %1195 = vmatprep.subr.bf16.mxu1 %v6011_v10 }
 0x1ea   :  { %1155 = vmatpush1.bf16.msra.mxu0 %v6012_v11  ;;  %1196 = vmatpush1.bf16.msra.mxu1 %v6013_v12 }
 0x1eb   :  { %1156 = vmatprep.subr.bf16.mxu0 %v6014_v13  ;;  %1197 = vmatprep.subr.bf16.mxu1 %v6015_v14 }
 0x1ee   :  { %1157 = vmatpush1.bf16.msra.mxu0 %v6016_v15  ;;  %1198 = vmatpush1.bf16.msra.mxu1 %v6017_v16 }
 0x1ef   :  { %1158 = vmatprep.subr.bf16.mxu0 %v6018_v17  ;;  %1199 = vmatprep.subr.bf16.mxu1 %v6019_v18 }
 0x1f2   :  { %1159 = vmatpush1.bf16.msra.mxu0 %v6020_v19  ;;  %1200 = vmatpush1.bf16.msra.mxu1 %v6021_v20 }
 0x1f3   :  { %1160 = vmatprep.subr.bf16.mxu0 %v6022_v21  ;;  %1201 = vmatprep.subr.bf16.mxu1 %v6023_v22 }
 0x1f6   :  { %1161 = vmatpush1.bf16.msra.mxu0 %v6024_v23  ;;  %1202 = vmatpush1.bf16.msra.mxu1 %v6025_v24 }
 0x1f7   :  { %1162 = vmatprep.subr.bf16.mxu0 %v6026_v25  ;;  %1203 = vmatprep.subr.bf16.mxu1 %v6027_v26 }
 0x1fa   :  { %1163 = vmatpush1.bf16.msra.mxu0 %v6028_v28  ;;  %1204 = vmatpush1.bf16.msra.mxu1 %v6029_v30 }
 0x1fb   :  { %1164 = vmatprep.subr.bf16.mxu0 %v6030_v31  ;;  %1205 = vmatprep.subr.bf16.mxu1 %v6031_v32 }
 0x1fe   :  { %1165 = vmatpush1.bf16.msra.mxu0 %v6032_v33  ;;  %1206 = vmatpush1.bf16.msra.mxu1 %v6033_v34 }
 0x1ff   :  { %1166 = vmatprep.subr.bf16.mxu0 %v6034_v36  ;;  %1207 = vmatprep.subr.bf16.mxu1 %v6035_v37 }
 0x202   :  { %1167 = vmatpush1.bf16.msra.mxu0 %v6036_v54  ;;  %1208 = vmatpush1.bf16.msra.mxu1 %v6037_v56 }
 0x203   :  { %1168 = vmatprep.subr.bf16.mxu0 %v6038_v52  ;;  %1209 = vmatprep.subr.bf16.mxu1 %v6039_v55 }
 0x206   :  { %1169 = vmatpush1.bf16.msra.mxu0 %v6040_v49  ;;  %1210 = vmatpush1.bf16.msra.mxu1 %v6041_v60 }
 0x207   :  { %1170 = vmatprep.subr.bf16.mxu0 %v6042_v1  ;;  %1211 = vmatprep.subr.bf16.mxu1 %v6043_v48  ;;  %v6054_v48 = vld [vmem:[#allocation79_spill] sm:$0xff] }
 0x208   :  { %v6060_v1 = vld [vmem:[#allocation83_spill] sm:$0xff] }
 0x20a   :  { %1171 = vmatpush1.bf16.msra.mxu0 %v6044_v50  ;;  %1212 = vmatpush1.bf16.msra.mxu1 %v6045_v0  ;;  %v6055_v50 = vld [vmem:[#allocation80_spill] sm:$0xff]  ;;  %v6056_v0 = vld [vmem:[#allocation81_spill] sm:$0xff] }
 0x20b   :  { %1172 = vmatprep.subr.bf16.mxu0 %v6046_v27  ;;  %1213 = vmatprep.subr.bf16.mxu1 %v6047_v63  ;;  %v6057_v27 = vld [vmem:[#allocation82_spill] sm:$0xff]  ;;  %v6058_v63 = vld [vmem:[#allocation27_spill] sm:$0xff] }
 0x20e   :  { %1173 = vmatpush1.bf16.msra.mxu0 %v6048_v45  ;;  %1214 = vmatpush1.bf16.msra.mxu1 %v6049_v29  ;;  %v6059_v45 = vld [vmem:[#allocation28_spill] sm:$0xff]  ;;  %v1253_v29 = vld [vmem:[#allocation6 + $0x10] sm:$0xff] }
 0x20f   :  { %1174 = vmatprep.subr.bf16.mxu0 %v6050_v51  ;;  %1215 = vmatprep.subr.bf16.mxu1 %v6051_v53  ;;  %v1486_v51 = vld [vmem:[#allocation6 + $0x18] sm:$0xff]  ;;  %v1952_v53 = vld [vmem:[#allocation6 + $0x28] sm:$0xff] }
 0x210   :  { %1256 = vperm.xlu1 %2991, %v1253_v29  }
 0x212   :  { %1175 = vmatpush1.bf16.msra.mxu0 %v6052_v58  ;;  %1216 = vmatpush1.bf16.msra.mxu1 %v6053_v59  ;;  %v258_v58 = vld [vmem:[#allocation15] sm:$0xf]  ;;  %v2418_v59 = vld [vmem:[#allocation6 + $0x38] sm:$0xff] }
 0x213   :  { %1176 = vmatprep.subr.bf16.mxu0 %v6054_v48  ;;  %1217 = vmatprep.subr.bf16.mxu1 %v6055_v50  ;;  %v4405_v48 = vrot.slane %v258_v58, %v6060_v1  ;;  %v6062_v50 = vld [vmem:[#allocation84_spill] sm:$0xff]  ;;  %v6064_v1 = vld [vmem:[#allocation87_spill] sm:$0xff] }
 0x214   :  { %1489 = vperm.xlu1 %2991, %v1486_v51   ;;  %v4408_v60 = vrot.slane %v258_v58, %v6062_v50  ;;  %v4413_v37 = vrot.slane %v258_v58, %v6064_v1  ;;  %v6068_v1 = vld [vmem:[#allocation86_spill] sm:$0xff] }
 0x215   :  { %6061 = vst [vmem:[#allocation29_spill] sm:$0xff] %v4405_v48 }
 0x216   :  { %1177 = vmatpush1.bf16.msra.mxu0 %v6056_v0  ;;  %1218 = vmatpush1.bf16.msra.mxu1 %v6057_v27  ;;  %6063 = vst [vmem:[#allocation30_spill] sm:$0xff] %v4408_v60  ;;  %6065 = vst [vmem:[#allocation31_spill] sm:$0xff] %v4413_v37 }
 0x217   :  { %1267 = vmatprep.subr.bf16.mxu0 %v6058_v63  ;;  %1308 = vmatprep.subr.bf16.mxu1 %v6059_v45 }
 0x218   :  { %1955 = vperm.xlu1 %2991, %v1952_v53  }
 0x21c   :  { %2421 = vperm.xlu1 %2991, %v2418_v59   ;;  %v4417_v59 = vrot.slane %v258_v58, %v4286_v57 }
 0x21e   :  { %6066 = vst [vmem:[#allocation32_spill] sm:$0xff] %v4417_v59 }
 0x28c   :  { %v947_v27 = vpop.f32.mrb[4].mxu0  ;;  %v988_v0 = vpop.f32.mrb[4].mxu1 }
 0x28d   :  { %v948_v63 = vadd.f32 %v947_v27, %v4405_v48  ;;  %v949_v45 = vpop.f32.mrb[5].mxu0  ;;  %v990_v49 = vpop.f32.mrb[5].mxu1  ;;  %v989_v48 = vadd.f32 %v988_v0, %v4417_v59  ;;  %v6069_v59 = vld [vmem:[#allocation88_spill] sm:$0xff] }
 0x28e   :  { %v950_v29 = vadd.f32 %v949_v45, %v4408_v60  ;;  %v951_v51 = vpop.f32.mrb[6].mxu0  ;;  %v992_v55 = vpop.f32.mrb[6].mxu1  ;;  %v991_v50 = vadd.f32 %v990_v49, %v4413_v37 }
 0x28f   :  { %v2888_v52 = vmul.f32 -1.442695, %v948_v63  ;;  %v952_v53 = vpop.f32.mrb[7].mxu0  ;;  %v993_v56 = vpop.f32.mrb[7].mxu1 }
 0x290   :  { %v2889_v54 = vmul.f32 -1.442695, %v950_v29  ;;  %v2890_v27 = vmul.f32 -1.442695, %v991_v50  ;;  %v1024_v29 = vpop.permute.xlu0 %1023 }
 0x291   :  { %3160 = vpow2.f32 %v2888_v52  ;;  %v1027_v57 = vmul.f32 %v1024_v29, %v6068_v1  ;;  %v6071_v1 = vld [vmem:[#allocation90_spill] sm:$0xff] }
 0x292   :  { %3162 = vpow2.f32 %v2889_v54  ;;  %v6067_v54 = vld [vmem:[#allocation85_spill] sm:$0xff]  ;;  %v1029_v33 = vmul.f32 %v1024_v29, %v6071_v1 }
 0x293   :  { %3164 = vpow2.f32 %v2890_v27  ;;  %v1026_v53 = vmul.f32 %v1024_v29, %v6067_v54 }
 0x294   :  { %3166 = vtanh.f32 %v989_v48 }
 0x295   :  { %v1030_v60 = vadd.f32 %v1026_v53, %v6069_v59 }
 0x29b   :  { %v3161_v45 = vpop.eup %3160 }
 0x29c   :  { %v3163_v51 = vpop.eup %3162  ;;  %v998_v55 = vadd.f32 1.0, %v3161_v45 }
 0x29d   :  { %v1004_v56 = vadd.f32 1.0, %v3163_v51  ;;  %v3165_v63 = vpop.eup %3164  ;;  %v6070_v51 = vld [vmem:[#allocation89_spill] sm:$0xff] }
 0x29e   :  { %3168 = vrcp.f32 %v998_v55  ;;  %v3167_v52 = vpop.eup %3166  ;;  %v1011_v37 = vadd.f32 1.0, %v3165_v63  ;;  %v1031_v55 = vadd.f32 %v1027_v57, %v6070_v51 }
 0x29f   :  { %3170 = vrcp.f32 %v1004_v56 }
 0x2a0   :  { %3172 = vrcp.f32 %v1011_v37  ;;  %v1028_v37 = vmul.f32 %v1024_v29, %v4295_v38 }
 0x2a8   :  { %v3169_v49 = vpop.eup %3168 }
 0x2a9   :  { %v3171_v58 = vpop.eup %3170  ;;  %v1015_v50 = vmul.f32 %v3169_v49, %v3167_v52 }
 0x2aa   :  { %v1014_v0 = vmul.f32 0.0, %v3171_v58  ;;  %v3173_v57 = vpop.eup %3172 }
 0x2ac   :  { %v4423_v45 = vadd.f32 %v1015_v50, %v1014_v0  ;;  %v1068_v48 = vpop.f32.mrb[8].mxu0  ;;  %v1109_v27 = vpop.f32.mrb[8].mxu1  ;;  %v1033_v0 = vadd.f32 %v1029_v33, %v4291_v61 }
 0x2ad   :  { %v1116_v56 = vadd.f32 %v1068_v48, %v1030_v60  ;;  %v1070_v36 = vpop.f32.mrb[9].mxu0  ;;  %v1111_v34 = vpop.f32.mrb[9].mxu1  ;;  %v1032_v48 = vadd.f32 %v1028_v37, %v4299_v35 }
 0x2ae   :  { %3174 = vtanh.f32 %v4423_v45  ;;  %v1117_v54 = vadd.f32 %v1070_v36, %v1031_v55  ;;  %v1072_v52 = vpop.f32.mrb[10].mxu0  ;;  %v1113_v63 = vpop.f32.mrb[10].mxu1  ;;  %v1119_v60 = vadd.f32 %v1111_v34, %v1033_v0 }
 0x2af   :  { %v2891_v49 = vmul.f32 -1.442695, %v1116_v56  ;;  %v1073_v58 = vpop.f32.mrb[11].mxu0  ;;  %v1114_v53 = vpop.f32.mrb[11].mxu1  ;;  %v1118_v55 = vadd.f32 %v1109_v27, %v1032_v48  ;;  %v4442_v48 = vld [vmem:[#allocation11 + $0x8] ss:$16 sps:$4 sm:$0xff]  }
 0x2b0   :  { %v2892_v50 = vmul.f32 -1.442695, %v1117_v54  ;;  %v2893_v36 = vmul.f32 -1.442695, %v1119_v60 }
 0x2b1   :  { %3176 = vpow2.f32 %v2891_v49 }
 0x2b2   :  { %3178 = vpow2.f32 %v2892_v50 }
 0x2b3   :  { %3180 = vpow2.f32 %v2893_v36  ;;  %v4448_v36 = vld [vmem:[#allocation11 + $0x2c] ss:$16 sps:$4 sm:$0xff]  }
 0x2b4   :  { %3182 = vtanh.f32 %v1118_v55  ;;  %v4453_v55 = vld [vmem:[#allocation11 + $0x20] ss:$16 sps:$4 sm:$0xff]  }
 0x2b8   :  { %v3175_v51 = vpop.eup %3174 }
 0x2b9   :  { %v1018_v1 = vmul.f32 %v3175_v51, %v3173_v57  ;;  %v4439_v57 = vld [vmem:[#allocation11] ss:$16 sps:$4 sm:$0xff]  }
 0x2bb   :  { %v3177_v52 = vpop.eup %3176  ;;  %v1145_v63 = vpack.c.bf16 %v1018_v1, %v1018_v1 }
 0x2bc   :  { %v3179_v56 = vpop.eup %3178  ;;  %v1123_v58 = vadd.f32 1.0, %v3177_v52  ;;  %v4456_v52 = vld [vmem:[#allocation11 + $0x28] ss:$16 sps:$4 sm:$0xff]  }
 0x2bd   :  { %v1129_v54 = vadd.f32 1.0, %v3179_v56  ;;  %1178 = vmatprep.mubr.bf16.mxu0 %v1145_v63  ;;  %1219 = vmatprep.mubr.bf16.mxu1 %v1145_v63  ;;  %v3181_v33 = vpop.eup %3180  ;;  %v4459_v63 = vld [vmem:[#allocation11 + $0x44] ss:$16 sps:$4 sm:$0xff]   ;;  %v4462_v56 = vld [vmem:[#allocation11 + $0x4c] ss:$16 sps:$4 sm:$0xff]  }
 0x2be   :  { %3184 = vrcp.f32 %v1123_v58  ;;  %v3183_v34 = vpop.eup %3182  ;;  %v1136_v50 = vadd.f32 1.0, %v3181_v33  ;;  %v4465_v58 = vld [vmem:[#allocation11 + $0x40] ss:$16 sps:$4 sm:$0xff]   ;;  %v4471_v33 = vld [vmem:[#allocation11 + $0x64] ss:$16 sps:$4 sm:$0xff]  }
 0x2bf   :  { %3186 = vrcp.f32 %v1129_v54  ;;  %v4468_v54 = vld [vmem:[#allocation11 + $0x48] ss:$16 sps:$4 sm:$0xff]  }
 0x2c0   :  { %3188 = vrcp.f32 %v1136_v50  ;;  %v4486_v50 = vld [vmem:[#allocation11 + $0x8c] ss:$16 sps:$4 sm:$0xff]  }
 0x2c1   :  { %6073 = vst [vmem:[#allocation34_spill] sm:$0xff] %v4486_v50 }
 0x2c8   :  { %v3185_v29 = vpop.eup %3184 }
 0x2c9   :  { %v3187_v49 = vpop.eup %3186  ;;  %v1140_v53 = vmul.f32 %v3185_v29, %v3183_v34  ;;  %v4474_v34 = vld [vmem:[#allocation11 + $0x6c] ss:$16 sps:$4 sm:$0xff]   ;;  %v4477_v29 = vld [vmem:[#allocation11 + $0x60] ss:$16 sps:$4 sm:$0xff]  }
 0x2ca   :  { %v1139_v27 = vmul.f32 %v3187_v49, %v4303_v2  ;;  %v3189_v1 = vpop.eup %3188  ;;  %v4445_v2 = vld [vmem:[#allocation11 + $0x24] ss:$16 sps:$4 sm:$0xff]   ;;  %v4480_v49 = vld [vmem:[#allocation11 + $0x68] ss:$16 sps:$4 sm:$0xff]  }
 0x2cc   :  { %v4432_v51 = vadd.f32 %v1140_v53, %v1139_v27  ;;  %v4483_v53 = vld [vmem:[#allocation11 + $0x84] ss:$16 sps:$4 sm:$0xff]   ;;  %v4489_v27 = vld [vmem:[#allocation11 + $0x80] ss:$16 sps:$4 sm:$0xff]  }
 0x2cd   :  { %6072 = vst [vmem:[#allocation33_spill] sm:$0xff] %v4483_v53  ;;  %6074 = vst [vmem:[#allocation35_spill] sm:$0xff] %v4489_v27 }
 0x2ce   :  { %3190 = vtanh.f32 %v4432_v51 }
 0x2d8   :  { %v3191_v0 = vpop.eup %3190 }
 0x2d9   :  { %v1143_v37 = vmul.f32 %v3191_v0, %v3189_v1  ;;  %v4492_v1 = vld [vmem:[#allocation11 + $0x88] ss:$16 sps:$4 sm:$0xff]   ;;  %v4495_v0 = vld [vmem:[#allocation11 + $0xa4] ss:$16 sps:$4 sm:$0xff]  }
 0x2da   :  { %6075 = vst [vmem:[#allocation36_spill] sm:$0xff] %v4492_v1  ;;  %6076 = vst [vmem:[#allocation37_spill] sm:$0xff] %v4495_v0 }
 0x2db   :  { %v4435_v60 = vpack.c.bf16 %v1143_v37, %v1143_v37  ;;  %v4498_v37 = vld [vmem:[#allocation11 + $0xac] ss:$16 sps:$4 sm:$0xff]  }
 0x2dc   :  { %6077 = vst [vmem:[#allocation38_spill] sm:$0xff] %v4498_v37 }
 0x2dd   :  { %1179 = vmatmul.mubr.bf16.vlgmr.msra.gmra.mrb[12].mxu0 %v4435_v60  ;;  %1220 = vmatmul.mubr.bf16.vlgmr.msra.gmra.mrb[12].mxu1 %v4435_v60 }
 0x2de   :  { %1268 = vmatpush1.bf16.msra.mxu0 %v4439_v57  ;;  %1309 = vmatpush1.bf16.msra.mxu1 %v4442_v48 }
 0x2df   :  { %1269 = vmatprep.subr.bf16.mxu0 %v4445_v2  ;;  %1310 = vmatprep.subr.bf16.mxu1 %v4448_v36 }
 0x2e0   :  { %1299 = vmatprep.mubr.bf16.mxu0 %v6003_v62  ;;  %1340 = vmatprep.mubr.bf16.mxu1 %v6003_v62 }
 0x2e2   :  { %1270 = vmatpush1.bf16.msra.mxu0 %v4453_v55  ;;  %1311 = vmatpush1.bf16.msra.mxu1 %v4456_v52 }
 0x2e3   :  { %1271 = vmatprep.subr.bf16.mxu0 %v4459_v63  ;;  %1312 = vmatprep.subr.bf16.mxu1 %v4462_v56 }
 0x2e6   :  { %1272 = vmatpush1.bf16.msra.mxu0 %v4465_v58  ;;  %1313 = vmatpush1.bf16.msra.mxu1 %v4468_v54 }
 0x2e7   :  { %1273 = vmatprep.subr.bf16.mxu0 %v4471_v33  ;;  %1314 = vmatprep.subr.bf16.mxu1 %v4474_v34 }
 0x2ea   :  { %1274 = vmatpush1.bf16.msra.mxu0 %v4477_v29  ;;  %1315 = vmatpush1.bf16.msra.mxu1 %v4480_v49 }
 0x2eb   :  { %1275 = vmatprep.subr.bf16.mxu0 %v4483_v53  ;;  %1316 = vmatprep.subr.bf16.mxu1 %v4486_v50  ;;  %v4501_v53 = vld [vmem:[#allocation11 + $0xa0] ss:$16 sps:$4 sm:$0xff]   ;;  %v4504_v50 = vld [vmem:[#allocation11 + $0xa8] ss:$16 sps:$4 sm:$0xff]  }
 0x2ec   :  { %6078 = vst [vmem:[#allocation39_spill] sm:$0xff] %v4501_v53  ;;  %6079 = vst [vmem:[#allocation40_spill] sm:$0xff] %v4504_v50 }
 0x2ee   :  { %1276 = vmatpush1.bf16.msra.mxu0 %v4489_v27  ;;  %1317 = vmatpush1.bf16.msra.mxu1 %v4492_v1  ;;  %v4507_v27 = vld [vmem:[#allocation11 + $0xc4] ss:$16 sps:$4 sm:$0xff]   ;;  %v4510_v1 = vld [vmem:[#allocation11 + $0xcc] ss:$16 sps:$4 sm:$0xff]  }
 0x2ef   :  { %1277 = vmatprep.subr.bf16.mxu0 %v4495_v0  ;;  %1318 = vmatprep.subr.bf16.mxu1 %v4498_v37  ;;  %6080 = vst [vmem:[#allocation41_spill] sm:$0xff] %v4507_v27  ;;  %6081 = vst [vmem:[#allocation42_spill] sm:$0xff] %v4510_v1  ;;  %v4513_v0 = vld [vmem:[#allocation11 + $0xc0] ss:$16 sps:$4 sm:$0xff]   ;;  %v4516_v37 = vld [vmem:[#allocation11 + $0xc8] ss:$16 sps:$4 sm:$0xff]  }
 0x2f0   :  { %6082 = vst [vmem:[#allocation43_spill] sm:$0xff] %v4513_v0  ;;  %6083 = vst [vmem:[#allocation44_spill] sm:$0xff] %v4516_v37 }
 0x2f2   :  { %1278 = vmatpush1.bf16.msra.mxu0 %v4501_v53  ;;  %1319 = vmatpush1.bf16.msra.mxu1 %v4504_v50  ;;  %v4519_v53 = vld [vmem:[#allocation11 + $0xe4] ss:$16 sps:$4 sm:$0xff]   ;;  %v4522_v50 = vld [vmem:[#allocation11 + $0xec] ss:$16 sps:$4 sm:$0xff]  }
 0x2f3   :  { %1279 = vmatprep.subr.bf16.mxu0 %v4507_v27  ;;  %1320 = vmatprep.subr.bf16.mxu1 %v4510_v1  ;;  %v4525_v27 = vld [vmem:[#allocation11 + $0xe0] ss:$16 sps:$4 sm:$0xff]   ;;  %v4528_v1 = vld [vmem:[#allocation11 + $0xe8] ss:$16 sps:$4 sm:$0xff]  }
 0x2f6   :  { %1280 = vmatpush1.bf16.msra.mxu0 %v4513_v0  ;;  %1321 = vmatpush1.bf16.msra.mxu1 %v4516_v37  ;;  %v4531_v0 = vld [vmem:[#allocation14 + $0x4] ss:$16 sps:$4 sm:$0xff]   ;;  %v4534_v37 = vld [vmem:[#allocation14 + $0xc] ss:$16 sps:$4 sm:$0xff]  }
 0x2f7   :  { %1281 = vmatprep.subr.bf16.mxu0 %v4519_v53  ;;  %1322 = vmatprep.subr.bf16.mxu1 %v4522_v50 }
 0x2fa   :  { %1282 = vmatpush1.bf16.msra.mxu0 %v4525_v27  ;;  %1323 = vmatpush1.bf16.msra.mxu1 %v4528_v1 }
 0x2fb   :  { %1379 = vmatprep.subr.bf16.mxu0 %v4531_v0  ;;  %1420 = vmatprep.subr.bf16.mxu1 %v4534_v37 }
 0x2fd   :  { %1300 = vmatmul.mubr.bf16.vlgmr.msra.gmra.mrb[16].mxu0 %v4435_v60  ;;  %1341 = vmatmul.mubr.bf16.vlgmr.msra.gmra.mrb[16].mxu1 %v4435_v60 }
 0x2fe   :  { %1380 = vmatpush1.bf16.msra.mxu0 %v4071_v39  ;;  %1421 = vmatpush1.bf16.msra.mxu1 %v4075_v40  ;;  %v6084_v39 = vld [vmem:[#allocation57_spill] sm:$0xff]  ;;  %v6085_v40 = vld [vmem:[#allocation58_spill] sm:$0xff] }
 0x2ff   :  { %1381 = vmatprep.subr.bf16.mxu0 %v4079_v41  ;;  %1422 = vmatprep.subr.bf16.mxu1 %v4081_v42  ;;  %v6086_v41 = vld [vmem:[#allocation59_spill] sm:$0xff]  ;;  %v6087_v42 = vld [vmem:[#allocation60_spill] sm:$0xff] }
 0x302   :  { %1382 = vmatpush1.bf16.msra.mxu0 %v4083_v43  ;;  %1423 = vmatpush1.bf16.msra.mxu1 %v4085_v44  ;;  %v6088_v43 = vld [vmem:[#allocation61_spill] sm:$0xff]  ;;  %v6089_v44 = vld [vmem:[#allocation62_spill] sm:$0xff] }
 0x303   :  { %1383 = vmatprep.subr.bf16.mxu0 %v4087_v46  ;;  %1424 = vmatprep.subr.bf16.mxu1 %v4089_v47  ;;  %v6090_v46 = vld [vmem:[#allocation63_spill] sm:$0xff]  ;;  %v6091_v47 = vld [vmem:[#allocation64_spill] sm:$0xff] }
 0x306   :  { %1384 = vmatpush1.bf16.msra.mxu0 %v6004_v3  ;;  %1425 = vmatpush1.bf16.msra.mxu1 %v6005_v4  ;;  %v6092_v3 = vld [vmem:[#allocation65_spill] sm:$0xff]  ;;  %v6093_v4 = vld [vmem:[#allocation66_spill] sm:$0xff] }
 0x307   :  { %1385 = vmatprep.subr.bf16.mxu0 %v6006_v5  ;;  %1426 = vmatprep.subr.bf16.mxu1 %v6007_v6  ;;  %v6094_v5 = vld [vmem:[#allocation67_spill] sm:$0xff]  ;;  %v6095_v6 = vld [vmem:[#allocation68_spill] sm:$0xff] }
 0x30a   :  { %1386 = vmatpush1.bf16.msra.mxu0 %v6008_v7  ;;  %1427 = vmatpush1.bf16.msra.mxu1 %v6009_v8  ;;  %v6096_v7 = vld [vmem:[#allocation69_spill] sm:$0xff]  ;;  %v6097_v8 = vld [vmem:[#allocation70_spill] sm:$0xff] }
 0x30b   :  { %1387 = vmatprep.subr.bf16.mxu0 %v6010_v9  ;;  %1428 = vmatprep.subr.bf16.mxu1 %v6011_v10  ;;  %v6098_v9 = vld [vmem:[#allocation71_spill] sm:$0xff]  ;;  %v6099_v10 = vld [vmem:[#allocation72_spill] sm:$0xff] }
 0x30e   :  { %1388 = vmatpush1.bf16.msra.mxu0 %v6012_v11  ;;  %1429 = vmatpush1.bf16.msra.mxu1 %v6013_v12  ;;  %v6100_v11 = vld [vmem:[#allocation73_spill] sm:$0xff]  ;;  %v6101_v12 = vld [vmem:[#allocation74_spill] sm:$0xff] }
 0x30f   :  { %1389 = vmatprep.subr.bf16.mxu0 %v6014_v13  ;;  %1430 = vmatprep.subr.bf16.mxu1 %v6015_v14  ;;  %v6102_v13 = vld [vmem:[#allocation75_spill] sm:$0xff]  ;;  %v6103_v14 = vld [vmem:[#allocation76_spill] sm:$0xff] }
 0x312   :  { %1390 = vmatpush1.bf16.msra.mxu0 %v6016_v15  ;;  %1431 = vmatpush1.bf16.msra.mxu1 %v6017_v16  ;;  %v6104_v15 = vld [vmem:[#allocation77_spill] sm:$0xff]  ;;  %v6105_v16 = vld [vmem:[#allocation78_spill] sm:$0xff] }
 0x313   :  { %1391 = vmatprep.subr.bf16.mxu0 %v6018_v17  ;;  %1432 = vmatprep.subr.bf16.mxu1 %v6019_v18  ;;  %v6106_v17 = vld [vmem:[#allocation79_spill] sm:$0xff]  ;;  %v6107_v18 = vld [vmem:[#allocation80_spill] sm:$0xff] }
 0x316   :  { %1392 = vmatpush1.bf16.msra.mxu0 %v6020_v19  ;;  %1433 = vmatpush1.bf16.msra.mxu1 %v6021_v20  ;;  %v6108_v19 = vld [vmem:[#allocation81_spill] sm:$0xff]  ;;  %v6109_v20 = vld [vmem:[#allocation82_spill] sm:$0xff] }
 0x317   :  { %1393 = vmatprep.subr.bf16.mxu0 %v6022_v21  ;;  %1434 = vmatprep.subr.bf16.mxu1 %v6023_v22  ;;  %v4601_v21 = vld [vmem:[#allocation11 + $0x4] ss:$16 sps:$4 sm:$0xff]   ;;  %v4604_v22 = vld [vmem:[#allocation11 + $0xc] ss:$16 sps:$4 sm:$0xff]  }
 0x318   :  { %6110 = vst [vmem:[#allocation45_spill] sm:$0xff] %v4601_v21  ;;  %6111 = vst [vmem:[#allocation46_spill] sm:$0xff] %v4604_v22 }
 0x31a   :  { %1394 = vmatpush1.bf16.msra.mxu0 %v6024_v23  ;;  %1435 = vmatpush1.bf16.msra.mxu1 %v6025_v24 }
 0x31b   :  { %1395 = vmatprep.subr.bf16.mxu0 %v6026_v25  ;;  %1436 = vmatprep.subr.bf16.mxu1 %v6027_v26  ;;  %v6112_v25 = vld [vmem:[#allocation29_spill] sm:$0xff] }
 0x31e   :  { %1396 = vmatpush1.bf16.msra.mxu0 %v6028_v28  ;;  %1437 = vmatpush1.bf16.msra.mxu1 %v6029_v30 }
 0x31f   :  { %1397 = vmatprep.subr.bf16.mxu0 %v6030_v31  ;;  %1438 = vmatprep.subr.bf16.mxu1 %v6031_v32  ;;  %v6113_v31 = vld [vmem:[#allocation30_spill] sm:$0xff] }
 0x322   :  { %1398 = vmatpush1.bf16.msra.mxu0 %v6084_v39  ;;  %1439 = vmatpush1.bf16.msra.mxu1 %v6085_v40 }
 0x323   :  { %1399 = vmatprep.subr.bf16.mxu0 %v6086_v41  ;;  %1440 = vmatprep.subr.bf16.mxu1 %v6087_v42 }
 0x326   :  { %1400 = vmatpush1.bf16.msra.mxu0 %v6088_v43  ;;  %1441 = vmatpush1.bf16.msra.mxu1 %v6089_v44  ;;  %v6114_v44 = vld [vmem:[#allocation31_spill] sm:$0xff] }
 0x327   :  { %1401 = vmatprep.subr.bf16.mxu0 %v6090_v46  ;;  %1442 = vmatprep.subr.bf16.mxu1 %v6091_v47 }
 0x32a   :  { %1402 = vmatpush1.bf16.msra.mxu0 %v6092_v3  ;;  %1443 = vmatpush1.bf16.msra.mxu1 %v6093_v4  ;;  %v6115_v3 = vld [vmem:[#allocation32_spill] sm:$0xff] }
 0x32b   :  { %1403 = vmatprep.subr.bf16.mxu0 %v6094_v5  ;;  %1444 = vmatprep.subr.bf16.mxu1 %v6095_v6 }
 0x32e   :  { %1404 = vmatpush1.bf16.msra.mxu0 %v6096_v7  ;;  %1445 = vmatpush1.bf16.msra.mxu1 %v6097_v8 }
 0x32f   :  { %1405 = vmatprep.subr.bf16.mxu0 %v6098_v9  ;;  %1446 = vmatprep.subr.bf16.mxu1 %v6099_v10  ;;  %v1257_v9 = vpop.permute.xlu1 %1256  ;;  %v6116_v10 = vld [vmem:[#allocation85_spill] sm:$0xff] }
 0x332   :  { %1406 = vmatpush1.bf16.msra.mxu0 %v6100_v11  ;;  %1447 = vmatpush1.bf16.msra.mxu1 %v6101_v12  ;;  %v1259_v11 = vmul.f32 %v1257_v9, %v6116_v10 }
 0x333   :  { %1407 = vmatprep.subr.bf16.mxu0 %v6102_v13  ;;  %1448 = vmatprep.subr.bf16.mxu1 %v6103_v14  ;;  %v6117_v13 = vld [vmem:[#allocation86_spill] sm:$0xff] }
 0x334   :  { %v1260_v14 = vmul.f32 %v1257_v9, %v6117_v13 }
 0x336   :  { %1408 = vmatpush1.bf16.msra.mxu0 %v6104_v15  ;;  %1449 = vmatpush1.bf16.msra.mxu1 %v6105_v16 }
 0x337   :  { %1409 = vmatprep.subr.bf16.mxu0 %v6106_v17  ;;  %1450 = vmatprep.subr.bf16.mxu1 %v6107_v18 }
 0x33a   :  { %1410 = vmatpush1.bf16.msra.mxu0 %v6108_v19  ;;  %1451 = vmatpush1.bf16.msra.mxu1 %v6109_v20  ;;  %v1263_v20 = vadd.f32 %v1259_v11, %v6069_v59 }
 0x33b   :  { %1500 = vmatprep.subr.bf16.mxu0 %v4601_v21  ;;  %1541 = vmatprep.subr.bf16.mxu1 %v4604_v22 }
 0x3b0   :  { %v1180_v23 = vpop.f32.mrb[12].mxu0  ;;  %v1221_v24 = vpop.f32.mrb[12].mxu1 }
 0x3b1   :  { %v1181_v26 = vadd.f32 %v1180_v23, %v6112_v25  ;;  %v1182_v28 = vpop.f32.mrb[13].mxu0  ;;  %v1223_v30 = vpop.f32.mrb[13].mxu1  ;;  %v1222_v4 = vadd.f32 %v1221_v24, %v6115_v3  ;;  %v6118_v24 = vld [vmem:[#allocation89_spill] sm:$0xff] }
 0x3b2   :  { %v1183_v32 = vadd.f32 %v1182_v28, %v6113_v31  ;;  %v1184_v60 = vpop.f32.mrb[14].mxu0  ;;  %v1225_v39 = vpop.f32.mrb[14].mxu1  ;;  %v1224_v46 = vadd.f32 %v1223_v30, %v6114_v44 }
 0x3b3   :  { %v2894_v40 = vmul.f32 -1.442695, %v1181_v26  ;;  %v1185_v41 = vpop.f32.mrb[15].mxu0  ;;  %v1226_v42 = vpop.f32.mrb[15].mxu1  ;;  %v1264_v26 = vadd.f32 %v1260_v14, %v6118_v24 }
 0x3b4   :  { %v2895_v43 = vmul.f32 -1.442695, %v1183_v32  ;;  %v2896_v47 = vmul.f32 -1.442695, %v1224_v46  ;;  %v6119_v32 = vld [vmem:[#allocation90_spill] sm:$0xff] }
 0x3b5   :  { %3192 = vpow2.f32 %v2894_v40  ;;  %v1262_v60 = vmul.f32 %v1257_v9, %v6119_v32 }
 0x3b6   :  { %3194 = vpow2.f32 %v2895_v43 }
 0x3b7   :  { %3196 = vpow2.f32 %v2896_v47 }
 0x3b8   :  { %3198 = vtanh.f32 %v1222_v4 }
 0x3bf   :  { %v3193_v5 = vpop.eup %3192 }
 0x3c0   :  { %v3195_v6 = vpop.eup %3194  ;;  %v1231_v7 = vadd.f32 1.0, %v3193_v5 }
 0x3c1   :  { %v1237_v8 = vadd.f32 1.0, %v3195_v6  ;;  %v3197_v12 = vpop.eup %3196 }
 0x3c2   :  { %3200 = vrcp.f32 %v1231_v7  ;;  %v3199_v15 = vpop.eup %3198  ;;  %v1244_v19 = vadd.f32 1.0, %v3197_v12  ;;  %v1266_v7 = vadd.f32 %v1262_v60, %v4291_v61 }
 0x3c3   :  { %3202 = vrcp.f32 %v1237_v8  ;;  %v1261_v8 = vmul.f32 %v1257_v9, %v4295_v38 }
 0x3c4   :  { %3204 = vrcp.f32 %v1244_v19 }
 0x3c5   :  { %v1265_v12 = vadd.f32 %v1261_v8, %v4299_v35  ;;  %v6123_v8 = vld [vmem:[#allocation36_spill] sm:$0xff] }
 0x3cc   :  { %v3201_v16 = vpop.eup %3200 }
 0x3cd   :  { %v3203_v17 = vpop.eup %3202  ;;  %v1248_v18 = vmul.f32 %v3201_v16, %v3199_v15 }
 0x3ce   :  { %v1247_v23 = vmul.f32 %v3203_v17, %v4423_v45  ;;  %v3205_v14 = vpop.eup %3204 }
 0x3d0   :  { %v1301_v28 = vpop.f32.mrb[16].mxu0  ;;  %v1342_v30 = vpop.f32.mrb[16].mxu1  ;;  %v4617_v39 = vadd.f32 %v1248_v18, %v1247_v23 }
 0x3d1   :  { %v1349_v40 = vadd.f32 %v1301_v28, %v1263_v20  ;;  %v1303_v41 = vpop.f32.mrb[17].mxu0  ;;  %v1344_v42 = vpop.f32.mrb[17].mxu1  ;;  %v1351_v17 = vadd.f32 %v1342_v30, %v1265_v12  ;;  %v6125_v12 = vld [vmem:[#allocation38_spill] sm:$0xff] }
 0x3d2   :  { %v1350_v43 = vadd.f32 %v1303_v41, %v1264_v26  ;;  %v1305_v46 = vpop.f32.mrb[18].mxu0  ;;  %v1346_v47 = vpop.f32.mrb[18].mxu1  ;;  %3206 = vtanh.f32 %v4617_v39  ;;  %v1352_v11 = vadd.f32 %v1344_v42, %v1266_v7  ;;  %v6122_v7 = vld [vmem:[#allocation35_spill] sm:$0xff] }
 0x3d3   :  { %v2897_v4 = vmul.f32 -1.442695, %v1349_v40  ;;  %v1306_v5 = vpop.f32.mrb[19].mxu0  ;;  %v1347_v45 = vpop.f32.mrb[19].mxu1 }
 0x3d4   :  { %v2898_v6 = vmul.f32 -1.442695, %v1350_v43  ;;  %v2899_v16 = vmul.f32 -1.442695, %v1352_v11  ;;  %v6124_v11 = vld [vmem:[#allocation37_spill] sm:$0xff] }
 0x3d5   :  { %3208 = vpow2.f32 %v2897_v4 }
 0x3d6   :  { %3210 = vpow2.f32 %v2898_v6  ;;  %v6121_v6 = vld [vmem:[#allocation34_spill] sm:$0xff] }
 0x3d7   :  { %3212 = vpow2.f32 %v2899_v16  ;;  %v6128_v16 = vld [vmem:[#allocation41_spill] sm:$0xff] }
 0x3d8   :  { %3214 = vtanh.f32 %v1351_v17  ;;  %v6129_v17 = vld [vmem:[#allocation42_spill] sm:$0xff] }
 0x3dc   :  { %v3207_v15 = vpop.eup %3206 }
 0x3dd   :  { %v1251_v18 = vmul.f32 %v3207_v15, %v3205_v14  ;;  %v6126_v14 = vld [vmem:[#allocation39_spill] sm:$0xff]  ;;  %v6127_v15 = vld [vmem:[#allocation40_spill] sm:$0xff] }
 0x3df   :  { %v3209_v19 = vpop.eup %3208  ;;  %v1378_v20 = vpack.c.bf16 %v1251_v18, %v1251_v18  ;;  %v6130_v18 = vld [vmem:[#allocation43_spill] sm:$0xff] }
 0x3e0   :  { %v3211_v23 = vpop.eup %3210  ;;  %v1356_v26 = vadd.f32 1.0, %v3209_v19  ;;  %v6131_v19 = vld [vmem:[#allocation44_spill] sm:$0xff] }
 0x3e1   :  { %v1362_v28 = vadd.f32 1.0, %v3211_v23  ;;  %1411 = vmatprep.mubr.bf16.mxu0 %v1378_v20  ;;  %1452 = vmatprep.mubr.bf16.mxu1 %v1378_v20  ;;  %v3213_v9 = vpop.eup %3212  ;;  %v4661_v20 = vld [vmem:[#allocation14] ss:$16 sps:$4 sm:$0xff]   ;;  %v4664_v23 = vld [vmem:[#allocation14 + $0x8] ss:$16 sps:$4 sm:$0xff]  }
 0x3e2   :  { %3216 = vrcp.f32 %v1356_v26  ;;  %v3215_v60 = vpop.eup %3214  ;;  %v1369_v43 = vadd.f32 1.0, %v3213_v9  ;;  %6132 = vst [vmem:[#allocation47_spill] sm:$0xff] %v4661_v20  ;;  %6133 = vst [vmem:[#allocation48_spill] sm:$0xff] %v4664_v23  ;;  %v4667_v26 = vld [vmem:[#allocation14 + $0x24] ss:$16 sps:$4 sm:$0xff]  }
 0x3e3   :  { %3218 = vrcp.f32 %v1362_v28  ;;  %6134 = vst [vmem:[#allocation49_spill] sm:$0xff] %v4667_v26  ;;  %v4670_v28 = vld [vmem:[#allocation14 + $0x2c] ss:$16 sps:$4 sm:$0xff]   ;;  %v4673_v9 = vld [vmem:[#allocation14 + $0x20] ss:$16 sps:$4 sm:$0xff]  }
 0x3e4   :  { %3220 = vrcp.f32 %v1369_v43  ;;  %6135 = vst [vmem:[#allocation50_spill] sm:$0xff] %v4670_v28  ;;  %6136 = vst [vmem:[#allocation51_spill] sm:$0xff] %v4673_v9  ;;  %v4688_v43 = vld [vmem:[#allocation14 + $0x48] ss:$16 sps:$4 sm:$0xff]  }
 0x3e5   :  { %6141 = vst [vmem:[#allocation56_spill] sm:$0xff] %v4688_v43 }
 0x3ec   :  { %v3217_v40 = vpop.eup %3216 }
 0x3ed   :  { %v3219_v41 = vpop.eup %3218  ;;  %v1373_v42 = vmul.f32 %v3217_v40, %v3215_v60  ;;  %v4676_v60 = vld [vmem:[#allocation14 + $0x28] ss:$16 sps:$4 sm:$0xff]   ;;  %v4679_v40 = vld [vmem:[#allocation14 + $0x44] ss:$16 sps:$4 sm:$0xff]  }
 0x3ee   :  { %v1372_v30 = vmul.f32 %v3219_v41, %v4432_v51  ;;  %v3221_v47 = vpop.eup %3220  ;;  %v6120_v51 = vld [vmem:[#allocation33_spill] sm:$0xff]  ;;  %6137 = vst [vmem:[#allocation52_spill] sm:$0xff] %v4676_v60  ;;  %6138 = vst [vmem:[#allocation53_spill] sm:$0xff] %v4679_v40 }
 0x3ef   :  { %v4682_v41 = vld [vmem:[#allocation14 + $0x4c] ss:$16 sps:$4 sm:$0xff]  }
 0x3f0   :  { %v4624_v46 = vadd.f32 %v1373_v42, %v1372_v30  ;;  %6139 = vst [vmem:[#allocation54_spill] sm:$0xff] %v4682_v41  ;;  %v4685_v42 = vld [vmem:[#allocation14 + $0x40] ss:$16 sps:$4 sm:$0xff]   ;;  %v4691_v30 = vld [vmem:[#allocation14 + $0x64] ss:$16 sps:$4 sm:$0xff]  }
 0x3f1   :  { %6140 = vst [vmem:[#allocation55_spill] sm:$0xff] %v4685_v42  ;;  %6142 = vst [vmem:[#allocation27_spill] sm:$0xff] %v4691_v30 }
 0x3f2   :  { %3222 = vtanh.f32 %v4624_v46 }
 0x3fc   :  { %v3223_v4 = vpop.eup %3222 }
 0x3fd   :  { %v1376_v5 = vmul.f32 %v3223_v4, %v3221_v47  ;;  %v4694_v47 = vld [vmem:[#allocation14 + $0x6c] ss:$16 sps:$4 sm:$0xff]   ;;  %v4697_v4 = vld [vmem:[#allocation14 + $0x60] ss:$16 sps:$4 sm:$0xff]  }
 0x3fe   :  { %6143 = vst [vmem:[#allocation28_spill] sm:$0xff] %v4694_v47  ;;  %6144 = vst [vmem:[#allocation83_spill] sm:$0xff] %v4697_v4 }
 0x3ff   :  { %v1377_v45 = vpack.c.bf16 %v1376_v5, %v1376_v5  ;;  %v4700_v5 = vld [vmem:[#allocation14 + $0x68] ss:$16 sps:$4 sm:$0xff]  }
 0x400   :  { %6145 = vst [vmem:[#allocation84_spill] sm:$0xff] %v4700_v5 }
 0x401   :  { %1412 = vmatmul.mubr.bf16.vlgmr.msra.gmra.mrb[20].mxu0 %v1377_v45  ;;  %1453 = vmatmul.mubr.bf16.vlgmr.msra.gmra.mrb[20].mxu1 %v1377_v45 }
 0x402   :  { %1501 = vmatpush1.bf16.msra.mxu0 %v4439_v57  ;;  %1542 = vmatpush1.bf16.msra.mxu1 %v4442_v48 }
 0x403   :  { %1502 = vmatprep.subr.bf16.mxu0 %v4445_v2  ;;  %1543 = vmatprep.subr.bf16.mxu1 %v4448_v36 }
 0x404   :  { %1532 = vmatprep.mubr.bf16.mxu0 %v6003_v62  ;;  %1573 = vmatprep.mubr.bf16.mxu1 %v6003_v62 }
 0x406   :  { %1503 = vmatpush1.bf16.msra.mxu0 %v4453_v55  ;;  %1544 = vmatpush1.bf16.msra.mxu1 %v4456_v52 }
 0x407   :  { %1504 = vmatprep.subr.bf16.mxu0 %v4459_v63  ;;  %1545 = vmatprep.subr.bf16.mxu1 %v4462_v56 }
 0x40a   :  { %1505 = vmatpush1.bf16.msra.mxu0 %v4465_v58  ;;  %1546 = vmatpush1.bf16.msra.mxu1 %v4468_v54 }
 0x40b   :  { %1506 = vmatprep.subr.bf16.mxu0 %v4471_v33  ;;  %1547 = vmatprep.subr.bf16.mxu1 %v4474_v34 }
 0x40e   :  { %1507 = vmatpush1.bf16.msra.mxu0 %v4477_v29  ;;  %1548 = vmatpush1.bf16.msra.mxu1 %v4480_v49 }
 0x40f   :  { %1508 = vmatprep.subr.bf16.mxu0 %v6120_v51  ;;  %1549 = vmatprep.subr.bf16.mxu1 %v6121_v6 }
 0x412   :  { %1509 = vmatpush1.bf16.msra.mxu0 %v6122_v7  ;;  %1550 = vmatpush1.bf16.msra.mxu1 %v6123_v8 }
 0x413   :  { %1510 = vmatprep.subr.bf16.mxu0 %v6124_v11  ;;  %1551 = vmatprep.subr.bf16.mxu1 %v6125_v12 }
 0x416   :  { %1511 = vmatpush1.bf16.msra.mxu0 %v6126_v14  ;;  %1552 = vmatpush1.bf16.msra.mxu1 %v6127_v15 }
 0x417   :  { %1512 = vmatprep.subr.bf16.mxu0 %v6128_v16  ;;  %1553 = vmatprep.subr.bf16.mxu1 %v6129_v17 }
 0x41a   :  { %1513 = vmatpush1.bf16.msra.mxu0 %v6130_v18  ;;  %1554 = vmatpush1.bf16.msra.mxu1 %v6131_v19 }
 0x41b   :  { %1514 = vmatprep.subr.bf16.mxu0 %v4519_v53  ;;  %1555 = vmatprep.subr.bf16.mxu1 %v4522_v50 }
 0x41e   :  { %1515 = vmatpush1.bf16.msra.mxu0 %v4525_v27  ;;  %1556 = vmatpush1.bf16.msra.mxu1 %v4528_v1 }
 0x41f   :  { %1612 = vmatprep.subr.bf16.mxu0 %v4531_v0  ;;  %1653 = vmatprep.subr.bf16.mxu1 %v4534_v37 }
 0x421   :  { %1533 = vmatmul.mubr.bf16.vlgmr.msra.gmra.mrb[24].mxu0 %v1377_v45  ;;  %1574 = vmatmul.mubr.bf16.vlgmr.msra.gmra.mrb[24].mxu1 %v1377_v45  ;;  %v4703_v45 = vld [vmem:[#allocation14 + $0x84] ss:$16 sps:$4 sm:$0xff]  }
 0x422   :  { %1613 = vmatpush1.bf16.msra.mxu0 %v4661_v20  ;;  %1654 = vmatpush1.bf16.msra.mxu1 %v4664_v23  ;;  %6146 = vst [vmem:[#allocation87_spill] sm:$0xff] %v4703_v45 }
 0x423   :  { %1614 = vmatprep.subr.bf16.mxu0 %v4667_v26  ;;  %1655 = vmatprep.subr.bf16.mxu1 %v4670_v28 }
 0x426   :  { %1615 = vmatpush1.bf16.msra.mxu0 %v4673_v9  ;;  %1656 = vmatpush1.bf16.msra.mxu1 %v4676_v60 }
 0x427   :  { %1616 = vmatprep.subr.bf16.mxu0 %v4679_v40  ;;  %1657 = vmatprep.subr.bf16.mxu1 %v4682_v41 }
 0x42a   :  { %1617 = vmatpush1.bf16.msra.mxu0 %v4685_v42  ;;  %1658 = vmatpush1.bf16.msra.mxu1 %v4688_v43  ;;  %v4706_v43 = vld [vmem:[#allocation14 + $0x8c] ss:$16 sps:$4 sm:$0xff]  }
 0x42b   :  { %1618 = vmatprep.subr.bf16.mxu0 %v4691_v30  ;;  %1659 = vmatprep.subr.bf16.mxu1 %v4694_v47  ;;  %6147 = vst [vmem:[#allocation88_spill] sm:$0xff] %v4706_v43  ;;  %v4709_v30 = vld [vmem:[#allocation14 + $0x80] ss:$16 sps:$4 sm:$0xff]   ;;  %v4712_v47 = vld [vmem:[#allocation14 + $0x88] ss:$16 sps:$4 sm:$0xff]  }
 0x42c   :  { %6148 = vst [vmem:[#allocation57_spill] sm:$0xff] %v4709_v30  ;;  %6149 = vst [vmem:[#allocation58_spill] sm:$0xff] %v4712_v47 }
 0x42e   :  { %1619 = vmatpush1.bf16.msra.mxu0 %v4697_v4  ;;  %1660 = vmatpush1.bf16.msra.mxu1 %v4700_v5  ;;  %v4715_v4 = vld [vmem:[#allocation14 + $0xa4] ss:$16 sps:$4 sm:$0xff]   ;;  %v4718_v5 = vld [vmem:[#allocation14 + $0xac] ss:$16 sps:$4 sm:$0xff]  }
 0x42f   :  { %1620 = vmatprep.subr.bf16.mxu0 %v4703_v45  ;;  %1661 = vmatprep.subr.bf16.mxu1 %v4706_v43  ;;  %6150 = vst [vmem:[#allocation59_spill] sm:$0xff] %v4715_v4  ;;  %6151 = vst [vmem:[#allocation60_spill] sm:$0xff] %v4718_v5  ;;  %v4721_v45 = vld [vmem:[#allocation14 + $0xa0] ss:$16 sps:$4 sm:$0xff]   ;;  %v4724_v43 = vld [vmem:[#allocation14 + $0xa8] ss:$16 sps:$4 sm:$0xff]  }
 0x430   :  { %6152 = vst [vmem:[#allocation61_spill] sm:$0xff] %v4721_v45  ;;  %6153 = vst [vmem:[#allocation62_spill] sm:$0xff] %v4724_v43 }
 0x432   :  { %1621 = vmatpush1.bf16.msra.mxu0 %v4709_v30  ;;  %1662 = vmatpush1.bf16.msra.mxu1 %v4712_v47  ;;  %v4727_v30 = vld [vmem:[#allocation14 + $0xc4] ss:$16 sps:$4 sm:$0xff]   ;;  %v4730_v47 = vld [vmem:[#allocation14 + $0xcc] ss:$16 sps:$4 sm:$0xff]  }
 0x433   :  { %1622 = vmatprep.subr.bf16.mxu0 %v4715_v4  ;;  %1663 = vmatprep.subr.bf16.mxu1 %v4718_v5  ;;  %6154 = vst [vmem:[#allocation63_spill] sm:$0xff] %v4727_v30  ;;  %6155 = vst [vmem:[#allocation64_spill] sm:$0xff] %v4730_v47  ;;  %v4733_v4 = vld [vmem:[#allocation14 + $0xc0] ss:$16 sps:$4 sm:$0xff]   ;;  %v4736_v5 = vld [vmem:[#allocation14 + $0xc8] ss:$16 sps:$4 sm:$0xff]  }
 0x434   :  { %6156 = vst [vmem:[#allocation65_spill] sm:$0xff] %v4733_v4  ;;  %6157 = vst [vmem:[#allocation66_spill] sm:$0xff] %v4736_v5 }
 0x436   :  { %1623 = vmatpush1.bf16.msra.mxu0 %v4721_v45  ;;  %1664 = vmatpush1.bf16.msra.mxu1 %v4724_v43  ;;  %v4739_v45 = vld [vmem:[#allocation14 + $0xe4] ss:$16 sps:$4 sm:$0xff]   ;;  %v4742_v43 = vld [vmem:[#allocation14 + $0xec] ss:$16 sps:$4 sm:$0xff]  }
 0x437   :  { %1624 = vmatprep.subr.bf16.mxu0 %v4727_v30  ;;  %1665 = vmatprep.subr.bf16.mxu1 %v4730_v47  ;;  %6158 = vst [vmem:[#allocation67_spill] sm:$0xff] %v4739_v45  ;;  %6159 = vst [vmem:[#allocation68_spill] sm:$0xff] %v4742_v43  ;;  %v4745_v30 = vld [vmem:[#allocation14 + $0xe0] ss:$16 sps:$4 sm:$0xff]   ;;  %v4748_v47 = vld [vmem:[#allocation14 + $0xe8] ss:$16 sps:$4 sm:$0xff]  }
 0x438   :  { %6160 = vst [vmem:[#allocation69_spill] sm:$0xff] %v4745_v30  ;;  %6161 = vst [vmem:[#allocation70_spill] sm:$0xff] %v4748_v47 }
 0x43a   :  { %1625 = vmatpush1.bf16.msra.mxu0 %v4733_v4  ;;  %1666 = vmatpush1.bf16.msra.mxu1 %v4736_v5  ;;  %v4751_v4 = vld [vmem:[#allocation14 + $0x104] ss:$16 sps:$4 sm:$0xff]   ;;  %v4754_v5 = vld [vmem:[#allocation14 + $0x10c] ss:$16 sps:$4 sm:$0xff]  }
 0x43b   :  { %1626 = vmatprep.subr.bf16.mxu0 %v4739_v45  ;;  %1667 = vmatprep.subr.bf16.mxu1 %v4742_v43  ;;  %6162 = vst [vmem:[#allocation71_spill] sm:$0xff] %v4751_v4  ;;  %6163 = vst [vmem:[#allocation72_spill] sm:$0xff] %v4754_v5  ;;  %v4757_v45 = vld [vmem:[#allocation14 + $0x100] ss:$16 sps:$4 sm:$0xff]   ;;  %v4760_v43 = vld [vmem:[#allocation14 + $0x108] ss:$16 sps:$4 sm:$0xff]  }
 0x43c   :  { %6164 = vst [vmem:[#allocation73_spill] sm:$0xff] %v4757_v45  ;;  %6165 = vst [vmem:[#allocation74_spill] sm:$0xff] %v4760_v43 }
 0x43e   :  { %1627 = vmatpush1.bf16.msra.mxu0 %v4745_v30  ;;  %1668 = vmatpush1.bf16.msra.mxu1 %v4748_v47  ;;  %v4763_v30 = vld [vmem:[#allocation14 + $0x124] ss:$16 sps:$4 sm:$0xff]   ;;  %v4766_v47 = vld [vmem:[#allocation14 + $0x12c] ss:$16 sps:$4 sm:$0xff]  }
 0x43f   :  { %1628 = vmatprep.subr.bf16.mxu0 %v4751_v4  ;;  %1669 = vmatprep.subr.bf16.mxu1 %v4754_v5  ;;  %6166 = vst [vmem:[#allocation75_spill] sm:$0xff] %v4763_v30  ;;  %6167 = vst [vmem:[#allocation76_spill] sm:$0xff] %v4766_v47  ;;  %v4769_v4 = vld [vmem:[#allocation14 + $0x120] ss:$16 sps:$4 sm:$0xff]   ;;  %v4772_v5 = vld [vmem:[#allocation14 + $0x128] ss:$16 sps:$4 sm:$0xff]  }
 0x440   :  { %6168 = vst [vmem:[#allocation77_spill] sm:$0xff] %v4769_v4  ;;  %6169 = vst [vmem:[#allocation78_spill] sm:$0xff] %v4772_v5 }
 0x442   :  { %1629 = vmatpush1.bf16.msra.mxu0 %v4757_v45  ;;  %1670 = vmatpush1.bf16.msra.mxu1 %v4760_v43  ;;  %v4775_v45 = vld [vmem:[#allocation14 + $0x144] ss:$16 sps:$4 sm:$0xff]   ;;  %v4778_v43 = vld [vmem:[#allocation14 + $0x14c] ss:$16 sps:$4 sm:$0xff]  }
 0x443   :  { %1630 = vmatprep.subr.bf16.mxu0 %v4763_v30  ;;  %1671 = vmatprep.subr.bf16.mxu1 %v4766_v47  ;;  %6170 = vst [vmem:[#allocation79_spill] sm:$0xff] %v4775_v45  ;;  %6171 = vst [vmem:[#allocation80_spill] sm:$0xff] %v4778_v43  ;;  %v4781_v30 = vld [vmem:[#allocation14 + $0x140] ss:$16 sps:$4 sm:$0xff]   ;;  %v4784_v47 = vld [vmem:[#allocation14 + $0x148] ss:$16 sps:$4 sm:$0xff]  }
 0x444   :  { %6172 = vst [vmem:[#allocation81_spill] sm:$0xff] %v4781_v30  ;;  %6173 = vst [vmem:[#allocation82_spill] sm:$0xff] %v4784_v47 }
 0x446   :  { %1631 = vmatpush1.bf16.msra.mxu0 %v4769_v4  ;;  %1672 = vmatpush1.bf16.msra.mxu1 %v4772_v5  ;;  %v4787_v4 = vld [vmem:[#allocation14 + $0x164] ss:$16 sps:$4 sm:$0xff]   ;;  %v4790_v5 = vld [vmem:[#allocation14 + $0x16c] ss:$16 sps:$4 sm:$0xff]  }
 0x447   :  { %1632 = vmatprep.subr.bf16.mxu0 %v4775_v45  ;;  %1673 = vmatprep.subr.bf16.mxu1 %v4778_v43  ;;  %6174 = vst [vmem:[#allocation89_spill] sm:$0xff] %v4787_v4  ;;  %6175 = vst [vmem:[#allocation90_spill] sm:$0xff] %v4790_v5  ;;  %v4793_v45 = vld [vmem:[#allocation14 + $0x160] ss:$16 sps:$4 sm:$0xff]   ;;  %v4796_v43 = vld [vmem:[#allocation14 + $0x168] ss:$16 sps:$4 sm:$0xff]  }
 0x448   :  { %6176 = vst [vmem:[#allocation33_spill] sm:$0xff] %v4793_v45  ;;  %6177 = vst [vmem:[#allocation34_spill] sm:$0xff] %v4796_v43 }
 0x44a   :  { %1633 = vmatpush1.bf16.msra.mxu0 %v4781_v30  ;;  %1674 = vmatpush1.bf16.msra.mxu1 %v4784_v47  ;;  %v4799_v30 = vld [vmem:[#allocation14 + $0x184] ss:$16 sps:$4 sm:$0xff]   ;;  %v4802_v47 = vld [vmem:[#allocation14 + $0x18c] ss:$16 sps:$4 sm:$0xff]  }
 0x44b   :  { %1634 = vmatprep.subr.bf16.mxu0 %v4787_v4  ;;  %1675 = vmatprep.subr.bf16.mxu1 %v4790_v5  ;;  %6178 = vst [vmem:[#allocation35_spill] sm:$0xff] %v4799_v30  ;;  %6179 = vst [vmem:[#allocation36_spill] sm:$0xff] %v4802_v47  ;;  %v4805_v4 = vld [vmem:[#allocation14 + $0x180] ss:$16 sps:$4 sm:$0xff]   ;;  %v4808_v5 = vld [vmem:[#allocation14 + $0x188] ss:$16 sps:$4 sm:$0xff]  }
 0x44c   :  { %6180 = vst [vmem:[#allocation37_spill] sm:$0xff] %v4805_v4  ;;  %6181 = vst [vmem:[#allocation38_spill] sm:$0xff] %v4808_v5 }
 0x44e   :  { %1635 = vmatpush1.bf16.msra.mxu0 %v4793_v45  ;;  %1676 = vmatpush1.bf16.msra.mxu1 %v4796_v43  ;;  %v4811_v45 = vld [vmem:[#allocation14 + $0x1a4] ss:$16 sps:$4 sm:$0xff]   ;;  %v4814_v43 = vld [vmem:[#allocation14 + $0x1ac] ss:$16 sps:$4 sm:$0xff]  }
 0x44f   :  { %1636 = vmatprep.subr.bf16.mxu0 %v4799_v30  ;;  %1677 = vmatprep.subr.bf16.mxu1 %v4802_v47  ;;  %6182 = vst [vmem:[#allocation39_spill] sm:$0xff] %v4811_v45  ;;  %6183 = vst [vmem:[#allocation40_spill] sm:$0xff] %v4814_v43  ;;  %v4817_v30 = vld [vmem:[#allocation14 + $0x1a0] ss:$16 sps:$4 sm:$0xff]   ;;  %v4820_v47 = vld [vmem:[#allocation14 + $0x1a8] ss:$16 sps:$4 sm:$0xff]  }
 0x450   :  { %6184 = vst [vmem:[#allocation41_spill] sm:$0xff] %v4817_v30  ;;  %6185 = vst [vmem:[#allocation42_spill] sm:$0xff] %v4820_v47 }
 0x452   :  { %1637 = vmatpush1.bf16.msra.mxu0 %v4805_v4  ;;  %1678 = vmatpush1.bf16.msra.mxu1 %v4808_v5  ;;  %v4823_v4 = vld [vmem:[#allocation14 + $0x1c4] ss:$16 sps:$4 sm:$0xff]   ;;  %v4826_v5 = vld [vmem:[#allocation14 + $0x1cc] ss:$16 sps:$4 sm:$0xff]  }
 0x453   :  { %1638 = vmatprep.subr.bf16.mxu0 %v4811_v45  ;;  %1679 = vmatprep.subr.bf16.mxu1 %v4814_v43  ;;  %6186 = vst [vmem:[#allocation43_spill] sm:$0xff] %v4823_v4  ;;  %6187 = vst [vmem:[#allocation44_spill] sm:$0xff] %v4826_v5  ;;  %v4829_v45 = vld [vmem:[#allocation14 + $0x1c0] ss:$16 sps:$4 sm:$0xff]   ;;  %v4832_v43 = vld [vmem:[#allocation14 + $0x1c8] ss:$16 sps:$4 sm:$0xff]  }
 0x454   :  { %6188 = vst [vmem:[#allocation91_spill] sm:$0xff] %v4829_v45  ;;  %6189 = vst [vmem:[#allocation92_spill] sm:$0xff] %v4832_v43 }
 0x456   :  { %1639 = vmatpush1.bf16.msra.mxu0 %v4817_v30  ;;  %1680 = vmatpush1.bf16.msra.mxu1 %v4820_v47  ;;  %v4835_v30 = vld [vmem:[#allocation14 + $0x1e4] ss:$16 sps:$4 sm:$0xff]   ;;  %v4838_v47 = vld [vmem:[#allocation14 + $0x1ec] ss:$16 sps:$4 sm:$0xff]  }
 0x457   :  { %1640 = vmatprep.subr.bf16.mxu0 %v4823_v4  ;;  %1681 = vmatprep.subr.bf16.mxu1 %v4826_v5  ;;  %6190 = vst [vmem:[#allocation93_spill] sm:$0xff] %v4835_v30  ;;  %6191 = vst [vmem:[#allocation94_spill] sm:$0xff] %v4838_v47  ;;  %v4841_v4 = vld [vmem:[#allocation14 + $0x1e0] ss:$16 sps:$4 sm:$0xff]   ;;  %v4844_v5 = vld [vmem:[#allocation14 + $0x1e8] ss:$16 sps:$4 sm:$0xff]  }
 0x458   :  { %6192 = vst [vmem:[#allocation95_spill] sm:$0xff] %v4841_v4  ;;  %6193 = vst [vmem:[#allocation96_spill] sm:$0xff] %v4844_v5 }
 0x45a   :  { %1641 = vmatpush1.bf16.msra.mxu0 %v4829_v45  ;;  %1682 = vmatpush1.bf16.msra.mxu1 %v4832_v43 }
 0x45b   :  { %1642 = vmatprep.subr.bf16.mxu0 %v4835_v30  ;;  %1683 = vmatprep.subr.bf16.mxu1 %v4838_v47 }
 0x45e   :  { %1643 = vmatpush1.bf16.msra.mxu0 %v4841_v4  ;;  %1684 = vmatpush1.bf16.msra.mxu1 %v4844_v5 }
 0x45f   :  { %1733 = vmatprep.subr.bf16.mxu0 %v4601_v21  ;;  %1774 = vmatprep.subr.bf16.mxu1 %v4604_v22 }
 0x4d4   :  { %v1413_v43 = vpop.f32.mrb[20].mxu0  ;;  %v1454_v45 = vpop.f32.mrb[20].mxu1 }
 0x4d5   :  { %v1414_v30 = vadd.f32 %v1413_v43, %v6112_v25  ;;  %v1415_v42 = vpop.f32.mrb[21].mxu0  ;;  %v1456_v41 = vpop.f32.mrb[21].mxu1  ;;  %v1455_v22 = vadd.f32 %v1454_v45, %v6115_v3 }
 0x4d6   :  { %v1416_v47 = vadd.f32 %v1415_v42, %v6113_v31  ;;  %v1417_v40 = vpop.f32.mrb[22].mxu0  ;;  %v1458_v60 = vpop.f32.mrb[22].mxu1  ;;  %v1457_v21 = vadd.f32 %v1456_v41, %v6114_v44 }
 0x4d7   :  { %v2900_v9 = vmul.f32 -1.442695, %v1414_v30  ;;  %v1418_v4 = vpop.f32.mrb[23].mxu0  ;;  %v1459_v28 = vpop.f32.mrb[23].mxu1 }
 0x4d8   :  { %v2901_v26 = vmul.f32 -1.442695, %v1416_v47  ;;  %v2902_v5 = vmul.f32 -1.442695, %v1457_v21  ;;  %v1490_v40 = vpop.permute.xlu1 %1489 }
 0x4d9   :  { %3224 = vpow2.f32 %v2900_v9  ;;  %v1492_v28 = vmul.f32 %v1490_v40, %v6116_v10 }
 0x4da   :  { %3226 = vpow2.f32 %v2901_v26  ;;  %v1493_v26 = vmul.f32 %v1490_v40, %v6117_v13  ;;  %v1495_v13 = vmul.f32 %v1490_v40, %v6119_v32 }
 0x4db   :  { %3228 = vpow2.f32 %v2902_v5 }
 0x4dc   :  { %3230 = vtanh.f32 %v1455_v22 }
 0x4e3   :  { %v3225_v23 = vpop.eup %3224 }
 0x4e4   :  { %v3227_v20 = vpop.eup %3226  ;;  %v1464_v43 = vadd.f32 1.0, %v3225_v23  ;;  %v1496_v23 = vadd.f32 %v1492_v28, %v6069_v59 }
 0x4e5   :  { %v1470_v25 = vadd.f32 1.0, %v3227_v20  ;;  %v3229_v60 = vpop.eup %3228  ;;  %v1497_v20 = vadd.f32 %v1493_v26, %v6118_v24  ;;  %v1499_v26 = vadd.f32 %v1495_v13, %v4291_v61 }
 0x4e6   :  { %3232 = vrcp.f32 %v1464_v43  ;;  %v3231_v42 = vpop.eup %3230  ;;  %v1477_v30 = vadd.f32 1.0, %v3229_v60 }
 0x4e7   :  { %3234 = vrcp.f32 %v1470_v25 }
 0x4e8   :  { %3236 = vrcp.f32 %v1477_v30 }
 0x4f0   :  { %v3233_v9 = vpop.eup %3232 }
 0x4f1   :  { %v3235_v41 = vpop.eup %3234  ;;  %v1481_v21 = vmul.f32 %v3233_v9, %v3231_v42 }
 0x4f2   :  { %v1480_v47 = vmul.f32 %v3235_v41, %v4617_v39  ;;  %v1494_v41 = vmul.f32 %v1490_v40, %v4295_v38  ;;  %v3237_v30 = vpop.eup %3236 }
 0x4f4   :  { %v1534_v4 = vpop.f32.mrb[24].mxu0  ;;  %v1575_v22 = vpop.f32.mrb[24].mxu1  ;;  %v4858_v25 = vadd.f32 %v1481_v21, %v1480_v47  ;;  %v1498_v47 = vadd.f32 %v1494_v41, %v4299_v35 }
 0x4f5   :  { %v1582_v5 = vadd.f32 %v1534_v4, %v1496_v23  ;;  %v1536_v45 = vpop.f32.mrb[25].mxu0  ;;  %v1577_v43 = vpop.f32.mrb[25].mxu1 }
 0x4f6   :  { %v1583_v10 = vadd.f32 %v1536_v45, %v1497_v20  ;;  %v1538_v3 = vpop.f32.mrb[26].mxu0  ;;  %v1579_v42 = vpop.f32.mrb[26].mxu1  ;;  %3238 = vtanh.f32 %v4858_v25  ;;  %v1585_v21 = vadd.f32 %v1577_v43, %v1499_v26 }
 0x4f7   :  { %v2903_v39 = vmul.f32 -1.442695, %v1582_v5  ;;  %v1539_v60 = vpop.f32.mrb[27].mxu0  ;;  %v1580_v28 = vpop.f32.mrb[27].mxu1  ;;  %v1584_v3 = vadd.f32 %v1575_v22, %v1498_v47 }
 0x4f8   :  { %v2904_v9 = vmul.f32 -1.442695, %v1583_v10  ;;  %v2905_v4 = vmul.f32 -1.442695, %v1585_v21 }
 0x4f9   :  { %3240 = vpow2.f32 %v2903_v39 }
 0x4fa   :  { %3242 = vpow2.f32 %v2904_v9 }
 0x4fb   :  { %3244 = vpow2.f32 %v2905_v4  ;;  %v6228_v4 = vld [vmem:[#allocation75_spill] sm:$0xff] }
 0x4fc   :  { %3246 = vtanh.f32 %v1584_v3  ;;  %v6229_v3 = vld [vmem:[#allocation76_spill] sm:$0xff] }
 0x500   :  { %v3239_v23 = vpop.eup %3238 }
 0x501   :  { %v1484_v20 = vmul.f32 %v3239_v23, %v3237_v30  ;;  %v6227_v23 = vld [vmem:[#allocation74_spill] sm:$0xff] }
 0x503   :  { %v3241_v45 = vpop.eup %3240  ;;  %v1611_v42 = vpack.c.bf16 %v1484_v20, %v1484_v20  ;;  %v6230_v20 = vld [vmem:[#allocation77_spill] sm:$0xff] }
 0x504   :  { %v3243_v5 = vpop.eup %3242  ;;  %v1589_v60 = vadd.f32 1.0, %v3241_v45  ;;  %v6231_v45 = vld [vmem:[#allocation78_spill] sm:$0xff] }
 0x505   :  { %v1595_v10 = vadd.f32 1.0, %v3243_v5  ;;  %1644 = vmatprep.mubr.bf16.mxu0 %v1611_v42  ;;  %1685 = vmatprep.mubr.bf16.mxu1 %v1611_v42  ;;  %v3245_v13 = vpop.eup %3244  ;;  %v6232_v42 = vld [vmem:[#allocation79_spill] sm:$0xff]  ;;  %v6233_v5 = vld [vmem:[#allocation80_spill] sm:$0xff] }
 0x506   :  { %3248 = vrcp.f32 %v1589_v60  ;;  %v3247_v40 = vpop.eup %3246  ;;  %v1602_v9 = vadd.f32 1.0, %v3245_v13  ;;  %v6234_v60 = vld [vmem:[#allocation81_spill] sm:$0xff] }
 0x507   :  { %3250 = vrcp.f32 %v1595_v10  ;;  %v6235_v10 = vld [vmem:[#allocation82_spill] sm:$0xff]  ;;  %v6236_v13 = vld [vmem:[#allocation89_spill] sm:$0xff] }
 0x508   :  { %3252 = vrcp.f32 %v1602_v9  ;;  %v6241_v9 = vld [vmem:[#allocation36_spill] sm:$0xff] }
 0x510   :  { %v3249_v43 = vpop.eup %3248 }
 0x511   :  { %v3251_v39 = vpop.eup %3250  ;;  %v1606_v28 = vmul.f32 %v3249_v43, %v3247_v40  ;;  %v6237_v40 = vld [vmem:[#allocation90_spill] sm:$0xff]  ;;  %v6238_v43 = vld [vmem:[#allocation33_spill] sm:$0xff] }
 0x512   :  { %v1605_v22 = vmul.f32 %v3251_v39, %v4624_v46  ;;  %v3253_v41 = vpop.eup %3252  ;;  %v6214_v46 = vld [vmem:[#allocation61_spill] sm:$0xff]  ;;  %v6239_v39 = vld [vmem:[#allocation34_spill] sm:$0xff] }
 0x514   :  { %v4866_v26 = vadd.f32 %v1606_v28, %v1605_v22  ;;  %v6240_v28 = vld [vmem:[#allocation35_spill] sm:$0xff]  ;;  %v6242_v22 = vld [vmem:[#allocation37_spill] sm:$0xff] }
 0x516   :  { %3254 = vtanh.f32 %v4866_v26 }
 0x520   :  { %v3255_v21 = vpop.eup %3254 }
 0x521   :  { %v1609_v30 = vmul.f32 %v3255_v21, %v3253_v41  ;;  %v6243_v41 = vld [vmem:[#allocation38_spill] sm:$0xff]  ;;  %v6244_v21 = vld [vmem:[#allocation39_spill] sm:$0xff] }
 0x523   :  { %v1610_v47 = vpack.c.bf16 %v1609_v30, %v1609_v30  ;;  %v6245_v30 = vld [vmem:[#allocation40_spill] sm:$0xff] }
 0x525   :  { %1645 = vmatmul.mubr.bf16.vlgmr.msra.gmra.mrb[28].mxu0 %v1610_v47  ;;  %1686 = vmatmul.mubr.bf16.vlgmr.msra.gmra.mrb[28].mxu1 %v1610_v47 }
 0x526   :  { %1734 = vmatpush1.bf16.msra.mxu0 %v4439_v57  ;;  %1775 = vmatpush1.bf16.msra.mxu1 %v4442_v48  ;;  %v6194_v57 = vld [vmem:[#allocation47_spill] sm:$0xff]  ;;  %v6195_v48 = vld [vmem:[#allocation48_spill] sm:$0xff] }
 0x527   :  { %1735 = vmatprep.subr.bf16.mxu0 %v4445_v2  ;;  %1776 = vmatprep.subr.bf16.mxu1 %v4448_v36  ;;  %v6196_v2 = vld [vmem:[#allocation49_spill] sm:$0xff]  ;;  %v6197_v36 = vld [vmem:[#allocation50_spill] sm:$0xff] }
 0x528   :  { %1765 = vmatprep.mubr.bf16.mxu0 %v6003_v62  ;;  %1806 = vmatprep.mubr.bf16.mxu1 %v6003_v62 }
 0x52a   :  { %1736 = vmatpush1.bf16.msra.mxu0 %v4453_v55  ;;  %1777 = vmatpush1.bf16.msra.mxu1 %v4456_v52  ;;  %v6198_v55 = vld [vmem:[#allocation51_spill] sm:$0xff]  ;;  %v6199_v52 = vld [vmem:[#allocation52_spill] sm:$0xff] }
 0x52b   :  { %1737 = vmatprep.subr.bf16.mxu0 %v4459_v63  ;;  %1778 = vmatprep.subr.bf16.mxu1 %v4462_v56  ;;  %v6200_v63 = vld [vmem:[#allocation53_spill] sm:$0xff]  ;;  %v6201_v56 = vld [vmem:[#allocation54_spill] sm:$0xff] }
 0x52e   :  { %1738 = vmatpush1.bf16.msra.mxu0 %v4465_v58  ;;  %1779 = vmatpush1.bf16.msra.mxu1 %v4468_v54  ;;  %v6202_v58 = vld [vmem:[#allocation55_spill] sm:$0xff]  ;;  %v6203_v54 = vld [vmem:[#allocation56_spill] sm:$0xff] }
 0x52f   :  { %1739 = vmatprep.subr.bf16.mxu0 %v4471_v33  ;;  %1780 = vmatprep.subr.bf16.mxu1 %v4474_v34  ;;  %v6204_v33 = vld [vmem:[#allocation27_spill] sm:$0xff]  ;;  %v6205_v34 = vld [vmem:[#allocation28_spill] sm:$0xff] }
 0x532   :  { %1740 = vmatpush1.bf16.msra.mxu0 %v4477_v29  ;;  %1781 = vmatpush1.bf16.msra.mxu1 %v4480_v49  ;;  %v6206_v29 = vld [vmem:[#allocation83_spill] sm:$0xff]  ;;  %v6207_v49 = vld [vmem:[#allocation84_spill] sm:$0xff] }
 0x533   :  { %1741 = vmatprep.subr.bf16.mxu0 %v6120_v51  ;;  %1782 = vmatprep.subr.bf16.mxu1 %v6121_v6  ;;  %v6215_v51 = vld [vmem:[#allocation62_spill] sm:$0xff]  ;;  %v6216_v6 = vld [vmem:[#allocation63_spill] sm:$0xff] }
 0x536   :  { %1742 = vmatpush1.bf16.msra.mxu0 %v6122_v7  ;;  %1783 = vmatpush1.bf16.msra.mxu1 %v6123_v8  ;;  %v6217_v7 = vld [vmem:[#allocation64_spill] sm:$0xff]  ;;  %v6218_v8 = vld [vmem:[#allocation65_spill] sm:$0xff] }
 0x537   :  { %1743 = vmatprep.subr.bf16.mxu0 %v6124_v11  ;;  %1784 = vmatprep.subr.bf16.mxu1 %v6125_v12  ;;  %v6219_v11 = vld [vmem:[#allocation66_spill] sm:$0xff]  ;;  %v6220_v12 = vld [vmem:[#allocation67_spill] sm:$0xff] }
 0x53a   :  { %1744 = vmatpush1.bf16.msra.mxu0 %v6126_v14  ;;  %1785 = vmatpush1.bf16.msra.mxu1 %v6127_v15  ;;  %v6221_v14 = vld [vmem:[#allocation68_spill] sm:$0xff]  ;;  %v6222_v15 = vld [vmem:[#allocation69_spill] sm:$0xff] }
 0x53b   :  { %1745 = vmatprep.subr.bf16.mxu0 %v6128_v16  ;;  %1786 = vmatprep.subr.bf16.mxu1 %v6129_v17  ;;  %v6223_v16 = vld [vmem:[#allocation70_spill] sm:$0xff]  ;;  %v6224_v17 = vld [vmem:[#allocation71_spill] sm:$0xff] }
 0x53e   :  { %1746 = vmatpush1.bf16.msra.mxu0 %v6130_v18  ;;  %1787 = vmatpush1.bf16.msra.mxu1 %v6131_v19  ;;  %v6225_v18 = vld [vmem:[#allocation72_spill] sm:$0xff]  ;;  %v6226_v19 = vld [vmem:[#allocation73_spill] sm:$0xff] }
 0x53f   :  { %1747 = vmatprep.subr.bf16.mxu0 %v4519_v53  ;;  %1788 = vmatprep.subr.bf16.mxu1 %v4522_v50  ;;  %v6208_v53 = vld [vmem:[#allocation87_spill] sm:$0xff]  ;;  %v6209_v50 = vld [vmem:[#allocation88_spill] sm:$0xff] }
 0x542   :  { %1748 = vmatpush1.bf16.msra.mxu0 %v4525_v27  ;;  %1789 = vmatpush1.bf16.msra.mxu1 %v4528_v1  ;;  %v6210_v27 = vld [vmem:[#allocation57_spill] sm:$0xff]  ;;  %v6211_v1 = vld [vmem:[#allocation58_spill] sm:$0xff] }
 0x543   :  { %1845 = vmatprep.subr.bf16.mxu0 %v4531_v0  ;;  %1886 = vmatprep.subr.bf16.mxu1 %v4534_v37  ;;  %v6212_v0 = vld [vmem:[#allocation59_spill] sm:$0xff]  ;;  %v6213_v37 = vld [vmem:[#allocation60_spill] sm:$0xff] }
 0x545   :  { %1766 = vmatmul.mubr.bf16.vlgmr.msra.gmra.mrb[32].mxu0 %v1610_v47  ;;  %1807 = vmatmul.mubr.bf16.vlgmr.msra.gmra.mrb[32].mxu1 %v1610_v47  ;;  %v6246_v47 = vld [vmem:[#allocation41_spill] sm:$0xff] }
 0x546   :  { %1846 = vmatpush1.bf16.msra.mxu0 %v6194_v57  ;;  %1887 = vmatpush1.bf16.msra.mxu1 %v6195_v48 }
 0x547   :  { %1847 = vmatprep.subr.bf16.mxu0 %v6196_v2  ;;  %1888 = vmatprep.subr.bf16.mxu1 %v6197_v36 }
 0x54a   :  { %1848 = vmatpush1.bf16.msra.mxu0 %v6198_v55  ;;  %1889 = vmatpush1.bf16.msra.mxu1 %v6199_v52 }
 0x54b   :  { %1849 = vmatprep.subr.bf16.mxu0 %v6200_v63  ;;  %1890 = vmatprep.subr.bf16.mxu1 %v6201_v56 }
 0x54e   :  { %1850 = vmatpush1.bf16.msra.mxu0 %v6202_v58  ;;  %1891 = vmatpush1.bf16.msra.mxu1 %v6203_v54 }
 0x54f   :  { %1851 = vmatprep.subr.bf16.mxu0 %v6204_v33  ;;  %1892 = vmatprep.subr.bf16.mxu1 %v6205_v34 }
 0x552   :  { %1852 = vmatpush1.bf16.msra.mxu0 %v6206_v29  ;;  %1893 = vmatpush1.bf16.msra.mxu1 %v6207_v49 }
 0x553   :  { %1853 = vmatprep.subr.bf16.mxu0 %v6208_v53  ;;  %1894 = vmatprep.subr.bf16.mxu1 %v6209_v50 }
 0x556   :  { %1854 = vmatpush1.bf16.msra.mxu0 %v6210_v27  ;;  %1895 = vmatpush1.bf16.msra.mxu1 %v6211_v1 }
 0x557   :  { %1855 = vmatprep.subr.bf16.mxu0 %v6212_v0  ;;  %1896 = vmatprep.subr.bf16.mxu1 %v6213_v37 }
 0x55a   :  { %1856 = vmatpush1.bf16.msra.mxu0 %v6214_v46  ;;  %1897 = vmatpush1.bf16.msra.mxu1 %v6215_v51 }
 0x55b   :  { %1857 = vmatprep.subr.bf16.mxu0 %v6216_v6  ;;  %1898 = vmatprep.subr.bf16.mxu1 %v6217_v7 }
 0x55e   :  { %1858 = vmatpush1.bf16.msra.mxu0 %v6218_v8  ;;  %1899 = vmatpush1.bf16.msra.mxu1 %v6219_v11 }
 0x55f   :  { %1859 = vmatprep.subr.bf16.mxu0 %v6220_v12  ;;  %1900 = vmatprep.subr.bf16.mxu1 %v6221_v14 }
 0x562   :  { %1860 = vmatpush1.bf16.msra.mxu0 %v6222_v15  ;;  %1901 = vmatpush1.bf16.msra.mxu1 %v6223_v16 }
 0x563   :  { %1861 = vmatprep.subr.bf16.mxu0 %v6224_v17  ;;  %1902 = vmatprep.subr.bf16.mxu1 %v6225_v18 }
 0x566   :  { %1862 = vmatpush1.bf16.msra.mxu0 %v6226_v19  ;;  %1903 = vmatpush1.bf16.msra.mxu1 %v6227_v23 }
 0x567   :  { %1863 = vmatprep.subr.bf16.mxu0 %v6228_v4  ;;  %1904 = vmatprep.subr.bf16.mxu1 %v6229_v3 }
 0x56a   :  { %1864 = vmatpush1.bf16.msra.mxu0 %v6230_v20  ;;  %1905 = vmatpush1.bf16.msra.mxu1 %v6231_v45 }
 0x56b   :  { %1865 = vmatprep.subr.bf16.mxu0 %v6232_v42  ;;  %1906 = vmatprep.subr.bf16.mxu1 %v6233_v5 }
 0x56e   :  { %1866 = vmatpush1.bf16.msra.mxu0 %v6234_v60  ;;  %1907 = vmatpush1.bf16.msra.mxu1 %v6235_v10  ;;  %v6258_v10 = vld [vmem:[#allocation29_spill] sm:$0xff] }
 0x56f   :  { %1867 = vmatprep.subr.bf16.mxu0 %v6236_v13  ;;  %1908 = vmatprep.subr.bf16.mxu1 %v6237_v40  ;;  %v6247_v13 = vld [vmem:[#allocation42_spill] sm:$0xff]  ;;  %v6248_v40 = vld [vmem:[#allocation43_spill] sm:$0xff] }
 0x572   :  { %1868 = vmatpush1.bf16.msra.mxu0 %v6238_v43  ;;  %1909 = vmatpush1.bf16.msra.mxu1 %v6239_v39  ;;  %v6249_v43 = vld [vmem:[#allocation44_spill] sm:$0xff]  ;;  %v6250_v39 = vld [vmem:[#allocation91_spill] sm:$0xff] }
 0x573   :  { %1869 = vmatprep.subr.bf16.mxu0 %v6240_v28  ;;  %1910 = vmatprep.subr.bf16.mxu1 %v6241_v9  ;;  %v6251_v28 = vld [vmem:[#allocation92_spill] sm:$0xff]  ;;  %v6252_v9 = vld [vmem:[#allocation93_spill] sm:$0xff] }
 0x576   :  { %1870 = vmatpush1.bf16.msra.mxu0 %v6242_v22  ;;  %1911 = vmatpush1.bf16.msra.mxu1 %v6243_v41  ;;  %v6253_v22 = vld [vmem:[#allocation94_spill] sm:$0xff]  ;;  %v6254_v41 = vld [vmem:[#allocation95_spill] sm:$0xff] }
 0x577   :  { %1871 = vmatprep.subr.bf16.mxu0 %v6244_v21  ;;  %1912 = vmatprep.subr.bf16.mxu1 %v6245_v30  ;;  %v6255_v21 = vld [vmem:[#allocation96_spill] sm:$0xff]  ;;  %v6256_v30 = vld [vmem:[#allocation45_spill] sm:$0xff] }
 0x57a   :  { %1872 = vmatpush1.bf16.msra.mxu0 %v6246_v47  ;;  %1913 = vmatpush1.bf16.msra.mxu1 %v6247_v13  ;;  %v6257_v47 = vld [vmem:[#allocation46_spill] sm:$0xff] }
 0x57b   :  { %1873 = vmatprep.subr.bf16.mxu0 %v6248_v40  ;;  %1914 = vmatprep.subr.bf16.mxu1 %v6249_v43 }
 0x57e   :  { %1874 = vmatpush1.bf16.msra.mxu0 %v6250_v39  ;;  %1915 = vmatpush1.bf16.msra.mxu1 %v6251_v28 }
 0x57f   :  { %1875 = vmatprep.subr.bf16.mxu0 %v6252_v9  ;;  %1916 = vmatprep.subr.bf16.mxu1 %v6253_v22 }
 0x582   :  { %1876 = vmatpush1.bf16.msra.mxu0 %v6254_v41  ;;  %1917 = vmatpush1.bf16.msra.mxu1 %v6255_v21 }
 0x583   :  { %1966 = vmatprep.subr.bf16.mxu0 %v6256_v30  ;;  %2007 = vmatprep.subr.bf16.mxu1 %v6257_v47  ;;  %v6259_v47 = vld [vmem:[#allocation32_spill] sm:$0xff] }
 0x5f8   :  { %v1646_v13 = vpop.f32.mrb[28].mxu0  ;;  %v1687_v40 = vpop.f32.mrb[28].mxu1 }
 0x5f9   :  { %v1647_v43 = vadd.f32 %v1646_v13, %v6258_v10  ;;  %v1648_v60 = vpop.f32.mrb[29].mxu0  ;;  %v1689_v39 = vpop.f32.mrb[29].mxu1  ;;  %v1688_v20 = vadd.f32 %v1687_v40, %v6259_v47 }
 0x5fa   :  { %v1649_v28 = vadd.f32 %v1648_v60, %v6113_v31  ;;  %v1650_v5 = vpop.f32.mrb[30].mxu0  ;;  %v1691_v9 = vpop.f32.mrb[30].mxu1  ;;  %v1690_v30 = vadd.f32 %v1689_v39, %v6114_v44 }
 0x5fb   :  { %v2906_v42 = vmul.f32 -1.442695, %v1647_v43  ;;  %v1651_v22 = vpop.f32.mrb[31].mxu0  ;;  %v1692_v45 = vpop.f32.mrb[31].mxu1  ;;  %v6261_v9 = vld [vmem:[#allocation86_spill] sm:$0xff] }
 0x5fc   :  { %v2907_v41 = vmul.f32 -1.442695, %v1649_v28  ;;  %v2908_v21 = vmul.f32 -1.442695, %v1690_v30  ;;  %v1723_v60 = vpop.permute.xlu0 %1722  ;;  %v6260_v45 = vld [vmem:[#allocation85_spill] sm:$0xff] }
 0x5fd   :  { %3256 = vpow2.f32 %v2906_v42  ;;  %v1725_v28 = vmul.f32 %v1723_v60, %v6260_v45  ;;  %v1726_v22 = vmul.f32 %v1723_v60, %v6261_v9  ;;  %v1728_v9 = vmul.f32 %v1723_v60, %v6119_v32 }
 0x5fe   :  { %3258 = vpow2.f32 %v2907_v41 }
 0x5ff   :  { %3260 = vpow2.f32 %v2908_v21 }
 0x600   :  { %3262 = vtanh.f32 %v1688_v20 }
 0x607   :  { %v3257_v3 = vpop.eup %3256 }
 0x608   :  { %v3259_v4 = vpop.eup %3258  ;;  %v1697_v13 = vadd.f32 1.0, %v3257_v3  ;;  %v1729_v3 = vadd.f32 %v1725_v28, %v6069_v59 }
 0x609   :  { %v1703_v10 = vadd.f32 1.0, %v3259_v4  ;;  %v3261_v5 = vpop.eup %3260  ;;  %v1730_v4 = vadd.f32 %v1726_v22, %v6118_v24  ;;  %v1732_v22 = vadd.f32 %v1728_v9, %v4291_v61 }
 0x60a   :  { %3264 = vrcp.f32 %v1697_v13  ;;  %v3263_v43 = vpop.eup %3262  ;;  %v1710_v30 = vadd.f32 1.0, %v3261_v5 }
 0x60b   :  { %3266 = vrcp.f32 %v1703_v10 }
 0x60c   :  { %3268 = vrcp.f32 %v1710_v30 }
 0x614   :  { %v3265_v42 = vpop.eup %3264 }
 0x615   :  { %v3267_v39 = vpop.eup %3266  ;;  %v1714_v41 = vmul.f32 %v3265_v42, %v3263_v43 }
 0x616   :  { %v1713_v40 = vmul.f32 %v3267_v39, %v4858_v25  ;;  %v1727_v39 = vmul.f32 %v1723_v60, %v4295_v38  ;;  %v3269_v30 = vpop.eup %3268 }
 0x618   :  { %v1767_v21 = vpop.f32.mrb[32].mxu0  ;;  %v1808_v20 = vpop.f32.mrb[32].mxu1  ;;  %v4976_v10 = vadd.f32 %v1714_v41, %v1713_v40 }
 0x619   :  { %v1815_v13 = vadd.f32 %v1767_v21, %v1729_v3  ;;  %v1769_v47 = vpop.f32.mrb[33].mxu0  ;;  %v1810_v45 = vpop.f32.mrb[33].mxu1 }
 0x61a   :  { %v1816_v44 = vadd.f32 %v1769_v47, %v1730_v4  ;;  %v1771_v31 = vpop.f32.mrb[34].mxu0  ;;  %v1812_v43 = vpop.f32.mrb[34].mxu1  ;;  %3270 = vtanh.f32 %v4976_v10  ;;  %v1818_v41 = vadd.f32 %v1810_v45, %v1732_v22  ;;  %v1731_v47 = vadd.f32 %v1727_v39, %v4299_v35 }
 0x61b   :  { %v2909_v25 = vmul.f32 -1.442695, %v1815_v13  ;;  %v1772_v5 = vpop.f32.mrb[35].mxu0  ;;  %v1813_v28 = vpop.f32.mrb[35].mxu1 }
 0x61c   :  { %v2910_v42 = vmul.f32 -1.442695, %v1816_v44  ;;  %v2911_v3 = vmul.f32 -1.442695, %v1818_v41  ;;  %v1817_v31 = vadd.f32 %v1808_v20, %v1731_v47 }
 0x61d   :  { %3272 = vpow2.f32 %v2909_v25 }
 0x61e   :  { %3274 = vpow2.f32 %v2910_v42 }
 0x61f   :  { %3276 = vpow2.f32 %v2911_v3  ;;  %v4994_v3 = vld [vmem:[#allocation11 + $0x8] ss:$16 sps:$4 sm:$0xff]  }
 0x620   :  { %3278 = vtanh.f32 %v1817_v31  ;;  %v5000_v31 = vld [vmem:[#allocation11 + $0x2c] ss:$16 sps:$4 sm:$0xff]  }
 0x624   :  { %v3271_v40 = vpop.eup %3270 }
 0x625   :  { %v1717_v21 = vmul.f32 %v3271_v40, %v3269_v30  ;;  %v4991_v40 = vld [vmem:[#allocation11] ss:$16 sps:$4 sm:$0xff]  }
 0x627   :  { %v3273_v4 = vpop.eup %3272  ;;  %v1844_v43 = vpack.c.bf16 %v1717_v21, %v1717_v21  ;;  %v5005_v21 = vld [vmem:[#allocation11 + $0x20] ss:$16 sps:$4 sm:$0xff]  }
 0x628   :  { %v3275_v13 = vpop.eup %3274  ;;  %v1822_v5 = vadd.f32 1.0, %v3273_v4  ;;  %v5008_v4 = vld [vmem:[#allocation11 + $0x28] ss:$16 sps:$4 sm:$0xff]  }
 0x629   :  { %v1828_v44 = vadd.f32 1.0, %v3275_v13  ;;  %1877 = vmatprep.mubr.bf16.mxu0 %v1844_v43  ;;  %1918 = vmatprep.mubr.bf16.mxu1 %v1844_v43  ;;  %v3277_v60 = vpop.eup %3276  ;;  %v5011_v43 = vld [vmem:[#allocation11 + $0x44] ss:$16 sps:$4 sm:$0xff]   ;;  %v5014_v13 = vld [vmem:[#allocation11 + $0x4c] ss:$16 sps:$4 sm:$0xff]  }
 0x62a   :  { %3280 = vrcp.f32 %v1822_v5  ;;  %v3279_v45 = vpop.eup %3278  ;;  %v1835_v42 = vadd.f32 1.0, %v3277_v60  ;;  %v5017_v5 = vld [vmem:[#allocation11 + $0x40] ss:$16 sps:$4 sm:$0xff]   ;;  %v5023_v60 = vld [vmem:[#allocation11 + $0x64] ss:$16 sps:$4 sm:$0xff]  }
 0x62b   :  { %3282 = vrcp.f32 %v1828_v44  ;;  %v5020_v44 = vld [vmem:[#allocation11 + $0x48] ss:$16 sps:$4 sm:$0xff]  }
 0x62c   :  { %3284 = vrcp.f32 %v1835_v42  ;;  %v5038_v42 = vld [vmem:[#allocation11 + $0x8c] ss:$16 sps:$4 sm:$0xff]  }
 0x62d   :  { %6263 = vst [vmem:[#allocation48_spill] sm:$0xff] %v5038_v42 }
 0x634   :  { %v3281_v9 = vpop.eup %3280 }
 0x635   :  { %v3283_v25 = vpop.eup %3282  ;;  %v1839_v28 = vmul.f32 %v3281_v9, %v3279_v45  ;;  %v5026_v45 = vld [vmem:[#allocation11 + $0x6c] ss:$16 sps:$4 sm:$0xff]   ;;  %v5029_v9 = vld [vmem:[#allocation11 + $0x60] ss:$16 sps:$4 sm:$0xff]  }
 0x636   :  { %v1838_v20 = vmul.f32 %v3283_v25, %v4866_v26  ;;  %v3285_v39 = vpop.eup %3284  ;;  %v4997_v26 = vld [vmem:[#allocation11 + $0x24] ss:$16 sps:$4 sm:$0xff]   ;;  %v5032_v25 = vld [vmem:[#allocation11 + $0x68] ss:$16 sps:$4 sm:$0xff]  }
 0x638   :  { %v4984_v22 = vadd.f32 %v1839_v28, %v1838_v20  ;;  %v5035_v28 = vld [vmem:[#allocation11 + $0x84] ss:$16 sps:$4 sm:$0xff]   ;;  %v5041_v20 = vld [vmem:[#allocation11 + $0x80] ss:$16 sps:$4 sm:$0xff]  }
 0x639   :  { %6262 = vst [vmem:[#allocation47_spill] sm:$0xff] %v5035_v28  ;;  %6264 = vst [vmem:[#allocation49_spill] sm:$0xff] %v5041_v20 }
 0x63a   :  { %3286 = vtanh.f32 %v4984_v22 }
 0x644   :  { %v3287_v41 = vpop.eup %3286 }
 0x645   :  { %v1842_v30 = vmul.f32 %v3287_v41, %v3285_v39  ;;  %v5044_v39 = vld [vmem:[#allocation11 + $0x88] ss:$16 sps:$4 sm:$0xff]   ;;  %v5047_v41 = vld [vmem:[#allocation11 + $0xa4] ss:$16 sps:$4 sm:$0xff]  }
 0x646   :  { %6265 = vst [vmem:[#allocation50_spill] sm:$0xff] %v5044_v39  ;;  %6266 = vst [vmem:[#allocation51_spill] sm:$0xff] %v5047_v41 }
 0x647   :  { %v4987_v47 = vpack.c.bf16 %v1842_v30, %v1842_v30  ;;  %v5050_v30 = vld [vmem:[#allocation11 + $0xac] ss:$16 sps:$4 sm:$0xff]  }
 0x648   :  { %6267 = vst [vmem:[#allocation52_spill] sm:$0xff] %v5050_v30 }
 0x649   :  { %1878 = vmatmul.mubr.bf16.vlgmr.msra.gmra.mrb[36].mxu0 %v4987_v47  ;;  %1919 = vmatmul.mubr.bf16.vlgmr.msra.gmra.mrb[36].mxu1 %v4987_v47 }
 0x64a   :  { %1967 = vmatpush1.bf16.msra.mxu0 %v4991_v40  ;;  %2008 = vmatpush1.bf16.msra.mxu1 %v4994_v3 }
 0x64b   :  { %1968 = vmatprep.subr.bf16.mxu0 %v4997_v26  ;;  %2009 = vmatprep.subr.bf16.mxu1 %v5000_v31 }
 0x64c   :  { %1998 = vmatprep.mubr.bf16.mxu0 %v6003_v62  ;;  %2039 = vmatprep.mubr.bf16.mxu1 %v6003_v62 }
 0x64e   :  { %1969 = vmatpush1.bf16.msra.mxu0 %v5005_v21  ;;  %2010 = vmatpush1.bf16.msra.mxu1 %v5008_v4 }
 0x64f   :  { %1970 = vmatprep.subr.bf16.mxu0 %v5011_v43  ;;  %2011 = vmatprep.subr.bf16.mxu1 %v5014_v13 }
 0x652   :  { %1971 = vmatpush1.bf16.msra.mxu0 %v5017_v5  ;;  %2012 = vmatpush1.bf16.msra.mxu1 %v5020_v44 }
 0x653   :  { %1972 = vmatprep.subr.bf16.mxu0 %v5023_v60  ;;  %2013 = vmatprep.subr.bf16.mxu1 %v5026_v45 }
 0x656   :  { %1973 = vmatpush1.bf16.msra.mxu0 %v5029_v9  ;;  %2014 = vmatpush1.bf16.msra.mxu1 %v5032_v25 }
 0x657   :  { %1974 = vmatprep.subr.bf16.mxu0 %v5035_v28  ;;  %2015 = vmatprep.subr.bf16.mxu1 %v5038_v42  ;;  %v5053_v28 = vld [vmem:[#allocation11 + $0xa0] ss:$16 sps:$4 sm:$0xff]   ;;  %v5056_v42 = vld [vmem:[#allocation11 + $0xa8] ss:$16 sps:$4 sm:$0xff]  }
 0x658   :  { %6268 = vst [vmem:[#allocation53_spill] sm:$0xff] %v5053_v28  ;;  %6269 = vst [vmem:[#allocation54_spill] sm:$0xff] %v5056_v42 }
 0x65a   :  { %1975 = vmatpush1.bf16.msra.mxu0 %v5041_v20  ;;  %2016 = vmatpush1.bf16.msra.mxu1 %v5044_v39  ;;  %v5059_v20 = vld [vmem:[#allocation11 + $0xc4] ss:$16 sps:$4 sm:$0xff]   ;;  %v5062_v39 = vld [vmem:[#allocation11 + $0xcc] ss:$16 sps:$4 sm:$0xff]  }
 0x65b   :  { %1976 = vmatprep.subr.bf16.mxu0 %v5047_v41  ;;  %2017 = vmatprep.subr.bf16.mxu1 %v5050_v30  ;;  %6270 = vst [vmem:[#allocation55_spill] sm:$0xff] %v5059_v20  ;;  %6271 = vst [vmem:[#allocation56_spill] sm:$0xff] %v5062_v39  ;;  %v5065_v41 = vld [vmem:[#allocation11 + $0xc0] ss:$16 sps:$4 sm:$0xff]   ;;  %v5068_v30 = vld [vmem:[#allocation11 + $0xc8] ss:$16 sps:$4 sm:$0xff]  }
 0x65c   :  { %6272 = vst [vmem:[#allocation27_spill] sm:$0xff] %v5065_v41  ;;  %6273 = vst [vmem:[#allocation28_spill] sm:$0xff] %v5068_v30 }
 0x65e   :  { %1977 = vmatpush1.bf16.msra.mxu0 %v5053_v28  ;;  %2018 = vmatpush1.bf16.msra.mxu1 %v5056_v42  ;;  %v5071_v28 = vld [vmem:[#allocation11 + $0xe4] ss:$16 sps:$4 sm:$0xff]   ;;  %v5074_v42 = vld [vmem:[#allocation11 + $0xec] ss:$16 sps:$4 sm:$0xff]  }
 0x65f   :  { %1978 = vmatprep.subr.bf16.mxu0 %v5059_v20  ;;  %2019 = vmatprep.subr.bf16.mxu1 %v5062_v39  ;;  %v5077_v20 = vld [vmem:[#allocation11 + $0xe0] ss:$16 sps:$4 sm:$0xff]   ;;  %v5080_v39 = vld [vmem:[#allocation11 + $0xe8] ss:$16 sps:$4 sm:$0xff]  }
 0x662   :  { %1979 = vmatpush1.bf16.msra.mxu0 %v5065_v41  ;;  %2020 = vmatpush1.bf16.msra.mxu1 %v5068_v30  ;;  %v5083_v41 = vld [vmem:[#allocation14 + $0x4] ss:$16 sps:$4 sm:$0xff]   ;;  %v5086_v30 = vld [vmem:[#allocation14 + $0xc] ss:$16 sps:$4 sm:$0xff]  }
 0x663   :  { %1980 = vmatprep.subr.bf16.mxu0 %v5071_v28  ;;  %2021 = vmatprep.subr.bf16.mxu1 %v5074_v42 }
 0x666   :  { %1981 = vmatpush1.bf16.msra.mxu0 %v5077_v20  ;;  %2022 = vmatpush1.bf16.msra.mxu1 %v5080_v39 }
 0x667   :  { %2078 = vmatprep.subr.bf16.mxu0 %v5083_v41  ;;  %2119 = vmatprep.subr.bf16.mxu1 %v5086_v30 }
 0x669   :  { %1999 = vmatmul.mubr.bf16.vlgmr.msra.gmra.mrb[40].mxu0 %v4987_v47  ;;  %2040 = vmatmul.mubr.bf16.vlgmr.msra.gmra.mrb[40].mxu1 %v4987_v47 }
 0x66a   :  { %2079 = vmatpush1.bf16.msra.mxu0 %v6194_v57  ;;  %2120 = vmatpush1.bf16.msra.mxu1 %v6195_v48  ;;  %v6274_v57 = vld [vmem:[#allocation75_spill] sm:$0xff]  ;;  %v6275_v48 = vld [vmem:[#allocation76_spill] sm:$0xff] }
 0x66b   :  { %2080 = vmatprep.subr.bf16.mxu0 %v6196_v2  ;;  %2121 = vmatprep.subr.bf16.mxu1 %v6197_v36  ;;  %v6276_v2 = vld [vmem:[#allocation77_spill] sm:$0xff]  ;;  %v6277_v36 = vld [vmem:[#allocation78_spill] sm:$0xff] }
 0x66e   :  { %2081 = vmatpush1.bf16.msra.mxu0 %v6198_v55  ;;  %2122 = vmatpush1.bf16.msra.mxu1 %v6199_v52  ;;  %v6278_v55 = vld [vmem:[#allocation79_spill] sm:$0xff]  ;;  %v6279_v52 = vld [vmem:[#allocation80_spill] sm:$0xff] }
 0x66f   :  { %2082 = vmatprep.subr.bf16.mxu0 %v6200_v63  ;;  %2123 = vmatprep.subr.bf16.mxu1 %v6201_v56  ;;  %v6280_v63 = vld [vmem:[#allocation81_spill] sm:$0xff]  ;;  %v6281_v56 = vld [vmem:[#allocation82_spill] sm:$0xff] }
 0x672   :  { %2083 = vmatpush1.bf16.msra.mxu0 %v6202_v58  ;;  %2124 = vmatpush1.bf16.msra.mxu1 %v6203_v54  ;;  %v6282_v58 = vld [vmem:[#allocation89_spill] sm:$0xff]  ;;  %v6283_v54 = vld [vmem:[#allocation90_spill] sm:$0xff] }
 0x673   :  { %2084 = vmatprep.subr.bf16.mxu0 %v6204_v33  ;;  %2125 = vmatprep.subr.bf16.mxu1 %v6205_v34  ;;  %v6284_v33 = vld [vmem:[#allocation33_spill] sm:$0xff]  ;;  %v6285_v34 = vld [vmem:[#allocation34_spill] sm:$0xff] }
 0x676   :  { %2085 = vmatpush1.bf16.msra.mxu0 %v6206_v29  ;;  %2126 = vmatpush1.bf16.msra.mxu1 %v6207_v49  ;;  %v6286_v29 = vld [vmem:[#allocation35_spill] sm:$0xff]  ;;  %v6287_v49 = vld [vmem:[#allocation36_spill] sm:$0xff] }
 0x677   :  { %2086 = vmatprep.subr.bf16.mxu0 %v6208_v53  ;;  %2127 = vmatprep.subr.bf16.mxu1 %v6209_v50  ;;  %v6288_v53 = vld [vmem:[#allocation37_spill] sm:$0xff]  ;;  %v6289_v50 = vld [vmem:[#allocation38_spill] sm:$0xff] }
 0x67a   :  { %2087 = vmatpush1.bf16.msra.mxu0 %v6210_v27  ;;  %2128 = vmatpush1.bf16.msra.mxu1 %v6211_v1  ;;  %v6290_v27 = vld [vmem:[#allocation39_spill] sm:$0xff]  ;;  %v6291_v1 = vld [vmem:[#allocation40_spill] sm:$0xff] }
 0x67b   :  { %2088 = vmatprep.subr.bf16.mxu0 %v6212_v0  ;;  %2129 = vmatprep.subr.bf16.mxu1 %v6213_v37  ;;  %v6292_v0 = vld [vmem:[#allocation41_spill] sm:$0xff]  ;;  %v6293_v37 = vld [vmem:[#allocation42_spill] sm:$0xff] }
 0x67e   :  { %2089 = vmatpush1.bf16.msra.mxu0 %v6214_v46  ;;  %2130 = vmatpush1.bf16.msra.mxu1 %v6215_v51  ;;  %v6294_v46 = vld [vmem:[#allocation43_spill] sm:$0xff]  ;;  %v6295_v51 = vld [vmem:[#allocation44_spill] sm:$0xff] }
 0x67f   :  { %2090 = vmatprep.subr.bf16.mxu0 %v6216_v6  ;;  %2131 = vmatprep.subr.bf16.mxu1 %v6217_v7  ;;  %v6296_v6 = vld [vmem:[#allocation91_spill] sm:$0xff]  ;;  %v6297_v7 = vld [vmem:[#allocation92_spill] sm:$0xff] }
 0x682   :  { %2091 = vmatpush1.bf16.msra.mxu0 %v6218_v8  ;;  %2132 = vmatpush1.bf16.msra.mxu1 %v6219_v11  ;;  %v6298_v8 = vld [vmem:[#allocation93_spill] sm:$0xff]  ;;  %v6299_v11 = vld [vmem:[#allocation94_spill] sm:$0xff] }
 0x683   :  { %2092 = vmatprep.subr.bf16.mxu0 %v6220_v12  ;;  %2133 = vmatprep.subr.bf16.mxu1 %v6221_v14  ;;  %v6300_v12 = vld [vmem:[#allocation95_spill] sm:$0xff]  ;;  %v6301_v14 = vld [vmem:[#allocation96_spill] sm:$0xff] }
 0x686   :  { %2093 = vmatpush1.bf16.msra.mxu0 %v6222_v15  ;;  %2134 = vmatpush1.bf16.msra.mxu1 %v6223_v16  ;;  %v5153_v15 = vld [vmem:[#allocation11 + $0x4] ss:$16 sps:$4 sm:$0xff]   ;;  %v5156_v16 = vld [vmem:[#allocation11 + $0xc] ss:$16 sps:$4 sm:$0xff]  }
 0x687   :  { %2094 = vmatprep.subr.bf16.mxu0 %v6224_v17  ;;  %2135 = vmatprep.subr.bf16.mxu1 %v6225_v18 }
 0x68a   :  { %2095 = vmatpush1.bf16.msra.mxu0 %v6226_v19  ;;  %2136 = vmatpush1.bf16.msra.mxu1 %v6227_v23  ;;  %v6302_v19 = vld [vmem:[#allocation29_spill] sm:$0xff] }
 0x68b   :  { %2096 = vmatprep.subr.bf16.mxu0 %v6274_v57  ;;  %2137 = vmatprep.subr.bf16.mxu1 %v6275_v48  ;;  %v6303_v48 = vld [vmem:[#allocation30_spill] sm:$0xff] }
 0x68e   :  { %2097 = vmatpush1.bf16.msra.mxu0 %v6276_v2  ;;  %2138 = vmatpush1.bf16.msra.mxu1 %v6277_v36 }
 0x68f   :  { %2098 = vmatprep.subr.bf16.mxu0 %v6278_v55  ;;  %2139 = vmatprep.subr.bf16.mxu1 %v6279_v52 }
 0x692   :  { %2099 = vmatpush1.bf16.msra.mxu0 %v6280_v63  ;;  %2140 = vmatpush1.bf16.msra.mxu1 %v6281_v56 }
 0x693   :  { %2100 = vmatprep.subr.bf16.mxu0 %v6282_v58  ;;  %2141 = vmatprep.subr.bf16.mxu1 %v6283_v54  ;;  %v6304_v54 = vld [vmem:[#allocation31_spill] sm:$0xff] }
 0x696   :  { %2101 = vmatpush1.bf16.msra.mxu0 %v6284_v33  ;;  %2142 = vmatpush1.bf16.msra.mxu1 %v6285_v34 }
 0x697   :  { %2102 = vmatprep.subr.bf16.mxu0 %v6286_v29  ;;  %2143 = vmatprep.subr.bf16.mxu1 %v6287_v49  ;;  %v6305_v29 = vld [vmem:[#allocation32_spill] sm:$0xff] }
 0x69a   :  { %2103 = vmatpush1.bf16.msra.mxu0 %v6288_v53  ;;  %2144 = vmatpush1.bf16.msra.mxu1 %v6289_v50 }
 0x69b   :  { %2104 = vmatprep.subr.bf16.mxu0 %v6290_v27  ;;  %2145 = vmatprep.subr.bf16.mxu1 %v6291_v1 }
 0x69e   :  { %2105 = vmatpush1.bf16.msra.mxu0 %v6292_v0  ;;  %2146 = vmatpush1.bf16.msra.mxu1 %v6293_v37  ;;  %v1956_v37 = vpop.permute.xlu1 %1955 }
 0x69f   :  { %2106 = vmatprep.subr.bf16.mxu0 %v6294_v46  ;;  %2147 = vmatprep.subr.bf16.mxu1 %v6295_v51  ;;  %v6306_v51 = vld [vmem:[#allocation85_spill] sm:$0xff] }
 0x6a2   :  { %2107 = vmatpush1.bf16.msra.mxu0 %v6296_v6  ;;  %2148 = vmatpush1.bf16.msra.mxu1 %v6297_v7  ;;  %v1958_v6 = vmul.f32 %v1956_v37, %v6306_v51 }
 0x6a3   :  { %2108 = vmatprep.subr.bf16.mxu0 %v6298_v8  ;;  %2149 = vmatprep.subr.bf16.mxu1 %v6299_v11  ;;  %v6307_v8 = vld [vmem:[#allocation86_spill] sm:$0xff] }
 0x6a4   :  { %v1959_v11 = vmul.f32 %v1956_v37, %v6307_v8 }
 0x6a6   :  { %2109 = vmatpush1.bf16.msra.mxu0 %v6300_v12  ;;  %2150 = vmatpush1.bf16.msra.mxu1 %v6301_v14 }
 0x6a7   :  { %2199 = vmatprep.subr.bf16.mxu0 %v5153_v15  ;;  %2240 = vmatprep.subr.bf16.mxu1 %v5156_v16 }
 0x71c   :  { %v1879_v17 = vpop.f32.mrb[36].mxu0  ;;  %v1920_v18 = vpop.f32.mrb[36].mxu1 }
 0x71d   :  { %v1880_v23 = vadd.f32 %v1879_v17, %v6302_v19  ;;  %v1881_v47 = vpop.f32.mrb[37].mxu0  ;;  %v1922_v57 = vpop.f32.mrb[37].mxu1  ;;  %v1921_v49 = vadd.f32 %v1920_v18, %v6305_v29 }
 0x71e   :  { %v1882_v2 = vadd.f32 %v1881_v47, %v6303_v48  ;;  %v1883_v36 = vpop.f32.mrb[38].mxu0  ;;  %v1924_v55 = vpop.f32.mrb[38].mxu1  ;;  %v1923_v33 = vadd.f32 %v1922_v57, %v6304_v54 }
 0x71f   :  { %v2912_v52 = vmul.f32 -1.442695, %v1880_v23  ;;  %v1884_v63 = vpop.f32.mrb[39].mxu0  ;;  %v1925_v56 = vpop.f32.mrb[39].mxu1  ;;  %v1962_v23 = vadd.f32 %v1958_v6, %v6069_v59 }
 0x720   :  { %v2913_v58 = vmul.f32 -1.442695, %v1882_v2  ;;  %v2914_v34 = vmul.f32 -1.442695, %v1923_v33  ;;  %v1963_v2 = vadd.f32 %v1959_v11, %v6118_v24 }
 0x721   :  { %3288 = vpow2.f32 %v2912_v52 }
 0x722   :  { %3290 = vpow2.f32 %v2913_v58  ;;  %v1961_v58 = vmul.f32 %v1956_v37, %v6119_v32 }
 0x723   :  { %3292 = vpow2.f32 %v2914_v34 }
 0x724   :  { %3294 = vtanh.f32 %v1921_v49 }
 0x72b   :  { %v3289_v53 = vpop.eup %3288 }
 0x72c   :  { %v3291_v50 = vpop.eup %3290  ;;  %v1930_v27 = vadd.f32 1.0, %v3289_v53 }
 0x72d   :  { %v1936_v1 = vadd.f32 1.0, %v3291_v50  ;;  %v3293_v0 = vpop.eup %3292 }
 0x72e   :  { %3296 = vrcp.f32 %v1930_v27  ;;  %v3295_v46 = vpop.eup %3294  ;;  %v1943_v17 = vadd.f32 1.0, %v3293_v0  ;;  %v1965_v27 = vadd.f32 %v1961_v58, %v4291_v61 }
 0x72f   :  { %3298 = vrcp.f32 %v1936_v1  ;;  %v1960_v1 = vmul.f32 %v1956_v37, %v4295_v38 }
 0x730   :  { %3300 = vrcp.f32 %v1943_v17 }
 0x731   :  { %v1964_v6 = vadd.f32 %v1960_v1, %v4299_v35  ;;  %v6311_v1 = vld [vmem:[#allocation50_spill] sm:$0xff] }
 0x738   :  { %v3297_v7 = vpop.eup %3296 }
 0x739   :  { %v3299_v12 = vpop.eup %3298  ;;  %v1947_v14 = vmul.f32 %v3297_v7, %v3295_v46 }
 0x73a   :  { %v1946_v18 = vmul.f32 %v3299_v12, %v4976_v10  ;;  %v3301_v46 = vpop.eup %3300 }
 0x73c   :  { %v2000_v47 = vpop.f32.mrb[40].mxu0  ;;  %v2041_v57 = vpop.f32.mrb[40].mxu1  ;;  %v5168_v36 = vadd.f32 %v1947_v14, %v1946_v18 }
 0x73d   :  { %v2048_v55 = vadd.f32 %v2000_v47, %v1962_v23  ;;  %v2002_v52 = vpop.f32.mrb[41].mxu0  ;;  %v2043_v63 = vpop.f32.mrb[41].mxu1  ;;  %v2050_v12 = vadd.f32 %v2041_v57, %v1964_v6  ;;  %v6314_v6 = vld [vmem:[#allocation53_spill] sm:$0xff] }
 0x73e   :  { %v2049_v56 = vadd.f32 %v2002_v52, %v1963_v2  ;;  %v2004_v33 = vpop.f32.mrb[42].mxu0  ;;  %v2045_v34 = vpop.f32.mrb[42].mxu1  ;;  %3302 = vtanh.f32 %v5168_v36  ;;  %v2051_v0 = vadd.f32 %v2043_v63, %v1965_v27  ;;  %v6310_v27 = vld [vmem:[#allocation49_spill] sm:$0xff] }
 0x73f   :  { %v2915_v10 = vmul.f32 -1.442695, %v2048_v55  ;;  %v2005_v49 = vpop.f32.mrb[43].mxu0  ;;  %v2046_v53 = vpop.f32.mrb[43].mxu1 }
 0x740   :  { %v2916_v50 = vmul.f32 -1.442695, %v2049_v56  ;;  %v2917_v11 = vmul.f32 -1.442695, %v2051_v0  ;;  %v6312_v0 = vld [vmem:[#allocation51_spill] sm:$0xff] }
 0x741   :  { %3304 = vpow2.f32 %v2915_v10 }
 0x742   :  { %3306 = vpow2.f32 %v2916_v50  ;;  %v6309_v50 = vld [vmem:[#allocation48_spill] sm:$0xff] }
 0x743   :  { %3308 = vpow2.f32 %v2917_v11  ;;  %v6316_v11 = vld [vmem:[#allocation55_spill] sm:$0xff] }
 0x744   :  { %3310 = vtanh.f32 %v2050_v12  ;;  %v6317_v12 = vld [vmem:[#allocation56_spill] sm:$0xff] }
 0x748   :  { %v3303_v7 = vpop.eup %3302 }
 0x749   :  { %v1950_v14 = vmul.f32 %v3303_v7, %v3301_v46  ;;  %v6313_v46 = vld [vmem:[#allocation52_spill] sm:$0xff]  ;;  %v6315_v7 = vld [vmem:[#allocation54_spill] sm:$0xff] }
 0x74b   :  { %v3305_v17 = vpop.eup %3304  ;;  %v2077_v18 = vpack.c.bf16 %v1950_v14, %v1950_v14  ;;  %v6318_v14 = vld [vmem:[#allocation27_spill] sm:$0xff] }
 0x74c   :  { %v3307_v23 = vpop.eup %3306  ;;  %v2055_v47 = vadd.f32 1.0, %v3305_v17  ;;  %v6319_v17 = vld [vmem:[#allocation28_spill] sm:$0xff] }
 0x74d   :  { %v2061_v2 = vadd.f32 1.0, %v3307_v23  ;;  %2110 = vmatprep.mubr.bf16.mxu0 %v2077_v18  ;;  %2151 = vmatprep.mubr.bf16.mxu1 %v2077_v18  ;;  %v3309_v37 = vpop.eup %3308  ;;  %v5213_v18 = vld [vmem:[#allocation14] ss:$16 sps:$4 sm:$0xff]   ;;  %v5216_v23 = vld [vmem:[#allocation14 + $0x8] ss:$16 sps:$4 sm:$0xff]  }
 0x74e   :  { %3312 = vrcp.f32 %v2055_v47  ;;  %v3311_v55 = vpop.eup %3310  ;;  %v2068_v58 = vadd.f32 1.0, %v3309_v37  ;;  %6320 = vst [vmem:[#allocation83_spill] sm:$0xff] %v5213_v18  ;;  %6321 = vst [vmem:[#allocation84_spill] sm:$0xff] %v5216_v23  ;;  %v5219_v47 = vld [vmem:[#allocation14 + $0x24] ss:$16 sps:$4 sm:$0xff]  }
 0x74f   :  { %3314 = vrcp.f32 %v2061_v2  ;;  %6322 = vst [vmem:[#allocation87_spill] sm:$0xff] %v5219_v47  ;;  %v5222_v2 = vld [vmem:[#allocation14 + $0x2c] ss:$16 sps:$4 sm:$0xff]   ;;  %v5225_v37 = vld [vmem:[#allocation14 + $0x20] ss:$16 sps:$4 sm:$0xff]  }
 0x750   :  { %3316 = vrcp.f32 %v2068_v58  ;;  %6323 = vst [vmem:[#allocation88_spill] sm:$0xff] %v5222_v2  ;;  %6324 = vst [vmem:[#allocation57_spill] sm:$0xff] %v5225_v37  ;;  %v5240_v58 = vld [vmem:[#allocation14 + $0x48] ss:$16 sps:$4 sm:$0xff]  }
 0x751   :  { %6329 = vst [vmem:[#allocation62_spill] sm:$0xff] %v5240_v58 }
 0x758   :  { %v3313_v52 = vpop.eup %3312 }
 0x759   :  { %v3315_v63 = vpop.eup %3314  ;;  %v2072_v56 = vmul.f32 %v3313_v52, %v3311_v55  ;;  %v5228_v55 = vld [vmem:[#allocation14 + $0x28] ss:$16 sps:$4 sm:$0xff]   ;;  %v5231_v52 = vld [vmem:[#allocation14 + $0x44] ss:$16 sps:$4 sm:$0xff]  }
 0x75a   :  { %v2071_v57 = vmul.f32 %v3315_v63, %v4984_v22  ;;  %v3317_v34 = vpop.eup %3316  ;;  %v6308_v22 = vld [vmem:[#allocation47_spill] sm:$0xff]  ;;  %6325 = vst [vmem:[#allocation58_spill] sm:$0xff] %v5228_v55  ;;  %6326 = vst [vmem:[#allocation59_spill] sm:$0xff] %v5231_v52 }
 0x75b   :  { %v5234_v63 = vld [vmem:[#allocation14 + $0x4c] ss:$16 sps:$4 sm:$0xff]  }
 0x75c   :  { %v5176_v33 = vadd.f32 %v2072_v56, %v2071_v57  ;;  %6327 = vst [vmem:[#allocation60_spill] sm:$0xff] %v5234_v63  ;;  %v5237_v56 = vld [vmem:[#allocation14 + $0x40] ss:$16 sps:$4 sm:$0xff]   ;;  %v5243_v57 = vld [vmem:[#allocation14 + $0x64] ss:$16 sps:$4 sm:$0xff]  }
 0x75d   :  { %6328 = vst [vmem:[#allocation61_spill] sm:$0xff] %v5237_v56  ;;  %6330 = vst [vmem:[#allocation63_spill] sm:$0xff] %v5243_v57 }
 0x75e   :  { %3318 = vtanh.f32 %v5176_v33 }
 0x768   :  { %v3319_v10 = vpop.eup %3318 }
 0x769   :  { %v2075_v49 = vmul.f32 %v3319_v10, %v3317_v34  ;;  %v5246_v34 = vld [vmem:[#allocation14 + $0x6c] ss:$16 sps:$4 sm:$0xff]   ;;  %v5249_v10 = vld [vmem:[#allocation14 + $0x60] ss:$16 sps:$4 sm:$0xff]  }
 0x76a   :  { %6331 = vst [vmem:[#allocation64_spill] sm:$0xff] %v5246_v34  ;;  %6332 = vst [vmem:[#allocation65_spill] sm:$0xff] %v5249_v10 }
 0x76b   :  { %v2076_v53 = vpack.c.bf16 %v2075_v49, %v2075_v49  ;;  %v5252_v49 = vld [vmem:[#allocation14 + $0x68] ss:$16 sps:$4 sm:$0xff]  }
 0x76c   :  { %6333 = vst [vmem:[#allocation66_spill] sm:$0xff] %v5252_v49 }
 0x76d   :  { %2111 = vmatmul.mubr.bf16.vlgmr.msra.gmra.mrb[44].mxu0 %v2076_v53  ;;  %2152 = vmatmul.mubr.bf16.vlgmr.msra.gmra.mrb[44].mxu1 %v2076_v53 }
 0x76e   :  { %2200 = vmatpush1.bf16.msra.mxu0 %v4991_v40  ;;  %2241 = vmatpush1.bf16.msra.mxu1 %v4994_v3 }
 0x76f   :  { %2201 = vmatprep.subr.bf16.mxu0 %v4997_v26  ;;  %2242 = vmatprep.subr.bf16.mxu1 %v5000_v31 }
 0x770   :  { %2231 = vmatprep.mubr.bf16.mxu0 %v6003_v62  ;;  %2272 = vmatprep.mubr.bf16.mxu1 %v6003_v62 }
 0x772   :  { %2202 = vmatpush1.bf16.msra.mxu0 %v5005_v21  ;;  %2243 = vmatpush1.bf16.msra.mxu1 %v5008_v4 }
 0x773   :  { %2203 = vmatprep.subr.bf16.mxu0 %v5011_v43  ;;  %2244 = vmatprep.subr.bf16.mxu1 %v5014_v13 }
 0x776   :  { %2204 = vmatpush1.bf16.msra.mxu0 %v5017_v5  ;;  %2245 = vmatpush1.bf16.msra.mxu1 %v5020_v44 }
 0x777   :  { %2205 = vmatprep.subr.bf16.mxu0 %v5023_v60  ;;  %2246 = vmatprep.subr.bf16.mxu1 %v5026_v45 }
 0x77a   :  { %2206 = vmatpush1.bf16.msra.mxu0 %v5029_v9  ;;  %2247 = vmatpush1.bf16.msra.mxu1 %v5032_v25 }
 0x77b   :  { %2207 = vmatprep.subr.bf16.mxu0 %v6308_v22  ;;  %2248 = vmatprep.subr.bf16.mxu1 %v6309_v50 }
 0x77e   :  { %2208 = vmatpush1.bf16.msra.mxu0 %v6310_v27  ;;  %2249 = vmatpush1.bf16.msra.mxu1 %v6311_v1 }
 0x77f   :  { %2209 = vmatprep.subr.bf16.mxu0 %v6312_v0  ;;  %2250 = vmatprep.subr.bf16.mxu1 %v6313_v46 }
 0x782   :  { %2210 = vmatpush1.bf16.msra.mxu0 %v6314_v6  ;;  %2251 = vmatpush1.bf16.msra.mxu1 %v6315_v7 }
 0x783   :  { %2211 = vmatprep.subr.bf16.mxu0 %v6316_v11  ;;  %2252 = vmatprep.subr.bf16.mxu1 %v6317_v12 }
 0x786   :  { %2212 = vmatpush1.bf16.msra.mxu0 %v6318_v14  ;;  %2253 = vmatpush1.bf16.msra.mxu1 %v6319_v17 }
 0x787   :  { %2213 = vmatprep.subr.bf16.mxu0 %v5071_v28  ;;  %2254 = vmatprep.subr.bf16.mxu1 %v5074_v42 }
 0x78a   :  { %2214 = vmatpush1.bf16.msra.mxu0 %v5077_v20  ;;  %2255 = vmatpush1.bf16.msra.mxu1 %v5080_v39 }
 0x78b   :  { %2311 = vmatprep.subr.bf16.mxu0 %v5083_v41  ;;  %2352 = vmatprep.subr.bf16.mxu1 %v5086_v30 }
 0x78d   :  { %2232 = vmatmul.mubr.bf16.vlgmr.msra.gmra.mrb[48].mxu0 %v2076_v53  ;;  %2273 = vmatmul.mubr.bf16.vlgmr.msra.gmra.mrb[48].mxu1 %v2076_v53  ;;  %v5255_v53 = vld [vmem:[#allocation14 + $0x84] ss:$16 sps:$4 sm:$0xff]  }
 0x78e   :  { %2312 = vmatpush1.bf16.msra.mxu0 %v5213_v18  ;;  %2353 = vmatpush1.bf16.msra.mxu1 %v5216_v23  ;;  %6334 = vst [vmem:[#allocation67_spill] sm:$0xff] %v5255_v53 }
 0x78f   :  { %2313 = vmatprep.subr.bf16.mxu0 %v5219_v47  ;;  %2354 = vmatprep.subr.bf16.mxu1 %v5222_v2 }
 0x792   :  { %2314 = vmatpush1.bf16.msra.mxu0 %v5225_v37  ;;  %2355 = vmatpush1.bf16.msra.mxu1 %v5228_v55 }
 0x793   :  { %2315 = vmatprep.subr.bf16.mxu0 %v5231_v52  ;;  %2356 = vmatprep.subr.bf16.mxu1 %v5234_v63 }
 0x796   :  { %2316 = vmatpush1.bf16.msra.mxu0 %v5237_v56  ;;  %2357 = vmatpush1.bf16.msra.mxu1 %v5240_v58  ;;  %v5258_v58 = vld [vmem:[#allocation14 + $0x8c] ss:$16 sps:$4 sm:$0xff]  }
 0x797   :  { %2317 = vmatprep.subr.bf16.mxu0 %v5243_v57  ;;  %2358 = vmatprep.subr.bf16.mxu1 %v5246_v34  ;;  %6335 = vst [vmem:[#allocation68_spill] sm:$0xff] %v5258_v58  ;;  %v5261_v57 = vld [vmem:[#allocation14 + $0x80] ss:$16 sps:$4 sm:$0xff]   ;;  %v5264_v34 = vld [vmem:[#allocation14 + $0x88] ss:$16 sps:$4 sm:$0xff]  }
 0x798   :  { %6336 = vst [vmem:[#allocation69_spill] sm:$0xff] %v5261_v57  ;;  %6337 = vst [vmem:[#allocation70_spill] sm:$0xff] %v5264_v34 }
 0x79a   :  { %2318 = vmatpush1.bf16.msra.mxu0 %v5249_v10  ;;  %2359 = vmatpush1.bf16.msra.mxu1 %v5252_v49  ;;  %v5267_v10 = vld [vmem:[#allocation14 + $0xa4] ss:$16 sps:$4 sm:$0xff]   ;;  %v5270_v49 = vld [vmem:[#allocation14 + $0xac] ss:$16 sps:$4 sm:$0xff]  }
 0x79b   :  { %2319 = vmatprep.subr.bf16.mxu0 %v5255_v53  ;;  %2360 = vmatprep.subr.bf16.mxu1 %v5258_v58  ;;  %6338 = vst [vmem:[#allocation71_spill] sm:$0xff] %v5267_v10  ;;  %6339 = vst [vmem:[#allocation72_spill] sm:$0xff] %v5270_v49  ;;  %v5273_v53 = vld [vmem:[#allocation14 + $0xa0] ss:$16 sps:$4 sm:$0xff]   ;;  %v5276_v58 = vld [vmem:[#allocation14 + $0xa8] ss:$16 sps:$4 sm:$0xff]  }
 0x79c   :  { %6340 = vst [vmem:[#allocation73_spill] sm:$0xff] %v5273_v53  ;;  %6341 = vst [vmem:[#allocation74_spill] sm:$0xff] %v5276_v58 }
 0x79e   :  { %2320 = vmatpush1.bf16.msra.mxu0 %v5261_v57  ;;  %2361 = vmatpush1.bf16.msra.mxu1 %v5264_v34  ;;  %v5279_v57 = vld [vmem:[#allocation14 + $0xc4] ss:$16 sps:$4 sm:$0xff]   ;;  %v5282_v34 = vld [vmem:[#allocation14 + $0xcc] ss:$16 sps:$4 sm:$0xff]  }
 0x79f   :  { %2321 = vmatprep.subr.bf16.mxu0 %v5267_v10  ;;  %2362 = vmatprep.subr.bf16.mxu1 %v5270_v49  ;;  %6342 = vst [vmem:[#allocation45_spill] sm:$0xff] %v5279_v57  ;;  %6343 = vst [vmem:[#allocation46_spill] sm:$0xff] %v5282_v34  ;;  %v5285_v10 = vld [vmem:[#allocation14 + $0xc0] ss:$16 sps:$4 sm:$0xff]   ;;  %v5288_v49 = vld [vmem:[#allocation14 + $0xc8] ss:$16 sps:$4 sm:$0xff]  }
 0x7a0   :  { %6344 = vst [vmem:[#allocation75_spill] sm:$0xff] %v5285_v10  ;;  %6345 = vst [vmem:[#allocation76_spill] sm:$0xff] %v5288_v49 }
 0x7a2   :  { %2322 = vmatpush1.bf16.msra.mxu0 %v5273_v53  ;;  %2363 = vmatpush1.bf16.msra.mxu1 %v5276_v58  ;;  %v5291_v53 = vld [vmem:[#allocation14 + $0xe4] ss:$16 sps:$4 sm:$0xff]   ;;  %v5294_v58 = vld [vmem:[#allocation14 + $0xec] ss:$16 sps:$4 sm:$0xff]  }
 0x7a3   :  { %2323 = vmatprep.subr.bf16.mxu0 %v5279_v57  ;;  %2364 = vmatprep.subr.bf16.mxu1 %v5282_v34  ;;  %6346 = vst [vmem:[#allocation77_spill] sm:$0xff] %v5291_v53  ;;  %6347 = vst [vmem:[#allocation78_spill] sm:$0xff] %v5294_v58  ;;  %v5297_v57 = vld [vmem:[#allocation14 + $0xe0] ss:$16 sps:$4 sm:$0xff]   ;;  %v5300_v34 = vld [vmem:[#allocation14 + $0xe8] ss:$16 sps:$4 sm:$0xff]  }
 0x7a4   :  { %6348 = vst [vmem:[#allocation79_spill] sm:$0xff] %v5297_v57  ;;  %6349 = vst [vmem:[#allocation80_spill] sm:$0xff] %v5300_v34 }
 0x7a6   :  { %2324 = vmatpush1.bf16.msra.mxu0 %v5285_v10  ;;  %2365 = vmatpush1.bf16.msra.mxu1 %v5288_v49  ;;  %v5303_v10 = vld [vmem:[#allocation14 + $0x104] ss:$16 sps:$4 sm:$0xff]   ;;  %v5306_v49 = vld [vmem:[#allocation14 + $0x10c] ss:$16 sps:$4 sm:$0xff]  }
 0x7a7   :  { %2325 = vmatprep.subr.bf16.mxu0 %v5291_v53  ;;  %2366 = vmatprep.subr.bf16.mxu1 %v5294_v58  ;;  %6350 = vst [vmem:[#allocation81_spill] sm:$0xff] %v5303_v10  ;;  %6351 = vst [vmem:[#allocation82_spill] sm:$0xff] %v5306_v49  ;;  %v5309_v53 = vld [vmem:[#allocation14 + $0x100] ss:$16 sps:$4 sm:$0xff]   ;;  %v5312_v58 = vld [vmem:[#allocation14 + $0x108] ss:$16 sps:$4 sm:$0xff]  }
 0x7a8   :  { %6352 = vst [vmem:[#allocation89_spill] sm:$0xff] %v5309_v53  ;;  %6353 = vst [vmem:[#allocation90_spill] sm:$0xff] %v5312_v58 }
 0x7aa   :  { %2326 = vmatpush1.bf16.msra.mxu0 %v5297_v57  ;;  %2367 = vmatpush1.bf16.msra.mxu1 %v5300_v34  ;;  %v5315_v57 = vld [vmem:[#allocation14 + $0x124] ss:$16 sps:$4 sm:$0xff]   ;;  %v5318_v34 = vld [vmem:[#allocation14 + $0x12c] ss:$16 sps:$4 sm:$0xff]  }
 0x7ab   :  { %2327 = vmatprep.subr.bf16.mxu0 %v5303_v10  ;;  %2368 = vmatprep.subr.bf16.mxu1 %v5306_v49  ;;  %6354 = vst [vmem:[#allocation33_spill] sm:$0xff] %v5315_v57  ;;  %6355 = vst [vmem:[#allocation34_spill] sm:$0xff] %v5318_v34  ;;  %v5321_v10 = vld [vmem:[#allocation14 + $0x120] ss:$16 sps:$4 sm:$0xff]   ;;  %v5324_v49 = vld [vmem:[#allocation14 + $0x128] ss:$16 sps:$4 sm:$0xff]  }
 0x7ac   :  { %6356 = vst [vmem:[#allocation35_spill] sm:$0xff] %v5321_v10  ;;  %6357 = vst [vmem:[#allocation36_spill] sm:$0xff] %v5324_v49 }
 0x7ae   :  { %2328 = vmatpush1.bf16.msra.mxu0 %v5309_v53  ;;  %2369 = vmatpush1.bf16.msra.mxu1 %v5312_v58  ;;  %v5327_v53 = vld [vmem:[#allocation14 + $0x144] ss:$16 sps:$4 sm:$0xff]   ;;  %v5330_v58 = vld [vmem:[#allocation14 + $0x14c] ss:$16 sps:$4 sm:$0xff]  }
 0x7af   :  { %2329 = vmatprep.subr.bf16.mxu0 %v5315_v57  ;;  %2370 = vmatprep.subr.bf16.mxu1 %v5318_v34  ;;  %6358 = vst [vmem:[#allocation37_spill] sm:$0xff] %v5327_v53  ;;  %6359 = vst [vmem:[#allocation38_spill] sm:$0xff] %v5330_v58  ;;  %v5333_v57 = vld [vmem:[#allocation14 + $0x140] ss:$16 sps:$4 sm:$0xff]   ;;  %v5336_v34 = vld [vmem:[#allocation14 + $0x148] ss:$16 sps:$4 sm:$0xff]  }
 0x7b0   :  { %6360 = vst [vmem:[#allocation39_spill] sm:$0xff] %v5333_v57  ;;  %6361 = vst [vmem:[#allocation40_spill] sm:$0xff] %v5336_v34 }
 0x7b2   :  { %2330 = vmatpush1.bf16.msra.mxu0 %v5321_v10  ;;  %2371 = vmatpush1.bf16.msra.mxu1 %v5324_v49  ;;  %v5339_v10 = vld [vmem:[#allocation14 + $0x164] ss:$16 sps:$4 sm:$0xff]   ;;  %v5342_v49 = vld [vmem:[#allocation14 + $0x16c] ss:$16 sps:$4 sm:$0xff]  }
 0x7b3   :  { %2331 = vmatprep.subr.bf16.mxu0 %v5327_v53  ;;  %2372 = vmatprep.subr.bf16.mxu1 %v5330_v58  ;;  %6362 = vst [vmem:[#allocation41_spill] sm:$0xff] %v5339_v10  ;;  %6363 = vst [vmem:[#allocation42_spill] sm:$0xff] %v5342_v49  ;;  %v5345_v53 = vld [vmem:[#allocation14 + $0x160] ss:$16 sps:$4 sm:$0xff]   ;;  %v5348_v58 = vld [vmem:[#allocation14 + $0x168] ss:$16 sps:$4 sm:$0xff]  }
 0x7b4   :  { %6364 = vst [vmem:[#allocation43_spill] sm:$0xff] %v5345_v53  ;;  %6365 = vst [vmem:[#allocation44_spill] sm:$0xff] %v5348_v58 }
 0x7b6   :  { %2332 = vmatpush1.bf16.msra.mxu0 %v5333_v57  ;;  %2373 = vmatpush1.bf16.msra.mxu1 %v5336_v34  ;;  %v5351_v57 = vld [vmem:[#allocation14 + $0x184] ss:$16 sps:$4 sm:$0xff]   ;;  %v5354_v34 = vld [vmem:[#allocation14 + $0x18c] ss:$16 sps:$4 sm:$0xff]  }
 0x7b7   :  { %2333 = vmatprep.subr.bf16.mxu0 %v5339_v10  ;;  %2374 = vmatprep.subr.bf16.mxu1 %v5342_v49  ;;  %6366 = vst [vmem:[#allocation91_spill] sm:$0xff] %v5351_v57  ;;  %6367 = vst [vmem:[#allocation92_spill] sm:$0xff] %v5354_v34  ;;  %v5357_v10 = vld [vmem:[#allocation14 + $0x180] ss:$16 sps:$4 sm:$0xff]   ;;  %v5360_v49 = vld [vmem:[#allocation14 + $0x188] ss:$16 sps:$4 sm:$0xff]  }
 0x7b8   :  { %6368 = vst [vmem:[#allocation93_spill] sm:$0xff] %v5357_v10  ;;  %6369 = vst [vmem:[#allocation94_spill] sm:$0xff] %v5360_v49 }
 0x7ba   :  { %2334 = vmatpush1.bf16.msra.mxu0 %v5345_v53  ;;  %2375 = vmatpush1.bf16.msra.mxu1 %v5348_v58  ;;  %v5363_v53 = vld [vmem:[#allocation14 + $0x1a4] ss:$16 sps:$4 sm:$0xff]   ;;  %v5366_v58 = vld [vmem:[#allocation14 + $0x1ac] ss:$16 sps:$4 sm:$0xff]  }
 0x7bb   :  { %2335 = vmatprep.subr.bf16.mxu0 %v5351_v57  ;;  %2376 = vmatprep.subr.bf16.mxu1 %v5354_v34  ;;  %6370 = vst [vmem:[#allocation95_spill] sm:$0xff] %v5363_v53  ;;  %6371 = vst [vmem:[#allocation96_spill] sm:$0xff] %v5366_v58  ;;  %v5369_v57 = vld [vmem:[#allocation14 + $0x1a0] ss:$16 sps:$4 sm:$0xff]   ;;  %v5372_v34 = vld [vmem:[#allocation14 + $0x1a8] ss:$16 sps:$4 sm:$0xff]  }
 0x7bc   :  { %6372 = vst [vmem:[#allocation30_spill] sm:$0xff] %v5369_v57  ;;  %6373 = vst [vmem:[#allocation31_spill] sm:$0xff] %v5372_v34 }
 0x7be   :  { %2336 = vmatpush1.bf16.msra.mxu0 %v5357_v10  ;;  %2377 = vmatpush1.bf16.msra.mxu1 %v5360_v49  ;;  %v5375_v10 = vld [vmem:[#allocation14 + $0x1c4] ss:$16 sps:$4 sm:$0xff]   ;;  %v5378_v49 = vld [vmem:[#allocation14 + $0x1cc] ss:$16 sps:$4 sm:$0xff]  }
 0x7bf   :  { %2337 = vmatprep.subr.bf16.mxu0 %v5363_v53  ;;  %2378 = vmatprep.subr.bf16.mxu1 %v5366_v58  ;;  %6374 = vst [vmem:[#allocation47_spill] sm:$0xff] %v5375_v10  ;;  %6375 = vst [vmem:[#allocation48_spill] sm:$0xff] %v5378_v49  ;;  %v5381_v53 = vld [vmem:[#allocation14 + $0x1c0] ss:$16 sps:$4 sm:$0xff]   ;;  %v5384_v58 = vld [vmem:[#allocation14 + $0x1c8] ss:$16 sps:$4 sm:$0xff]  }
 0x7c0   :  { %6376 = vst [vmem:[#allocation49_spill] sm:$0xff] %v5381_v53  ;;  %6377 = vst [vmem:[#allocation50_spill] sm:$0xff] %v5384_v58 }
 0x7c2   :  { %2338 = vmatpush1.bf16.msra.mxu0 %v5369_v57  ;;  %2379 = vmatpush1.bf16.msra.mxu1 %v5372_v34  ;;  %v5387_v57 = vld [vmem:[#allocation14 + $0x1e4] ss:$16 sps:$4 sm:$0xff]   ;;  %v5390_v34 = vld [vmem:[#allocation14 + $0x1ec] ss:$16 sps:$4 sm:$0xff]  }
 0x7c3   :  { %2339 = vmatprep.subr.bf16.mxu0 %v5375_v10  ;;  %2380 = vmatprep.subr.bf16.mxu1 %v5378_v49  ;;  %6378 = vst [vmem:[#allocation51_spill] sm:$0xff] %v5387_v57  ;;  %6379 = vst [vmem:[#allocation52_spill] sm:$0xff] %v5390_v34  ;;  %v5393_v10 = vld [vmem:[#allocation14 + $0x1e0] ss:$16 sps:$4 sm:$0xff]   ;;  %v5396_v49 = vld [vmem:[#allocation14 + $0x1e8] ss:$16 sps:$4 sm:$0xff]  }
 0x7c4   :  { %6380 = vst [vmem:[#allocation53_spill] sm:$0xff] %v5393_v10  ;;  %6381 = vst [vmem:[#allocation54_spill] sm:$0xff] %v5396_v49 }
 0x7c6   :  { %2340 = vmatpush1.bf16.msra.mxu0 %v5381_v53  ;;  %2381 = vmatpush1.bf16.msra.mxu1 %v5384_v58 }
 0x7c7   :  { %2341 = vmatprep.subr.bf16.mxu0 %v5387_v57  ;;  %2382 = vmatprep.subr.bf16.mxu1 %v5390_v34 }
 0x7ca   :  { %2342 = vmatpush1.bf16.msra.mxu0 %v5393_v10  ;;  %2383 = vmatpush1.bf16.msra.mxu1 %v5396_v49 }
 0x7cb   :  { %2432 = vmatprep.subr.bf16.mxu0 %v5153_v15  ;;  %2473 = vmatprep.subr.bf16.mxu1 %v5156_v16 }
 0x840   :  { %v2112_v58 = vpop.f32.mrb[44].mxu0  ;;  %v2153_v53 = vpop.f32.mrb[44].mxu1 }
 0x841   :  { %v2113_v57 = vadd.f32 %v2112_v58, %v6302_v19  ;;  %v2114_v56 = vpop.f32.mrb[45].mxu0  ;;  %v2155_v63 = vpop.f32.mrb[45].mxu1  ;;  %v2154_v16 = vadd.f32 %v2153_v53, %v6305_v29 }
 0x842   :  { %v2115_v34 = vadd.f32 %v2114_v56, %v6303_v48  ;;  %v2116_v52 = vpop.f32.mrb[46].mxu0  ;;  %v2157_v55 = vpop.f32.mrb[46].mxu1  ;;  %v2156_v15 = vadd.f32 %v2155_v63, %v6304_v54 }
 0x843   :  { %v2918_v37 = vmul.f32 -1.442695, %v2113_v57  ;;  %v2117_v10 = vpop.f32.mrb[47].mxu0  ;;  %v2158_v2 = vpop.f32.mrb[47].mxu1 }
 0x844   :  { %v2919_v47 = vmul.f32 -1.442695, %v2115_v34  ;;  %v2920_v49 = vmul.f32 -1.442695, %v2156_v15  ;;  %v2189_v55 = vpop.permute.xlu0 %2188 }
 0x845   :  { %3320 = vpow2.f32 %v2918_v37  ;;  %v2191_v2 = vmul.f32 %v2189_v55, %v6306_v51  ;;  %v2194_v51 = vmul.f32 %v2189_v55, %v6119_v32 }
 0x846   :  { %3322 = vpow2.f32 %v2919_v47  ;;  %v2192_v47 = vmul.f32 %v2189_v55, %v6307_v8 }
 0x847   :  { %3324 = vpow2.f32 %v2920_v49 }
 0x848   :  { %3326 = vtanh.f32 %v2154_v16 }
 0x84f   :  { %v3321_v23 = vpop.eup %3320 }
 0x850   :  { %v3323_v18 = vpop.eup %3322  ;;  %v2163_v58 = vadd.f32 1.0, %v3321_v23  ;;  %v2195_v23 = vadd.f32 %v2191_v2, %v6069_v59 }
 0x851   :  { %v2169_v19 = vadd.f32 1.0, %v3323_v18  ;;  %v3325_v52 = vpop.eup %3324  ;;  %v2196_v18 = vadd.f32 %v2192_v47, %v6118_v24  ;;  %v2198_v47 = vadd.f32 %v2194_v51, %v4291_v61 }
 0x852   :  { %3328 = vrcp.f32 %v2163_v58  ;;  %v3327_v56 = vpop.eup %3326  ;;  %v2176_v34 = vadd.f32 1.0, %v3325_v52 }
 0x853   :  { %3330 = vrcp.f32 %v2169_v19 }
 0x854   :  { %3332 = vrcp.f32 %v2176_v34 }
 0x85c   :  { %v3329_v37 = vpop.eup %3328 }
 0x85d   :  { %v3331_v63 = vpop.eup %3330  ;;  %v2180_v57 = vmul.f32 %v3329_v37, %v3327_v56 }
 0x85e   :  { %v2179_v10 = vmul.f32 %v3331_v63, %v5168_v36  ;;  %v2193_v63 = vmul.f32 %v2189_v55, %v4295_v38  ;;  %v3333_v34 = vpop.eup %3332 }
 0x860   :  { %v2233_v49 = vpop.f32.mrb[48].mxu0  ;;  %v2274_v53 = vpop.f32.mrb[48].mxu1  ;;  %v5410_v19 = vadd.f32 %v2180_v57, %v2179_v10  ;;  %v2197_v10 = vadd.f32 %v2193_v63, %v4299_v35 }
 0x861   :  { %v2281_v15 = vadd.f32 %v2233_v49, %v2195_v23  ;;  %v2235_v16 = vpop.f32.mrb[49].mxu0  ;;  %v2276_v58 = vpop.f32.mrb[49].mxu1 }
 0x862   :  { %v2282_v8 = vadd.f32 %v2235_v16, %v2196_v18  ;;  %v2237_v29 = vpop.f32.mrb[50].mxu0  ;;  %v2278_v56 = vpop.f32.mrb[50].mxu1  ;;  %3334 = vtanh.f32 %v5410_v19  ;;  %v2284_v57 = vadd.f32 %v2276_v58, %v2198_v47 }
 0x863   :  { %v2921_v36 = vmul.f32 -1.442695, %v2281_v15  ;;  %v2238_v52 = vpop.f32.mrb[51].mxu0  ;;  %v2279_v2 = vpop.f32.mrb[51].mxu1  ;;  %v2283_v29 = vadd.f32 %v2274_v53, %v2197_v10 }
 0x864   :  { %v2922_v37 = vmul.f32 -1.442695, %v2282_v8  ;;  %v2923_v49 = vmul.f32 -1.442695, %v2284_v57 }
 0x865   :  { %3336 = vpow2.f32 %v2921_v36 }
 0x866   :  { %3338 = vpow2.f32 %v2922_v37 }
 0x867   :  { %3340 = vpow2.f32 %v2923_v49  ;;  %v6417_v49 = vld [vmem:[#allocation34_spill] sm:$0xff] }
 0x868   :  { %3342 = vtanh.f32 %v2283_v29  ;;  %v6418_v29 = vld [vmem:[#allocation35_spill] sm:$0xff] }
 0x86c   :  { %v3335_v23 = vpop.eup %3334 }
 0x86d   :  { %v2183_v18 = vmul.f32 %v3335_v23, %v3333_v34  ;;  %v6416_v23 = vld [vmem:[#allocation33_spill] sm:$0xff] }
 0x86f   :  { %v3337_v16 = vpop.eup %3336  ;;  %v2310_v56 = vpack.c.bf16 %v2183_v18, %v2183_v18  ;;  %v6419_v18 = vld [vmem:[#allocation36_spill] sm:$0xff] }
 0x870   :  { %v3339_v15 = vpop.eup %3338  ;;  %v2288_v52 = vadd.f32 1.0, %v3337_v16  ;;  %v6420_v16 = vld [vmem:[#allocation37_spill] sm:$0xff] }
 0x871   :  { %v2294_v8 = vadd.f32 1.0, %v3339_v15  ;;  %2343 = vmatprep.mubr.bf16.mxu0 %v2310_v56  ;;  %2384 = vmatprep.mubr.bf16.mxu1 %v2310_v56  ;;  %v3341_v51 = vpop.eup %3340  ;;  %v6421_v56 = vld [vmem:[#allocation38_spill] sm:$0xff]  ;;  %v6422_v15 = vld [vmem:[#allocation39_spill] sm:$0xff] }
 0x872   :  { %3344 = vrcp.f32 %v2288_v52  ;;  %v3343_v55 = vpop.eup %3342  ;;  %v2301_v37 = vadd.f32 1.0, %v3341_v51  ;;  %v6423_v52 = vld [vmem:[#allocation40_spill] sm:$0xff]  ;;  %v6425_v51 = vld [vmem:[#allocation42_spill] sm:$0xff] }
 0x873   :  { %3346 = vrcp.f32 %v2294_v8  ;;  %v6424_v8 = vld [vmem:[#allocation41_spill] sm:$0xff] }
 0x874   :  { %3348 = vrcp.f32 %v2301_v37  ;;  %v6430_v37 = vld [vmem:[#allocation93_spill] sm:$0xff] }
 0x87c   :  { %v3345_v58 = vpop.eup %3344 }
 0x87d   :  { %v3347_v36 = vpop.eup %3346  ;;  %v2305_v2 = vmul.f32 %v3345_v58, %v3343_v55  ;;  %v6426_v55 = vld [vmem:[#allocation43_spill] sm:$0xff]  ;;  %v6427_v58 = vld [vmem:[#allocation44_spill] sm:$0xff] }
 0x87e   :  { %v2304_v53 = vmul.f32 %v3347_v36, %v5176_v33  ;;  %v3349_v63 = vpop.eup %3348  ;;  %v6403_v33 = vld [vmem:[#allocation74_spill] sm:$0xff]  ;;  %v6428_v36 = vld [vmem:[#allocation91_spill] sm:$0xff] }
 0x880   :  { %v5418_v47 = vadd.f32 %v2305_v2, %v2304_v53  ;;  %v6429_v2 = vld [vmem:[#allocation92_spill] sm:$0xff]  ;;  %v6431_v53 = vld [vmem:[#allocation94_spill] sm:$0xff] }
 0x882   :  { %3350 = vtanh.f32 %v5418_v47 }
 0x88c   :  { %v3351_v57 = vpop.eup %3350 }
 0x88d   :  { %v2308_v34 = vmul.f32 %v3351_v57, %v3349_v63  ;;  %v6432_v63 = vld [vmem:[#allocation95_spill] sm:$0xff]  ;;  %v6433_v57 = vld [vmem:[#allocation96_spill] sm:$0xff] }
 0x88f   :  { %v2309_v10 = vpack.c.bf16 %v2308_v34, %v2308_v34  ;;  %v6434_v34 = vld [vmem:[#allocation30_spill] sm:$0xff] }
 0x891   :  { %2344 = vmatmul.mubr.bf16.vlgmr.msra.gmra.mrb[52].mxu0 %v2309_v10  ;;  %2385 = vmatmul.mubr.bf16.vlgmr.msra.gmra.mrb[52].mxu1 %v2309_v10 }
 0x892   :  { %2433 = vmatpush1.bf16.msra.mxu0 %v4991_v40  ;;  %2474 = vmatpush1.bf16.msra.mxu1 %v4994_v3  ;;  %v6383_v40 = vld [vmem:[#allocation84_spill] sm:$0xff]  ;;  %v6384_v3 = vld [vmem:[#allocation87_spill] sm:$0xff] }
 0x893   :  { %2434 = vmatprep.subr.bf16.mxu0 %v4997_v26  ;;  %2475 = vmatprep.subr.bf16.mxu1 %v5000_v31  ;;  %v6385_v26 = vld [vmem:[#allocation88_spill] sm:$0xff]  ;;  %v6386_v31 = vld [vmem:[#allocation57_spill] sm:$0xff] }
 0x894   :  { %2464 = vmatprep.mubr.bf16.mxu0 %v6003_v62  ;;  %2505 = vmatprep.mubr.bf16.mxu1 %v6003_v62  ;;  %v6382_v62 = vld [vmem:[#allocation83_spill] sm:$0xff] }
 0x896   :  { %2435 = vmatpush1.bf16.msra.mxu0 %v5005_v21  ;;  %2476 = vmatpush1.bf16.msra.mxu1 %v5008_v4  ;;  %v6387_v21 = vld [vmem:[#allocation58_spill] sm:$0xff]  ;;  %v6388_v4 = vld [vmem:[#allocation59_spill] sm:$0xff] }
 0x897   :  { %2436 = vmatprep.subr.bf16.mxu0 %v5011_v43  ;;  %2477 = vmatprep.subr.bf16.mxu1 %v5014_v13  ;;  %v6389_v43 = vld [vmem:[#allocation60_spill] sm:$0xff]  ;;  %v6390_v13 = vld [vmem:[#allocation61_spill] sm:$0xff] }
 0x89a   :  { %2437 = vmatpush1.bf16.msra.mxu0 %v5017_v5  ;;  %2478 = vmatpush1.bf16.msra.mxu1 %v5020_v44  ;;  %v6391_v5 = vld [vmem:[#allocation62_spill] sm:$0xff]  ;;  %v6392_v44 = vld [vmem:[#allocation63_spill] sm:$0xff] }
 0x89b   :  { %2438 = vmatprep.subr.bf16.mxu0 %v5023_v60  ;;  %2479 = vmatprep.subr.bf16.mxu1 %v5026_v45  ;;  %v6393_v60 = vld [vmem:[#allocation64_spill] sm:$0xff]  ;;  %v6394_v45 = vld [vmem:[#allocation65_spill] sm:$0xff] }
 0x89e   :  { %2439 = vmatpush1.bf16.msra.mxu0 %v5029_v9  ;;  %2480 = vmatpush1.bf16.msra.mxu1 %v5032_v25  ;;  %v6395_v9 = vld [vmem:[#allocation66_spill] sm:$0xff]  ;;  %v6396_v25 = vld [vmem:[#allocation67_spill] sm:$0xff] }
 0x89f   :  { %2440 = vmatprep.subr.bf16.mxu0 %v6308_v22  ;;  %2481 = vmatprep.subr.bf16.mxu1 %v6309_v50  ;;  %v6404_v22 = vld [vmem:[#allocation45_spill] sm:$0xff]  ;;  %v6405_v50 = vld [vmem:[#allocation46_spill] sm:$0xff] }
 0x8a2   :  { %2441 = vmatpush1.bf16.msra.mxu0 %v6310_v27  ;;  %2482 = vmatpush1.bf16.msra.mxu1 %v6311_v1  ;;  %v6406_v27 = vld [vmem:[#allocation75_spill] sm:$0xff]  ;;  %v6407_v1 = vld [vmem:[#allocation76_spill] sm:$0xff] }
 0x8a3   :  { %2442 = vmatprep.subr.bf16.mxu0 %v6312_v0  ;;  %2483 = vmatprep.subr.bf16.mxu1 %v6313_v46  ;;  %v6408_v0 = vld [vmem:[#allocation77_spill] sm:$0xff]  ;;  %v6409_v46 = vld [vmem:[#allocation78_spill] sm:$0xff] }
 0x8a6   :  { %2443 = vmatpush1.bf16.msra.mxu0 %v6314_v6  ;;  %2484 = vmatpush1.bf16.msra.mxu1 %v6315_v7  ;;  %v6410_v6 = vld [vmem:[#allocation79_spill] sm:$0xff]  ;;  %v6411_v7 = vld [vmem:[#allocation80_spill] sm:$0xff] }
 0x8a7   :  { %2444 = vmatprep.subr.bf16.mxu0 %v6316_v11  ;;  %2485 = vmatprep.subr.bf16.mxu1 %v6317_v12  ;;  %v6412_v11 = vld [vmem:[#allocation81_spill] sm:$0xff]  ;;  %v6413_v12 = vld [vmem:[#allocation82_spill] sm:$0xff] }
 0x8aa   :  { %2445 = vmatpush1.bf16.msra.mxu0 %v6318_v14  ;;  %2486 = vmatpush1.bf16.msra.mxu1 %v6319_v17  ;;  %v6414_v14 = vld [vmem:[#allocation89_spill] sm:$0xff]  ;;  %v6415_v17 = vld [vmem:[#allocation90_spill] sm:$0xff] }
 0x8ab   :  { %2446 = vmatprep.subr.bf16.mxu0 %v5071_v28  ;;  %2487 = vmatprep.subr.bf16.mxu1 %v5074_v42  ;;  %v6397_v28 = vld [vmem:[#allocation68_spill] sm:$0xff]  ;;  %v6398_v42 = vld [vmem:[#allocation69_spill] sm:$0xff] }
 0x8ae   :  { %2447 = vmatpush1.bf16.msra.mxu0 %v5077_v20  ;;  %2488 = vmatpush1.bf16.msra.mxu1 %v5080_v39  ;;  %v6399_v20 = vld [vmem:[#allocation70_spill] sm:$0xff]  ;;  %v6400_v39 = vld [vmem:[#allocation71_spill] sm:$0xff] }
 0x8af   :  { %2544 = vmatprep.subr.bf16.mxu0 %v5083_v41  ;;  %2585 = vmatprep.subr.bf16.mxu1 %v5086_v30  ;;  %v6401_v41 = vld [vmem:[#allocation72_spill] sm:$0xff]  ;;  %v6402_v30 = vld [vmem:[#allocation73_spill] sm:$0xff] }
 0x8b1   :  { %2465 = vmatmul.mubr.bf16.vlgmr.msra.gmra.mrb[56].mxu0 %v2309_v10  ;;  %2506 = vmatmul.mubr.bf16.vlgmr.msra.gmra.mrb[56].mxu1 %v2309_v10  ;;  %v6435_v10 = vld [vmem:[#allocation31_spill] sm:$0xff] }
 0x8b2   :  { %2545 = vmatpush1.bf16.msra.mxu0 %v6382_v62  ;;  %2586 = vmatpush1.bf16.msra.mxu1 %v6383_v40  ;;  %v6436_v62 = vld [vmem:[#allocation47_spill] sm:$0xff]  ;;  %v6437_v40 = vld [vmem:[#allocation48_spill] sm:$0xff] }
 0x8b3   :  { %2546 = vmatprep.subr.bf16.mxu0 %v6384_v3  ;;  %2587 = vmatprep.subr.bf16.mxu1 %v6385_v26  ;;  %v6438_v3 = vld [vmem:[#allocation49_spill] sm:$0xff]  ;;  %v6439_v26 = vld [vmem:[#allocation50_spill] sm:$0xff] }
 0x8b6   :  { %2547 = vmatpush1.bf16.msra.mxu0 %v6386_v31  ;;  %2588 = vmatpush1.bf16.msra.mxu1 %v6387_v21  ;;  %v6440_v31 = vld [vmem:[#allocation51_spill] sm:$0xff]  ;;  %v6441_v21 = vld [vmem:[#allocation52_spill] sm:$0xff] }
 0x8b7   :  { %2548 = vmatprep.subr.bf16.mxu0 %v6388_v4  ;;  %2589 = vmatprep.subr.bf16.mxu1 %v6389_v43  ;;  %v6442_v4 = vld [vmem:[#allocation53_spill] sm:$0xff]  ;;  %v6443_v43 = vld [vmem:[#allocation54_spill] sm:$0xff] }
 0x8ba   :  { %2549 = vmatpush1.bf16.msra.mxu0 %v6390_v13  ;;  %2590 = vmatpush1.bf16.msra.mxu1 %v6391_v5 }
 0x8bb   :  { %2550 = vmatprep.subr.bf16.mxu0 %v6392_v44  ;;  %2591 = vmatprep.subr.bf16.mxu1 %v6393_v60  ;;  %v6444_v44 = vld [vmem:[#allocation29_spill] sm:$0xff] }
 0x8be   :  { %2551 = vmatpush1.bf16.msra.mxu0 %v6394_v45  ;;  %2592 = vmatpush1.bf16.msra.mxu1 %v6395_v9 }
 0x8bf   :  { %2552 = vmatprep.subr.bf16.mxu0 %v6396_v25  ;;  %2593 = vmatprep.subr.bf16.mxu1 %v6397_v28 }
 0x8c2   :  { %2553 = vmatpush1.bf16.msra.mxu0 %v6398_v42  ;;  %2594 = vmatpush1.bf16.msra.mxu1 %v6399_v20 }
 0x8c3   :  { %2554 = vmatprep.subr.bf16.mxu0 %v6400_v39  ;;  %2595 = vmatprep.subr.bf16.mxu1 %v6401_v41 }
 0x8c6   :  { %2555 = vmatpush1.bf16.msra.mxu0 %v6402_v30  ;;  %2596 = vmatpush1.bf16.msra.mxu1 %v6403_v33 }
 0x8c7   :  { %2556 = vmatprep.subr.bf16.mxu0 %v6404_v22  ;;  %2597 = vmatprep.subr.bf16.mxu1 %v6405_v50  ;;  %v6445_v50 = vld [vmem:[#allocation32_spill] sm:$0xff] }
 0x8ca   :  { %2557 = vmatpush1.bf16.msra.mxu0 %v6406_v27  ;;  %2598 = vmatpush1.bf16.msra.mxu1 %v6407_v1 }
 0x8cb   :  { %2558 = vmatprep.subr.bf16.mxu0 %v6408_v0  ;;  %2599 = vmatprep.subr.bf16.mxu1 %v6409_v46 }
 0x8ce   :  { %2559 = vmatpush1.bf16.msra.mxu0 %v6410_v6  ;;  %2600 = vmatpush1.bf16.msra.mxu1 %v6411_v7  ;;  %v2422_v7 = vpop.permute.xlu1 %2421 }
 0x8cf   :  { %2560 = vmatprep.subr.bf16.mxu0 %v6412_v11  ;;  %2601 = vmatprep.subr.bf16.mxu1 %v6413_v12 }
 0x8d2   :  { %2561 = vmatpush1.bf16.msra.mxu0 %v6414_v14  ;;  %2602 = vmatpush1.bf16.msra.mxu1 %v6415_v17  ;;  %v6446_v14 = vld [vmem:[#allocation85_spill] sm:$0xff] }
 0x8d3   :  { %2562 = vmatprep.subr.bf16.mxu0 %v6416_v23  ;;  %2603 = vmatprep.subr.bf16.mxu1 %v6417_v49  ;;  %v2424_v17 = vmul.f32 %v2422_v7, %v6446_v14  ;;  %v6447_v49 = vld [vmem:[#allocation86_spill] sm:$0xff] }
 0x8d6   :  { %2563 = vmatpush1.bf16.msra.mxu0 %v6418_v29  ;;  %2604 = vmatpush1.bf16.msra.mxu1 %v6419_v18  ;;  %v2425_v29 = vmul.f32 %v2422_v7, %v6447_v49 }
 0x8d7   :  { %2564 = vmatprep.subr.bf16.mxu0 %v6420_v16  ;;  %2605 = vmatprep.subr.bf16.mxu1 %v6421_v56 }
 0x8da   :  { %2565 = vmatpush1.bf16.msra.mxu0 %v6422_v15  ;;  %2606 = vmatpush1.bf16.msra.mxu1 %v6423_v52  ;;  %v2428_v52 = vadd.f32 %v2424_v17, %v6069_v59 }
 0x8db   :  { %2566 = vmatprep.subr.bf16.mxu0 %v6424_v8  ;;  %2607 = vmatprep.subr.bf16.mxu1 %v6425_v51 }
 0x8de   :  { %2567 = vmatpush1.bf16.msra.mxu0 %v6426_v55  ;;  %2608 = vmatpush1.bf16.msra.mxu1 %v6427_v58  ;;  %v2429_v55 = vadd.f32 %v2425_v29, %v6118_v24 }
 0x8df   :  { %2568 = vmatprep.subr.bf16.mxu0 %v6428_v36  ;;  %2609 = vmatprep.subr.bf16.mxu1 %v6429_v2 }
 0x8e2   :  { %2569 = vmatpush1.bf16.msra.mxu0 %v6430_v37  ;;  %2610 = vmatpush1.bf16.msra.mxu1 %v6431_v53  ;;  %v2427_v53 = vmul.f32 %v2422_v7, %v6119_v32 }
 0x8e3   :  { %2570 = vmatprep.subr.bf16.mxu0 %v6432_v63  ;;  %2611 = vmatprep.subr.bf16.mxu1 %v6433_v57 }
 0x8e4   :  { %v2431_v24 = vadd.f32 %v2427_v53, %v4291_v61 }
 0x8e6   :  { %2571 = vmatpush1.bf16.msra.mxu0 %v6434_v34  ;;  %2612 = vmatpush1.bf16.msra.mxu1 %v6435_v10 }
 0x8e7   :  { %2572 = vmatprep.subr.bf16.mxu0 %v6436_v62  ;;  %2613 = vmatprep.subr.bf16.mxu1 %v6437_v40  ;;  %v2426_v40 = vmul.f32 %v2422_v7, %v4295_v38  ;;  %v3141_v7 = vld [vmem:[#allocation17 + $0x28] sm:$0xff]  }
 0x8ea   :  { %2573 = vmatpush1.bf16.msra.mxu0 %v6438_v3  ;;  %2614 = vmatpush1.bf16.msra.mxu1 %v6439_v26 }
 0x8eb   :  { %2574 = vmatprep.subr.bf16.mxu0 %v6440_v31  ;;  %2615 = vmatprep.subr.bf16.mxu1 %v6441_v21  ;;  %v2430_v31 = vadd.f32 %v2426_v40, %v4299_v35 }
 0x8ee   :  { %2575 = vmatpush1.bf16.msra.mxu0 %v6442_v4  ;;  %2616 = vmatpush1.bf16.msra.mxu1 %v6443_v43 }
 0x964   :  { %v2345_v13 = vpop.f32.mrb[52].mxu0  ;;  %v2386_v5 = vpop.f32.mrb[52].mxu1 }
 0x965   :  { %v2346_v60 = vadd.f32 %v2345_v13, %v6444_v44  ;;  %v2347_v45 = vpop.f32.mrb[53].mxu0  ;;  %v2388_v9 = vpop.f32.mrb[53].mxu1  ;;  %v2387_v27 = vadd.f32 %v2386_v5, %v6445_v50 }
 0x966   :  { %v2348_v25 = vadd.f32 %v2347_v45, %v6303_v48  ;;  %v2349_v28 = vpop.f32.mrb[54].mxu0  ;;  %v2390_v42 = vpop.f32.mrb[54].mxu1  ;;  %v2389_v33 = vadd.f32 %v2388_v9, %v6304_v54 }
 0x967   :  { %v2924_v20 = vmul.f32 -1.442695, %v2346_v60  ;;  %v2350_v39 = vpop.f32.mrb[55].mxu0  ;;  %v2391_v41 = vpop.f32.mrb[55].mxu1 }
 0x968   :  { %v2925_v30 = vmul.f32 -1.442695, %v2348_v25  ;;  %v2926_v22 = vmul.f32 -1.442695, %v2389_v33 }
 0x969   :  { %3352 = vpow2.f32 %v2924_v20 }
 0x96a   :  { %3354 = vpow2.f32 %v2925_v30 }
 0x96b   :  { %3356 = vpow2.f32 %v2926_v22 }
 0x96c   :  { %3358 = vtanh.f32 %v2387_v27  ;;  %v3136_v27 = vld [vmem:[#allocation17] sm:$0xff]  }
 0x973   :  { %v3353_v1 = vpop.eup %3352 }
 0x974   :  { %v3355_v0 = vpop.eup %3354  ;;  %v2396_v46 = vadd.f32 1.0, %v3353_v1  ;;  %v3818_v1 = vmov 0.0  }
 0x975   :  { %v2402_v6 = vadd.f32 1.0, %v3355_v0  ;;  %v3357_v11 = vpop.eup %3356  ;;  %2951 = vmatprep.subr.bf16.mxu0 %v3818_v1  ;;  %v3137_v0 = vld [vmem:[#allocation17 + $0x8] sm:$0xff]  }
 0x976   :  { %3360 = vrcp.f32 %v2396_v46  ;;  %v3359_v12 = vpop.eup %3358  ;;  %v2409_v56 = vadd.f32 1.0, %v3357_v11  ;;  %v3138_v46 = vld [vmem:[#allocation17 + $0x10] sm:$0xff]  }
 0x977   :  { %3362 = vrcp.f32 %v2402_v6  ;;  %v3140_v6 = vld [vmem:[#allocation17 + $0x20] sm:$0xff]   ;;  %v3142_v11 = vld [vmem:[#allocation17 + $0x30] sm:$0xff]  }
 0x978   :  { %3364 = vrcp.f32 %v2409_v56 }
 0x980   :  { %v3361_v23 = vpop.eup %3360 }
 0x981   :  { %v3363_v18 = vpop.eup %3362  ;;  %v2413_v16 = vmul.f32 %v3361_v23, %v3359_v12  ;;  %v3143_v12 = vld [vmem:[#allocation17 + $0x38] sm:$0xff]  }
 0x982   :  { %v2412_v15 = vmul.f32 %v3363_v18, %v5410_v19  ;;  %v3365_v26 = vpop.eup %3364 }
 0x984   :  { %v2466_v8 = vpop.f32.mrb[56].mxu0  ;;  %v2507_v51 = vpop.f32.mrb[56].mxu1  ;;  %v5526_v58 = vadd.f32 %v2413_v16, %v2412_v15 }
 0x985   :  { %v2514_v36 = vadd.f32 %v2466_v8, %v2428_v52  ;;  %v2468_v2 = vpop.f32.mrb[57].mxu0  ;;  %v2509_v37 = vpop.f32.mrb[57].mxu1  ;;  %v2516_v4 = vadd.f32 %v2507_v51, %v2430_v31 }
 0x986   :  { %v2515_v63 = vadd.f32 %v2468_v2, %v2429_v55  ;;  %v2470_v57 = vpop.f32.mrb[58].mxu0  ;;  %v2511_v34 = vpop.f32.mrb[58].mxu1  ;;  %3366 = vtanh.f32 %v5526_v58  ;;  %v2517_v3 = vadd.f32 %v2509_v37, %v2431_v24 }
 0x987   :  { %v2927_v19 = vmul.f32 -1.442695, %v2514_v36  ;;  %v2471_v10 = vpop.f32.mrb[59].mxu0  ;;  %v2512_v59 = vpop.f32.mrb[59].mxu1 }
 0x988   :  { %v2928_v62 = vmul.f32 -1.442695, %v2515_v63  ;;  %v2929_v21 = vmul.f32 -1.442695, %v2517_v3 }
 0x989   :  { %3368 = vpow2.f32 %v2927_v19 }
 0x98a   :  { %3370 = vpow2.f32 %v2928_v62 }
 0x98b   :  { %3372 = vpow2.f32 %v2929_v21 }
 0x98c   :  { %3374 = vtanh.f32 %v2516_v4 }
 0x990   :  { %v3367_v32 = vpop.eup %3366 }
 0x991   :  { %v2416_v43 = vmul.f32 %v3367_v32, %v3365_v26  ;;  %v2933_v26 = vld [vmem:[#allocation18] ss:$0 sm:$0xff] }
 0x993   :  { %v3369_v13 = vpop.eup %3368  ;;  %v2543_v5 = vpack.c.bf16 %v2416_v43, %v2416_v43 }
 0x994   :  { %v3371_v60 = vpop.eup %3370  ;;  %v2521_v45 = vadd.f32 1.0, %v3369_v13 }
 0x995   :  { %v2527_v9 = vadd.f32 1.0, %v3371_v60  ;;  %2576 = vmatprep.mubr.bf16.mxu0 %v2543_v5  ;;  %2617 = vmatprep.mubr.bf16.mxu1 %v2543_v5  ;;  %v3373_v61 = vpop.eup %3372 }
 0x996   :  { %3376 = vrcp.f32 %v2521_v45  ;;  %v3375_v38 = vpop.eup %3374  ;;  %v2534_v42 = vadd.f32 1.0, %v3373_v61 }
 0x997   :  { %3378 = vrcp.f32 %v2527_v9 }
 0x998   :  { %3380 = vrcp.f32 %v2534_v42 }
 0x9a0   :  { %v3377_v25 = vpop.eup %3376 }
 0x9a1   :  { %v3379_v28 = vpop.eup %3378  ;;  %v2538_v35 = vmul.f32 %v3377_v25, %v3375_v38 }
 0x9a2   :  { %v2537_v20 = vmul.f32 %v3379_v28, %v5418_v47  ;;  %v3381_v41 = vpop.eup %3380  ;;  %v3139_v47 = vld [vmem:[#allocation17 + $0x18] sm:$0xff]  }
 0x9a4   :  { %v2539_v39 = vadd.f32 %v2538_v35, %v2537_v20 }
 0x9a6   :  { %3382 = vtanh.f32 %v2539_v39 }
 0x9b0   :  { %v3383_v30 = vpop.eup %3382 }
 0x9b1   :  { %v2541_v33 = vmul.f32 %v3383_v30, %v3381_v41 }
 0x9b3   :  { %v2542_v22 = vpack.c.bf16 %v2541_v33, %v2541_v33 }
 0x9b5   :  { %2577 = vmatmul.mubr.bf16.vlgmr.msra.gmra.mrb[60].mxu0 %v2542_v22  ;;  %2618 = vmatmul.mubr.bf16.vlgmr.msra.gmra.mrb[60].mxu1 %v2542_v22 }
 0x9b6   :  { %2952 = vmatpush3.bf16.msra.mxu0 %v3136_v27  ;;  %2967 = vmatprep.mubr.msk.bf16.mxu0 %vm3819_vm0, %v3818_v1 }
 0x9b7   :  { %2953 = vmatprep.subr.bf16.mxu0 %v3818_v1 }
 0x9ba   :  { %2954 = vmatpush3.bf16.msra.mxu0 %v3137_v0 }
 0x9bb   :  { %2955 = vmatprep.subr.bf16.mxu0 %v3818_v1 }
 0x9be   :  { %2956 = vmatpush3.bf16.msra.mxu0 %v3138_v46 }
 0x9bf   :  { %2957 = vmatprep.subr.bf16.mxu0 %v3818_v1 }
 0x9c2   :  { %2958 = vmatpush3.bf16.msra.mxu0 %v3139_v47 }
 0x9c3   :  { %2959 = vmatprep.subr.bf16.mxu0 %v3818_v1 }
 0x9c6   :  { %2960 = vmatpush3.bf16.msra.mxu0 %v3140_v6 }
 0x9c7   :  { %2961 = vmatprep.subr.bf16.mxu0 %v3818_v1 }
 0x9ca   :  { %2962 = vmatpush3.bf16.msra.mxu0 %v3141_v7 }
 0x9cb   :  { %2963 = vmatprep.subr.bf16.mxu0 %v3818_v1 }
 0x9ce   :  { %2964 = vmatpush3.bf16.msra.mxu0 %v3142_v11 }
 0x9cf   :  { %2965 = vmatprep.subr.bf16.mxu0 %v3818_v1 }
 0x9d2   :  { %2966 = vmatpush3.bf16.msra.mxu0 %v3143_v12 }
 0xa88   :  { %v2578_v14 = vpop.f32.mrb[60].mxu0  ;;  %v2619_v17 = vpop.f32.mrb[60].mxu1 }
 0xa89   :  { %v2579_v23 = vadd.f32 %v2578_v14, %v6444_v44  ;;  %v2580_v49 = vpop.f32.mrb[61].mxu0  ;;  %v2621_v29 = vpop.f32.mrb[61].mxu1  ;;  %v2620_v2 = vadd.f32 %v2619_v17, %v6445_v50 }
 0xa8a   :  { %v2581_v18 = vadd.f32 %v2580_v49, %v6303_v48  ;;  %v2582_v16 = vpop.f32.mrb[62].mxu0  ;;  %v2623_v56 = vpop.f32.mrb[62].mxu1  ;;  %v2622_v55 = vadd.f32 %v2621_v29, %v6304_v54 }
 0xa8b   :  { %v2930_v15 = vmul.f32 -1.442695, %v2579_v23  ;;  %v2583_v52 = vpop.f32.mrb[63].mxu0  ;;  %v2624_v8 = vpop.f32.mrb[63].mxu1 }
 0xa8c   :  { %v2931_v51 = vmul.f32 -1.442695, %v2581_v18  ;;  %v2932_v36 = vmul.f32 -1.442695, %v2622_v55 }
 0xa8d   :  { %3384 = vpow2.f32 %v2930_v15 }
 0xa8e   :  { %3386 = vpow2.f32 %v2931_v51 }
 0xa8f   :  { %3388 = vpow2.f32 %v2932_v36 }
 0xa90   :  { %3390 = vtanh.f32 %v2620_v2 }
 0xa97   :  { %v3385_v37 = vpop.eup %3384 }
 0xa98   :  { %v3387_v53 = vpop.eup %3386  ;;  %v2629_v44 = vadd.f32 1.0, %v3385_v37 }
 0xa99   :  { %v2635_v63 = vadd.f32 1.0, %v3387_v53  ;;  %v3389_v48 = vpop.eup %3388 }
 0xa9a   :  { %3392 = vrcp.f32 %v2629_v44  ;;  %v3391_v57 = vpop.eup %3390  ;;  %v2642_v59 = vadd.f32 1.0, %v3389_v48 }
 0xa9b   :  { %3394 = vrcp.f32 %v2635_v63 }
 0xa9c   :  { %3396 = vrcp.f32 %v2642_v59 }
 0xaa4   :  { %v3393_v34 = vpop.eup %3392 }
 0xaa5   :  { %v3395_v19 = vpop.eup %3394  ;;  %v2646_v10 = vmul.f32 %v3393_v34, %v3391_v57 }
 0xaa6   :  { %v2645_v62 = vmul.f32 %v3395_v19, %v5526_v58  ;;  %v3397_v50 = vpop.eup %3396 }
 0xaa8   :  { %v2647_v54 = vadd.f32 %v2646_v10, %v2645_v62 }
 0xaaa   :  { %3398 = vtanh.f32 %v2647_v54 }
 0xab4   :  { %v3399_v24 = vpop.eup %3398 }
 0xab5   :  { %v2649_v40 = vmul.f32 %v3399_v24, %v3397_v50 }
 0xab7   :  { %v2664_v3 = vpack.c.bf16 %v2649_v40, %v2649_v40 }
 0xab9   :  { %2968 = vmatmul.mubr.bf16.vlgmr.msra.gmra.mrb[64].mxu0 %v2664_v3 }
 0xb8c   :  { %v2763_v31 = vpop.f32.mrb[64].mxu0 }
 0xb8d   :  { %v2764_v32 = vadd.f32 %v2933_v26, %v2763_v31  ;;  %v2969_v21 = vpop.f32.mrb[65].mxu0 }
 0xb8e   :  { %v2766_v4 = vpop.f32.mrb[66].mxu0 }
 0xb8f   :  { %2769 = vst [vmem:[#allocation20] sm:$0xff] %v2764_v32  ;;  %v2970_v43 = vpop.f32.mrb[67].mxu0 }
 0xb90   :  { %3779 = shalt.err (!%p3776_p12)
}
 0xb91   :  { %s3780_s9 = scalar_lea.hbm %s5559_s8, 128 }
 0xb92   :  { %p3781_p13 = scmp.ne.s32.totalorder %s5559_s8, %s3780_s9  ;;  %p3784_p0 = scmp.lt.u32.totalorder %s3780_s9, %s5559_s8 }
 0xb94   :  { %p3786_p1 = pnand %p3784_p0, %p3781_p13 }
 0xb96   :  { %3789 = shalt.err (!%p3786_p1)
}
 0xb97   :  { %2779 = dma.vmem_to_hbm [thread:$0]  %s2777_s27, 128, %s5559_s8, [#allocation8]  }
 0xb98   :  { %3800 = dma.done.wait [#allocation8], 128  }
 0xb99   :  { %3801 = vsyncadd [#allocation8], 4294967168 }
 0xb9a   :  { %2783 = vsyncpa [#allocation7], 1 }
 0xb9b   :  { %2784 = vsyncpa [#allocation10], 1 }
 0xb9c   :  { %2785 = vsyncpa [#allocation13], 1 }
 0xb9d   :  { %2786 = vsyncpa [#allocation16], 1 }
 0xb9e   :  { %2787 = vsyncpa [#allocation19], 1 }
 0xb9f   :  { %2788 = vsyncpa [#allocation8], 1 }

</bundles_post_ra>
